<compile_context>
chip_gen: v5e
topology: v5e:2x2
jax: 0.10.0
libtpu: 0.0.40
codegen_flags: <defaults>
</compile_context>

<pallas_src>
import functools

import jax
import jax.numpy as jnp
from jax.experimental import pallas as pl
from jax.experimental.pallas import tpu as pltpu

# MXU operand dtype.  f32 so the demo matches the f32 reference; set to
# jnp.bfloat16 on v6e/v7x real configs (2x MXU rate, half weight VMEM/HBM
# bytes).  Accumulation and all elementwise math stay f32 (v5e-safe).
MXU_DTYPE = jnp.float32


# ----------------------------------------------------------------------------
# In-kernel helpers (plain functions traced inside the Pallas kernel).
# ----------------------------------------------------------------------------
def _layer_norm(x, gamma, beta, eps):
    """Row-wise LayerNorm over the last axis. gamma/beta: (1, D)."""
    mu = jnp.mean(x, axis=-1, keepdims=True)
    var = jnp.mean(jnp.square(x - mu), axis=-1, keepdims=True)
    return (x - mu) * jax.lax.rsqrt(var + eps) * gamma + beta


def _swap01(x3):
    """(a, b, d) -> (b, a, d).  Free reshape when a leading dim is 1 (always the
    case on the demo's per-TensorCore batch split); real transpose otherwise."""
    a, b, d = x3.shape
    if a == 1 or b == 1:
        return x3.reshape(b, a, d)
    return jnp.transpose(x3, (1, 0, 2))


def _mha(q3, k3, v3, *, n_heads, d_k):
    """Multi-head attention on batch-leading 3D tiles.

    q3: (NB, Lq, H*d_k), k3/v3: (NB, Lk, H*d_k) -> (NB, Lq, H*d_k).
    Heads are peeled off with static d_k lane slices and stacked along the
    leading (batch) axis, so scores and context are each ONE batched einsum
    over all (batch, head) pairs - no per-batch row slicing / stacking.
    """
    nb = q3.shape[0]
    scale = 1.0 / (d_k ** 0.5)

    def heads(t3):                       # (NB, L, H*dk) -> (H*NB, L, dk)
        return jnp.concatenate(
            [t3[:, :, h * d_k:(h + 1) * d_k] for h in range(n_heads)], axis=0)

    qh, kh, vh = heads(q3), heads(k3), heads(v3)
    s = jnp.einsum("bqd,bkd->bqk",
                   qh.astype(MXU_DTYPE), kh.astype(MXU_DTYPE),
                   preferred_element_type=jnp.float32) * scale
    m = jnp.max(s, axis=-1, keepdims=True)
    p = jnp.exp(s - m)
    # EUP approximate reciprocal (separate issue slot, ~free).  Well inside
    # tolerance at these kv lengths; use approx=False for very long kv.
    p = p * pl.reciprocal(jnp.sum(p, axis=-1, keepdims=True), approx=True)
    ctx = jnp.einsum("bqk,bkd->bqd",
                     p.astype(MXU_DTYPE), vh.astype(MXU_DTYPE),
                     preferred_element_type=jnp.float32)
    # (H*NB, Lq, dk) -> (NB, Lq, H*dk): leading-axis slices + lane concat.
    return jnp.concatenate(
        [ctx[h * nb:(h + 1) * nb] for h in range(n_heads)], axis=-1)


# ----------------------------------------------------------------------------
# The fused kernel: embedding + PE + Magic stack + cross-attention.
# ----------------------------------------------------------------------------
def trans_decoder_kernel(ids_ref, pe_ref, enc_ref, emb_ref,
                         wqkv_ref, bqkv_ref, wo_ref, bo_ref,
                         w1_ref, b1_ref, w2_ref, b2_ref,
                         g1_ref, be1_ref, g2_ref, be2_ref,
                         wqx_ref, bqx_ref, wkvx_ref, bkvx_ref, wox_ref, box_ref,
                         o_ref,
                         *, n_layers, bb, seq, src_len, n_heads, d_k, vocab, eps):
    d_model = n_heads * d_k
    rows = bb * seq

    # --- Embedding lookup (one-hot MXU gather, exact in f32) + positional enc.
    # TODO(synk): for real vocab sizes replace the one-hot matmul with a
    # scalar-prefetch + DMA row gather on an HBM-resident embedding table.
    ids = ids_ref[...]                                          # (rows, 1) int32
    onehot = jnp.where(
        ids == jax.lax.broadcasted_iota(jnp.int32, (rows, vocab), 1),
        1.0, 0.0).astype(MXU_DTYPE)
    x = jnp.dot(onehot, emb_ref[...],
                preferred_element_type=jnp.float32)             # (rows, D)
    x = (x.reshape(bb, seq, d_model) + pe_ref[...][None]).reshape(rows, d_model)

    # --- Stack of `Magic` decoder blocks (static unroll; x stays in VMEM).
    # TODO(synk): for real sizes move the layer index onto an "arbitrary" grid
    # axis (or Buffered(1) weight specs) instead of keeping all layers resident.
    for l in range(n_layers):
        # Fused Q|K|V projection: one (rows, D) @ (D, 3D) MXU pass, then slice.
        qkv = jnp.dot(x.astype(MXU_DTYPE), wqkv_ref[l],
                      preferred_element_type=jnp.float32) + bqkv_ref[l]
        q3 = qkv[:, :d_model].reshape(bb, seq, d_model)
        k3 = qkv[:, d_model:2 * d_model].reshape(bb, seq, d_model)
        v3 = qkv[:, 2 * d_model:].reshape(bb, seq, d_model)

        # No mask: the reference Magic block uses a plain softmax.
        attn = _mha(q3, k3, v3, n_heads=n_heads, d_k=d_k).reshape(rows, d_model)
        attn = jnp.dot(attn.astype(MXU_DTYPE), wo_ref[l],
                       preferred_element_type=jnp.float32) + bo_ref[l]
        x = _layer_norm(x + attn, g1_ref[l], be1_ref[l], eps)

        hid = jnp.maximum(
            jnp.dot(x.astype(MXU_DTYPE), w1_ref[l],
                    preferred_element_type=jnp.float32) + b1_ref[l], 0.0)
        ffn = jnp.dot(hid.astype(MXU_DTYPE), w2_ref[l],
                      preferred_element_type=jnp.float32) + b2_ref[l]
        x = _layer_norm(x + ffn, g2_ref[l], be2_ref[l], eps)

    # --- Cross-attention (nn.MultiheadAttention, batch_first=False, no mask).
    # The Magic output (bb, seq, D) is the query with dim0 = target length and
    # dim1 = attention batch, so queries are re-presented attention-batch-major
    # (a free reshape on the bb=1 per-core split path).
    q2 = jnp.dot(x.astype(MXU_DTYPE), wqx_ref[...],
                 preferred_element_type=jnp.float32) + bqx_ref[...]
    q_nb = _swap01(q2.reshape(bb, seq, d_model))                # (seq, bb, D)

    enc = enc_ref[...]                                          # (seq, src, D)
    kv2 = jnp.dot(enc.reshape(seq * src_len, d_model).astype(MXU_DTYPE),
                  wkvx_ref[...], preferred_element_type=jnp.float32) + bkvx_ref[...]
    k_nb = kv2[:, :d_model].reshape(seq, src_len, d_model)
    v_nb = kv2[:, d_model:].reshape(seq, src_len, d_model)

    ctx = _mha(q_nb, k_nb, v_nb, n_heads=n_heads, d_k=d_k)      # (seq, bb, D)
    ctx = _swap01(ctx).reshape(rows, d_model)                   # back to (b,s)-major
    out = jnp.dot(ctx.astype(MXU_DTYPE), wox_ref[...],
                  preferred_element_type=jnp.float32) + box_ref[...]
    # D < 128 -> masked stores at demo size; for real configs pick d_model as a
    # multiple of 128 so the output store is lane-dense (unmasked vst).
    o_ref[...] = out.reshape(bb, seq, d_model)


# ----------------------------------------------------------------------------
# Wrapper: one-time weight layout plumbing + pallas_call setup.
# ----------------------------------------------------------------------------
def _full_spec(shape):
    nd = len(shape)
    return pl.BlockSpec(shape, lambda i, _nd=nd: (0,) * _nd)


def _vmem_limit_bytes():
    # Derive from the attached chip's physical VMEM, leaving compiler headroom:
    # ~51 MiB on v7x (64 MiB physical), capped at 100 MiB on v5e/v6e (128 MiB).
    try:
        cap = int(getattr(pltpu.get_tpu_info(), "vmem_capacity_bytes", 0))
        if cap > 0:
            return min((cap * 4) // 5, 100 * 1024 * 1024)
    except Exception:
        pass
    return 32 * 1024 * 1024


def prepare_magic_params(layer_params):
    """PyTorch-layout per-layer weights -> stacked kernel layout: weights
    transposed once to (in, out), Q|K|V fused into one (D, 3D) projection,
    biases / LN params as (1, dim) broadcast rows."""
    def stack(fn, dtype=jnp.float32):
        return jnp.stack([fn(p) for p in layer_params], axis=0).astype(dtype)
    return {
        "w_qkv": stack(lambda p: jnp.concatenate(
            [p["wq"].T, p["wk"].T, p["wv"].T], axis=1), MXU_DTYPE),
        "b_qkv": stack(lambda p: jnp.concatenate(
            [p["bq"], p["bk"], p["bv"]], axis=0)[None, :]),
        "w_o": stack(lambda p: p["wo"].T, MXU_DTYPE),
        "b_o": stack(lambda p: p["bo"][None, :]),
        "w1": stack(lambda p: p["w1"].T, MXU_DTYPE),
        "b1": stack(lambda p: p["b1"][None, :]),
        "w2": stack(lambda p: p["w2"].T, MXU_DTYPE),
        "b2": stack(lambda p: p["b2"][None, :]),
        "g1": stack(lambda p: p["g1"][None, :]),
        "beta1": stack(lambda p: p["beta1"][None, :]),
        "g2": stack(lambda p: p["g2"][None, :]),
        "beta2": stack(lambda p: p["beta2"][None, :]),
    }


def prepare_mha_params(p):
    d_model = p["out_w"].shape[0]
    return {
        "w_q":  p["in_w"][:d_model].T.astype(MXU_DTYPE),       # (D, D)
        "b_q":  p["in_b"][:d_model][None, :],                  # (1, D)
        "w_kv": p["in_w"][d_model:].T.astype(MXU_DTYPE),       # (D, 2D) fused K|V
        "b_kv": p["in_b"][d_model:][None, :],                  # (1, 2D)
        "w_out": p["out_w"].T.astype(MXU_DTYPE),               # (D, D)
        "b_out": p["out_b"][None, :],                          # (1, D)
    }


def positional_encoding(max_len, d_model):
    pos = jnp.arange(max_len, dtype=jnp.float32)[:, None]
    dim = jnp.arange(d_model, dtype=jnp.float32)[None, :]
    angles = pos / jnp.power(10000.0, dim / d_model)
    even = (jnp.arange(d_model) % 2 == 0)[None, :]
    return jnp.where(even, jnp.sin(angles), jnp.cos(angles))


def trans_decoder_pallas(encoder_embs, decoder_inputs, params, *, n_heads, eps=1e-5):
    """Pallas-backed TransDecoder.forward(encoder_embs, decoder_inputs).

    decoder_inputs: (B, S) int token ids.
    encoder_embs:   (Lsrc, S, D) - nn.MultiheadAttention batch_first=False; its
                    "batch" dim must equal the decoder seq_len S.
    Returns (B, S, D) == the (L, N, E) cross-attention output of the module.
    """
    B, S = decoder_inputs.shape
    V, D = params["emb"].shape
    Lsrc, N_enc, D_enc = encoder_embs.shape
    assert N_enc == S and D_enc == D
    d_k = D // n_heads
    layers = params["layers"]
    n_layers = len(layers)
    d_ff = layers[0]["w1"].shape[0]

    # One fused kernel; the grid only splits the batch B (each block is fully
    # independent end-to-end), so each v7x TensorCore gets one "parallel" block.
    # Weights / encoder / PE / embedding table are grid-invariant (fetched once).
    num_blocks = 2 if (B % 2 == 0 and ((B // 2) * S) % 8 == 0) else 1
    bb = B // num_blocks

    prep_m = prepare_magic_params(layers)
    prep_x = prepare_mha_params(params["mha"])
    pe = positional_encoding(params["max_length"], D)[:S]          # (S, D)
    ids2 = decoder_inputs.reshape(B * S, 1).astype(jnp.int32)      # (B*S, 1)
    enc_nb = jnp.transpose(encoder_embs, (1, 0, 2))                # (S, Lsrc, D)
    emb = params["emb"].astype(MXU_DTYPE)

    kernel = functools.partial(
        trans_decoder_kernel, n_layers=n_layers, bb=bb, seq=S, src_len=Lsrc,
        n_heads=n_heads, d_k=d_k, vocab=V, eps=eps)

    in_specs = [
        pl.BlockSpec((bb * S, 1), lambda i: (i, 0)),               # token ids
        _full_spec((S, D)),                                        # pos. encoding
        _full_spec((S, Lsrc, D)),                                  # encoder (n-major)
        _full_spec((V, D)),                                        # embedding table
        _full_spec((n_layers, D, 3 * D)), _full_spec((n_layers, 1, 3 * D)),
        _full_spec((n_layers, D, D)),     _full_spec((n_layers, 1, D)),
        _full_spec((n_layers, D, d_ff)),  _full_spec((n_layers, 1, d_ff)),
        _full_spec((n_layers, d_ff, D)),  _full_spec((n_layers, 1, D)),
        _full_spec((n_layers, 1, D)),     _full_spec((n_layers, 1, D)),
        _full_spec((n_layers, 1, D)),     _full_spec((n_layers, 1, D)),
        _full_spec((D, D)),     _full_spec((1, D)),
        _full_spec((D, 2 * D)), _full_spec((1, 2 * D)),
        _full_spec((D, D)),     _full_spec((1, D)),
    ]

    return pl.pallas_call(
        kernel,
        out_shape=jax.ShapeDtypeStruct((B, S, D), jnp.float32),
        grid=(num_blocks,),
        in_specs=in_specs,
        out_specs=pl.BlockSpec((bb, S, D), lambda i: (i, 0, 0)),
        compiler_params=pltpu.CompilerParams(
            dimension_semantics=("parallel",),
            vmem_limit_bytes=_vmem_limit_bytes()),
    )(ids2, pe, enc_nb, emb,
      prep_m["w_qkv"], prep_m["b_qkv"], prep_m["w_o"], prep_m["b_o"],
      prep_m["w1"], prep_m["b1"], prep_m["w2"], prep_m["b2"],
      prep_m["g1"], prep_m["beta1"], prep_m["g2"], prep_m["beta2"],
      prep_x["w_q"], prep_x["b_q"], prep_x["w_kv"], prep_x["b_kv"],
      prep_x["w_out"], prep_x["b_out"])


# ----------------------------------------------------------------------------
# Pure-JAX reference (mirrors the PyTorch forward exactly) for verification.
# ----------------------------------------------------------------------------
def _linear_ref(x, w, b):
    return x @ w.T + b


def _layer_norm_ref(x, g, b, eps=1e-5):
    mu = x.mean(axis=-1, keepdims=True)
    var = ((x - mu) ** 2).mean(axis=-1, keepdims=True)
    return (x - mu) * jax.lax.rsqrt(var + eps) * g + b


def magic_ref(x, p, n_heads):
    B, S, D = x.shape
    d_k = D // n_heads
    q = _linear_ref(x, p["wq"], p["bq"]).reshape(B, S, n_heads, d_k).transpose(0, 2, 1, 3)
    k = _linear_ref(x, p["wk"], p["bk"]).reshape(B, S, n_heads, d_k).transpose(0, 2, 1, 3)
    v = _linear_ref(x, p["wv"], p["bv"]).reshape(B, S, n_heads, d_k).transpose(0, 2, 1, 3)
    attn = jnp.einsum("bhqd,bhkd->bhqk", q, k) / (d_k ** 0.5)
    attn = jax.nn.softmax(attn, axis=-1)             # no mask in the reference
    out = jnp.einsum("bhqk,bhkd->bhqd", attn, v).transpose(0, 2, 1, 3).reshape(B, S, D)
    out = _linear_ref(out, p["wo"], p["bo"])
    x = _layer_norm_ref(x + out, p["g1"], p["beta1"])
    ffn = _linear_ref(jax.nn.relu(_linear_ref(x, p["w1"], p["b1"])),
                      p["w2"], p["b2"])
    return _layer_norm_ref(x + ffn, p["g2"], p["beta2"])


def mha_ref(query, key, value, p, n_heads):
    # nn.MultiheadAttention, batch_first=False, no masks, dropout=0.
    L, N, E = query.shape
    S_src = key.shape[0]
    d_k = E // n_heads
    w_q, w_k, w_v = p["in_w"][:E], p["in_w"][E:2 * E], p["in_w"][2 * E:]
    b_q, b_k, b_v = p["in_b"][:E], p["in_b"][E:2 * E], p["in_b"][2 * E:]
    q = (query @ w_q.T + b_q) / (d_k ** 0.5)
    k = key @ w_k.T + b_k
    v = value @ w_v.T + b_v
    q = q.reshape(L, N * n_heads, d_k).transpose(1, 0, 2)
    k = k.reshape(S_src, N * n_heads, d_k).transpose(1, 0, 2)
    v = v.reshape(S_src, N * n_heads, d_k).transpose(1, 0, 2)
    a = jax.nn.softmax(jnp.einsum("bld,bsd->bls", q, k), axis=-1)
    o = jnp.einsum("bls,bsd->bld", a, v).transpose(1, 0, 2).reshape(L, N, E)
    return o @ p["out_w"].T + p["out_b"]


def trans_decoder_ref(encoder_embs, decoder_inputs, params, n_heads):
    _, S = decoder_inputs.shape
    D = params["emb"].shape[1]
    x = params["emb"][decoder_inputs] + \
        positional_encoding(params["max_length"], D)[:S][None, :, :]
    for p in params["layers"]:
        x = magic_ref(x, p, n_heads)
    return mha_ref(x, encoder_embs, encoder_embs, params["mha"], n_heads)


# ----------------------------------------------------------------------------
# Deterministic parameter initialization + demo run.
# ----------------------------------------------------------------------------
def init_params(key, *, vocab_size, d_model, n_layers, d_ff, max_length):
    keys = iter(jax.random.split(key, 16 * n_layers + 16))

    def nrm(shape, s=0.1):
        return (s * jax.random.normal(next(keys), shape)).astype(jnp.float32)

    layers = []
    for _ in range(n_layers):
        layers.append({
            "wq": nrm((d_model, d_model)), "bq": nrm((d_model,), 0.02),
            "wk": nrm((d_model, d_model)), "bk": nrm((d_model,), 0.02),
            "wv": nrm((d_model, d_model)), "bv": nrm((d_model,), 0.02),
            "wo": nrm((d_model, d_model)), "bo": nrm((d_model,), 0.02),
            "w1": nrm((d_ff, d_model)),    "b1": nrm((d_ff,), 0.02),
            "w2": nrm((d_model, d_ff)),    "b2": nrm((d_model,), 0.02),
            "g1": 1.0 + nrm((d_model,)),   "beta1": nrm((d_model,), 0.02),
            "g2": 1.0 + nrm((d_model,)),   "beta2": nrm((d_model,), 0.02),
        })
    mha = {
        "in_w": nrm((3 * d_model, d_model)),
        "in_b": nrm((3 * d_model,), 0.02),
        "out_w": nrm((d_model, d_model)),
        "out_b": nrm((d_model,), 0.02),
    }
    return {"emb": nrm((vocab_size, d_model), 0.5),
            "layers": layers, "mha": mha, "max_length": max_length}


if __name__ == "__main__":
    # Small shapes consistent with the module: 3 Magic layers, n_heads=2 (module
    # default), d_model=32 (divisible by n_heads), d_ff=64, vocab=50, seq=8, batch=2.
    # encoder_embs follows nn.MultiheadAttention's batch_first=False convention
    # (src_len, N, d_model), where N equals the decoder tensor's dim-1 (= seq_len).
    B, S, D, H, D_FF = 2, 8, 32, 2, 64
    VOCAB, N_LAYERS, MAX_LEN, S_ENC = 50, 3, 64, 8

    key = jax.random.PRNGKey(0)
    k_tok, k_enc, k_par = jax.random.split(key, 3)
    decoder_inputs = jax.random.randint(k_tok, (B, S), 0, VOCAB)
    encoder_embs = jax.random.normal(k_enc, (S_ENC, S, D), dtype=jnp.float32)
    params = init_params(k_par, vocab_size=VOCAB, d_model=D,
                         n_layers=N_LAYERS, d_ff=D_FF, max_length=MAX_LEN)

    out = trans_decoder_pallas(encoder_embs, decoder_inputs, params, n_heads=H)
    out = jax.block_until_ready(out)

    ref = trans_decoder_ref(encoder_embs, decoder_inputs, params, H)
    assert out.shape == (B, S, D), out.shape
    # Tolerance covers the EUP approximate-reciprocal softmax denominator.
    err = float(jnp.max(jnp.abs(out - ref)))
    assert jnp.allclose(out, ref, atol=5e-3, rtol=5e-3), f"mismatch, max err {err}"

    print("KERNEL_OK")
</pallas_src>

<mosaic_0001>
module attributes {stable_mosaic.version = 11 : i64} {
  func.func @trans_decoder_kernel(%arg0: i32, %arg1: memref<8x1xi32, #tpu.memory_space<vmem>>, %arg2: memref<8x32xf32, #tpu.memory_space<vmem>>, %arg3: memref<8x8x32xf32, #tpu.memory_space<vmem>>, %arg4: memref<50x32xf32, #tpu.memory_space<vmem>>, %arg5: memref<3x32x96xf32, #tpu.memory_space<vmem>>, %arg6: memref<3x1x96xf32, #tpu.memory_space<vmem>>, %arg7: memref<3x32x32xf32, #tpu.memory_space<vmem>>, %arg8: memref<3x1x32xf32, #tpu.memory_space<vmem>>, %arg9: memref<3x32x64xf32, #tpu.memory_space<vmem>>, %arg10: memref<3x1x64xf32, #tpu.memory_space<vmem>>, %arg11: memref<3x64x32xf32, #tpu.memory_space<vmem>>, %arg12: memref<3x1x32xf32, #tpu.memory_space<vmem>>, %arg13: memref<3x1x32xf32, #tpu.memory_space<vmem>>, %arg14: memref<3x1x32xf32, #tpu.memory_space<vmem>>, %arg15: memref<3x1x32xf32, #tpu.memory_space<vmem>>, %arg16: memref<3x1x32xf32, #tpu.memory_space<vmem>>, %arg17: memref<32x32xf32, #tpu.memory_space<vmem>>, %arg18: memref<1x32xf32, #tpu.memory_space<vmem>>, %arg19: memref<32x64xf32, #tpu.memory_space<vmem>>, %arg20: memref<1x64xf32, #tpu.memory_space<vmem>>, %arg21: memref<32x32xf32, #tpu.memory_space<vmem>>, %arg22: memref<1x32xf32, #tpu.memory_space<vmem>>, %arg23: memref<1x8x32xf32, #tpu.memory_space<vmem>>) attributes {dimension_semantics = [#tpu.dimension_semantics<parallel>], iteration_bounds = array<i64: 2>, scalar_prefetch = 0 : i64, scratch_operands = 0 : i64, tpu.core_type = #tpu.core_type<tc>, window_params = [{transform_indices = @transform_0, window_bounds = array<i64: 8, 1>}, {pipeline_mode = #tpu.pipeline_mode<synchronous>, transform_indices = @transform_1, window_bounds = array<i64: 8, 32>}, {pipeline_mode = #tpu.pipeline_mode<synchronous>, transform_indices = @transform_2, window_bounds = array<i64: 8, 8, 32>}, {pipeline_mode = #tpu.pipeline_mode<synchronous>, transform_indices = @transform_3, window_bounds = array<i64: 50, 32>}, {pipeline_mode = #tpu.pipeline_mode<synchronous>, transform_indices = @transform_4, window_bounds = array<i64: 3, 32, 96>}, {pipeline_mode = #tpu.pipeline_mode<synchronous>, transform_indices = @transform_5, window_bounds = array<i64: 3, 1, 96>}, {pipeline_mode = #tpu.pipeline_mode<synchronous>, transform_indices = @transform_6, window_bounds = array<i64: 3, 32, 32>}, {pipeline_mode = #tpu.pipeline_mode<synchronous>, transform_indices = @transform_7, window_bounds = array<i64: 3, 1, 32>}, {pipeline_mode = #tpu.pipeline_mode<synchronous>, transform_indices = @transform_8, window_bounds = array<i64: 3, 32, 64>}, {pipeline_mode = #tpu.pipeline_mode<synchronous>, transform_indices = @transform_9, window_bounds = array<i64: 3, 1, 64>}, {pipeline_mode = #tpu.pipeline_mode<synchronous>, transform_indices = @transform_10, window_bounds = array<i64: 3, 64, 32>}, {pipeline_mode = #tpu.pipeline_mode<synchronous>, transform_indices = @transform_11, window_bounds = array<i64: 3, 1, 32>}, {pipeline_mode = #tpu.pipeline_mode<synchronous>, transform_indices = @transform_12, window_bounds = array<i64: 3, 1, 32>}, {pipeline_mode = #tpu.pipeline_mode<synchronous>, transform_indices = @transform_13, window_bounds = array<i64: 3, 1, 32>}, {pipeline_mode = #tpu.pipeline_mode<synchronous>, transform_indices = @transform_14, window_bounds = array<i64: 3, 1, 32>}, {pipeline_mode = #tpu.pipeline_mode<synchronous>, transform_indices = @transform_15, window_bounds = array<i64: 3, 1, 32>}, {pipeline_mode = #tpu.pipeline_mode<synchronous>, transform_indices = @transform_16, window_bounds = array<i64: 32, 32>}, {pipeline_mode = #tpu.pipeline_mode<synchronous>, transform_indices = @transform_17, window_bounds = array<i64: 1, 32>}, {pipeline_mode = #tpu.pipeline_mode<synchronous>, transform_indices = @transform_18, window_bounds = array<i64: 32, 64>}, {pipeline_mode = #tpu.pipeline_mode<synchronous>, transform_indices = @transform_19, window_bounds = array<i64: 1, 64>}, {pipeline_mode = #tpu.pipeline_mode<synchronous>, transform_indices = @transform_20, window_bounds = array<i64: 32, 32>}, {pipeline_mode = #tpu.pipeline_mode<synchronous>, transform_indices = @transform_21, window_bounds = array<i64: 1, 32>}, {transform_indices = @transform_22, window_bounds = array<i64: 1, 8, 32>}]} {
    %c0 = arith.constant 0 : index
    %c0_0 = arith.constant 0 : index
    %0 = vector.load %arg1[%c0, %c0_0] : memref<8x1xi32, #tpu.memory_space<vmem>>, vector<8x1xi32>
    %1 = tpu.iota {dimensions = array<i32: 1>} : vector<8x50xi32>
    %2 = vector.broadcast %0 : vector<8x1xi32> to vector<8x50xi32>
    %3 = arith.cmpi eq, %2, %1 : vector<8x50xi32>
    %cst = arith.constant 1.000000e+00 : f32
    %cst_1 = arith.constant 0.000000e+00 : f32
    %4 = vector.broadcast %cst : f32 to vector<8x50xf32>
    %5 = vector.broadcast %cst_1 : f32 to vector<8x50xf32>
    %6 = arith.select %3, %4, %5 : vector<8x50xi1>, vector<8x50xf32>
    %c0_2 = arith.constant 0 : index
    %c0_3 = arith.constant 0 : index
    %7 = vector.load %arg4[%c0_2, %c0_3] : memref<50x32xf32, #tpu.memory_space<vmem>>, vector<50x32xf32>
    %cst_4 = arith.constant dense<0.000000e+00> : vector<8x32xf32>
    %8 = tpu.matmul %6, %7, %cst_4 {dimension_numbers = #tpu.dot_dimension_numbers<[1], [0], [0], [1], [0, 0, 1, 1], [], []>} : vector<8x50xf32>, vector<50x32xf32>, vector<8x32xf32> -> vector<8x32xf32>
    %9 = vector.shape_cast %8 : vector<8x32xf32> to vector<1x8x32xf32>
    %c0_5 = arith.constant 0 : index
    %c0_6 = arith.constant 0 : index
    %10 = vector.load %arg2[%c0_5, %c0_6] : memref<8x32xf32, #tpu.memory_space<vmem>>, vector<8x32xf32>
    %11 = vector.shape_cast %10 : vector<8x32xf32> to vector<1x8x32xf32>
    %12 = arith.addf %9, %11 : vector<1x8x32xf32>
    %13 = vector.shape_cast %12 : vector<1x8x32xf32> to vector<8x32xf32>
    %c0_7 = arith.constant 0 : index
    %c0_8 = arith.constant 0 : index
    %c0_9 = arith.constant 0 : index
    %14 = vector.load %arg5[%c0_7, %c0_8, %c0_9] : memref<3x32x96xf32, #tpu.memory_space<vmem>>, vector<1x32x96xf32>
    %15 = vector.shape_cast %14 : vector<1x32x96xf32> to vector<32x96xf32>
    %cst_10 = arith.constant dense<0.000000e+00> : vector<8x96xf32>
    %16 = tpu.matmul %13, %15, %cst_10 {dimension_numbers = #tpu.dot_dimension_numbers<[1], [0], [0], [1], [0, 0, 1, 1], [], []>} : vector<8x32xf32>, vector<32x96xf32>, vector<8x96xf32> -> vector<8x96xf32>
    %c0_11 = arith.constant 0 : index
    %c0_12 = arith.constant 0 : index
    %c0_13 = arith.constant 0 : index
    %17 = vector.load %arg6[%c0_11, %c0_12, %c0_13] : memref<3x1x96xf32, #tpu.memory_space<vmem>>, vector<1x1x96xf32>
    %18 = vector.shape_cast %17 : vector<1x1x96xf32> to vector<1x96xf32>
    %19 = vector.broadcast %18 : vector<1x96xf32> to vector<8x96xf32>
    %20 = arith.addf %16, %19 : vector<8x96xf32>
    %21 = vector.extract_strided_slice %20 {offsets = [0, 0], sizes = [8, 32], strides = [1, 1]} : vector<8x96xf32> to vector<8x32xf32>
    %22 = vector.shape_cast %21 : vector<8x32xf32> to vector<1x8x32xf32>
    %23 = vector.extract_strided_slice %20 {offsets = [0, 32], sizes = [8, 32], strides = [1, 1]} : vector<8x96xf32> to vector<8x32xf32>
    %24 = vector.shape_cast %23 : vector<8x32xf32> to vector<1x8x32xf32>
    %25 = vector.extract_strided_slice %20 {offsets = [0, 64], sizes = [8, 32], strides = [1, 1]} : vector<8x96xf32> to vector<8x32xf32>
    %26 = vector.shape_cast %25 : vector<8x32xf32> to vector<1x8x32xf32>
    %27 = vector.extract_strided_slice %22 {offsets = [0, 0, 0], sizes = [1, 8, 16], strides = [1, 1, 1]} : vector<1x8x32xf32> to vector<1x8x16xf32>
    %28 = vector.extract_strided_slice %22 {offsets = [0, 0, 16], sizes = [1, 8, 16], strides = [1, 1, 1]} : vector<1x8x32xf32> to vector<1x8x16xf32>
    %29 = tpu.concatenate %27, %28 in 0 : vector<1x8x16xf32>, vector<1x8x16xf32> -> vector<2x8x16xf32>
    %30 = vector.extract_strided_slice %24 {offsets = [0, 0, 0], sizes = [1, 8, 16], strides = [1, 1, 1]} : vector<1x8x32xf32> to vector<1x8x16xf32>
    %31 = vector.extract_strided_slice %24 {offsets = [0, 0, 16], sizes = [1, 8, 16], strides = [1, 1, 1]} : vector<1x8x32xf32> to vector<1x8x16xf32>
    %32 = tpu.concatenate %30, %31 in 0 : vector<1x8x16xf32>, vector<1x8x16xf32> -> vector<2x8x16xf32>
    %33 = vector.extract_strided_slice %26 {offsets = [0, 0, 0], sizes = [1, 8, 16], strides = [1, 1, 1]} : vector<1x8x32xf32> to vector<1x8x16xf32>
    %34 = vector.extract_strided_slice %26 {offsets = [0, 0, 16], sizes = [1, 8, 16], strides = [1, 1, 1]} : vector<1x8x32xf32> to vector<1x8x16xf32>
    %35 = tpu.concatenate %33, %34 in 0 : vector<1x8x16xf32>, vector<1x8x16xf32> -> vector<2x8x16xf32>
    "tpu.trace_start"() <{level = 10 : i32, message = "bqd,bkd->bqk"}> : () -> ()
    %cst_14 = arith.constant dense<0.000000e+00> : vector<2x8x8xf32>
    %36 = tpu.matmul %29, %32, %cst_14 {dimension_numbers = #tpu.dot_dimension_numbers<[2], [2], [1], [1], [0, 0, 0, 1, 1, 1], [0], [0]>} : vector<2x8x16xf32>, vector<2x8x16xf32>, vector<2x8x8xf32> -> vector<2x8x8xf32>
    "tpu.trace_stop"() : () -> ()
    %cst_15 = arith.constant 2.500000e-01 : f32
    %37 = vector.broadcast %cst_15 : f32 to vector<2x8x8xf32>
    %38 = arith.mulf %36, %37 : vector<2x8x8xf32>
    %cst_16 = arith.constant dense<0xFF800000> : vector<2x8xf32>
    %39 = vector.multi_reduction <maximumf>, %38, %cst_16 [2] : vector<2x8x8xf32> to vector<2x8xf32>
    %40 = vector.shape_cast %39 : vector<2x8xf32> to vector<2x8x1xf32>
    %41 = vector.broadcast %40 : vector<2x8x1xf32> to vector<2x8x8xf32>
    %42 = arith.subf %38, %41 : vector<2x8x8xf32>
    %43 = math.exp %42 : vector<2x8x8xf32>
    %cst_17 = arith.constant dense<0.000000e+00> : vector<2x8xf32>
    %44 = vector.multi_reduction <add>, %43, %cst_17 [2] : vector<2x8x8xf32> to vector<2x8xf32>
    %45 = vector.shape_cast %44 : vector<2x8xf32> to vector<2x8x1xf32>
    %46 = tpu.reciprocal %45 {approx = true} : vector<2x8x1xf32> -> vector<2x8x1xf32>
    %47 = vector.broadcast %46 : vector<2x8x1xf32> to vector<2x8x8xf32>
    %48 = arith.mulf %43, %47 : vector<2x8x8xf32>
    "tpu.trace_start"() <{level = 10 : i32, message = "bqk,bkd->bqd"}> : () -> ()
    %cst_18 = arith.constant dense<0.000000e+00> : vector<2x8x16xf32>
    %49 = tpu.matmul %48, %35, %cst_18 {dimension_numbers = #tpu.dot_dimension_numbers<[2], [1], [1], [2], [0, 0, 0, 1, 1, 2], [0], [0]>} : vector<2x8x8xf32>, vector<2x8x16xf32>, vector<2x8x16xf32> -> vector<2x8x16xf32>
    "tpu.trace_stop"() : () -> ()
    %50 = vector.extract_strided_slice %49 {offsets = [0, 0, 0], sizes = [1, 8, 16], strides = [1, 1, 1]} : vector<2x8x16xf32> to vector<1x8x16xf32>
    %51 = vector.extract_strided_slice %49 {offsets = [1, 0, 0], sizes = [1, 8, 16], strides = [1, 1, 1]} : vector<2x8x16xf32> to vector<1x8x16xf32>
    %52 = tpu.concatenate %50, %51 in 2 : vector<1x8x16xf32>, vector<1x8x16xf32> -> vector<1x8x32xf32>
    %53 = vector.shape_cast %52 : vector<1x8x32xf32> to vector<8x32xf32>
    %c0_19 = arith.constant 0 : index
    %c0_20 = arith.constant 0 : index
    %c0_21 = arith.constant 0 : index
    %54 = vector.load %arg7[%c0_19, %c0_20, %c0_21] : memref<3x32x32xf32, #tpu.memory_space<vmem>>, vector<1x32x32xf32>
    %55 = vector.shape_cast %54 : vector<1x32x32xf32> to vector<32x32xf32>
    %cst_22 = arith.constant dense<0.000000e+00> : vector<8x32xf32>
    %56 = tpu.matmul %53, %55, %cst_22 {dimension_numbers = #tpu.dot_dimension_numbers<[1], [0], [0], [1], [0, 0, 1, 1], [], []>} : vector<8x32xf32>, vector<32x32xf32>, vector<8x32xf32> -> vector<8x32xf32>
    %c0_23 = arith.constant 0 : index
    %c0_24 = arith.constant 0 : index
    %c0_25 = arith.constant 0 : index
    %57 = vector.load %arg8[%c0_23, %c0_24, %c0_25] : memref<3x1x32xf32, #tpu.memory_space<vmem>>, vector<1x1x32xf32>
    %58 = vector.shape_cast %57 : vector<1x1x32xf32> to vector<1x32xf32>
    %59 = vector.broadcast %58 : vector<1x32xf32> to vector<8x32xf32>
    %60 = arith.addf %56, %59 : vector<8x32xf32>
    %61 = arith.addf %13, %60 : vector<8x32xf32>
    %c0_26 = arith.constant 0 : index
    %c0_27 = arith.constant 0 : index
    %c0_28 = arith.constant 0 : index
    %62 = vector.load %arg13[%c0_26, %c0_27, %c0_28] : memref<3x1x32xf32, #tpu.memory_space<vmem>>, vector<1x1x32xf32>
    %63 = vector.shape_cast %62 : vector<1x1x32xf32> to vector<1x32xf32>
    %c0_29 = arith.constant 0 : index
    %c0_30 = arith.constant 0 : index
    %c0_31 = arith.constant 0 : index
    %64 = vector.load %arg14[%c0_29, %c0_30, %c0_31] : memref<3x1x32xf32, #tpu.memory_space<vmem>>, vector<1x1x32xf32>
    %65 = vector.shape_cast %64 : vector<1x1x32xf32> to vector<1x32xf32>
    %cst_32 = arith.constant dense<0.000000e+00> : vector<8xf32>
    %66 = vector.multi_reduction <add>, %61, %cst_32 [1] : vector<8x32xf32> to vector<8xf32>
    %67 = vector.shape_cast %66 : vector<8xf32> to vector<8x1xf32>
    %cst_33 = arith.constant 3.200000e+01 : f32
    %68 = vector.broadcast %cst_33 : f32 to vector<8x1xf32>
    %69 = arith.divf %67, %68 : vector<8x1xf32>
    %70 = vector.broadcast %69 : vector<8x1xf32> to vector<8x32xf32>
    %71 = arith.subf %61, %70 : vector<8x32xf32>
    %72 = arith.mulf %71, %71 : vector<8x32xf32>
    %cst_34 = arith.constant dense<0.000000e+00> : vector<8xf32>
    %73 = vector.multi_reduction <add>, %72, %cst_34 [1] : vector<8x32xf32> to vector<8xf32>
    %74 = vector.shape_cast %73 : vector<8xf32> to vector<8x1xf32>
    %cst_35 = arith.constant 3.200000e+01 : f32
    %75 = vector.broadcast %cst_35 : f32 to vector<8x1xf32>
    %76 = arith.divf %74, %75 : vector<8x1xf32>
    %77 = vector.broadcast %69 : vector<8x1xf32> to vector<8x32xf32>
    %78 = arith.subf %61, %77 : vector<8x32xf32>
    %cst_36 = arith.constant 9.99999974E-6 : f32
    %79 = vector.broadcast %cst_36 : f32 to vector<8x1xf32>
    %80 = arith.addf %76, %79 : vector<8x1xf32>
    %81 = math.rsqrt %80 : vector<8x1xf32>
    %82 = vector.broadcast %81 : vector<8x1xf32> to vector<8x32xf32>
    %83 = arith.mulf %78, %82 : vector<8x32xf32>
    %84 = vector.broadcast %63 : vector<1x32xf32> to vector<8x32xf32>
    %85 = arith.mulf %83, %84 : vector<8x32xf32>
    %86 = vector.broadcast %65 : vector<1x32xf32> to vector<8x32xf32>
    %87 = arith.addf %85, %86 : vector<8x32xf32>
    %c0_37 = arith.constant 0 : index
    %c0_38 = arith.constant 0 : index
    %c0_39 = arith.constant 0 : index
    %88 = vector.load %arg9[%c0_37, %c0_38, %c0_39] : memref<3x32x64xf32, #tpu.memory_space<vmem>>, vector<1x32x64xf32>
    %89 = vector.shape_cast %88 : vector<1x32x64xf32> to vector<32x64xf32>
    %cst_40 = arith.constant dense<0.000000e+00> : vector<8x64xf32>
    %90 = tpu.matmul %87, %89, %cst_40 {dimension_numbers = #tpu.dot_dimension_numbers<[1], [0], [0], [1], [0, 0, 1, 1], [], []>} : vector<8x32xf32>, vector<32x64xf32>, vector<8x64xf32> -> vector<8x64xf32>
    %c0_41 = arith.constant 0 : index
    %c0_42 = arith.constant 0 : index
    %c0_43 = arith.constant 0 : index
    %91 = vector.load %arg10[%c0_41, %c0_42, %c0_43] : memref<3x1x64xf32, #tpu.memory_space<vmem>>, vector<1x1x64xf32>
    %92 = vector.shape_cast %91 : vector<1x1x64xf32> to vector<1x64xf32>
    %93 = vector.broadcast %92 : vector<1x64xf32> to vector<8x64xf32>
    %94 = arith.addf %90, %93 : vector<8x64xf32>
    %cst_44 = arith.constant 0.000000e+00 : f32
    %95 = vector.broadcast %cst_44 : f32 to vector<8x64xf32>
    %96 = arith.maximumf %94, %95 : vector<8x64xf32>
    %c0_45 = arith.constant 0 : index
    %c0_46 = arith.constant 0 : index
    %c0_47 = arith.constant 0 : index
    %97 = vector.load %arg11[%c0_45, %c0_46, %c0_47] : memref<3x64x32xf32, #tpu.memory_space<vmem>>, vector<1x64x32xf32>
    %98 = vector.shape_cast %97 : vector<1x64x32xf32> to vector<64x32xf32>
    %cst_48 = arith.constant dense<0.000000e+00> : vector<8x32xf32>
    %99 = tpu.matmul %96, %98, %cst_48 {dimension_numbers = #tpu.dot_dimension_numbers<[1], [0], [0], [1], [0, 0, 1, 1], [], []>} : vector<8x64xf32>, vector<64x32xf32>, vector<8x32xf32> -> vector<8x32xf32>
    %c0_49 = arith.constant 0 : index
    %c0_50 = arith.constant 0 : index
    %c0_51 = arith.constant 0 : index
    %100 = vector.load %arg12[%c0_49, %c0_50, %c0_51] : memref<3x1x32xf32, #tpu.memory_space<vmem>>, vector<1x1x32xf32>
    %101 = vector.shape_cast %100 : vector<1x1x32xf32> to vector<1x32xf32>
    %102 = vector.broadcast %101 : vector<1x32xf32> to vector<8x32xf32>
    %103 = arith.addf %99, %102 : vector<8x32xf32>
    %104 = arith.addf %87, %103 : vector<8x32xf32>
    %c0_52 = arith.constant 0 : index
    %c0_53 = arith.constant 0 : index
    %c0_54 = arith.constant 0 : index
    %105 = vector.load %arg15[%c0_52, %c0_53, %c0_54] : memref<3x1x32xf32, #tpu.memory_space<vmem>>, vector<1x1x32xf32>
    %106 = vector.shape_cast %105 : vector<1x1x32xf32> to vector<1x32xf32>
    %c0_55 = arith.constant 0 : index
    %c0_56 = arith.constant 0 : index
    %c0_57 = arith.constant 0 : index
    %107 = vector.load %arg16[%c0_55, %c0_56, %c0_57] : memref<3x1x32xf32, #tpu.memory_space<vmem>>, vector<1x1x32xf32>
    %108 = vector.shape_cast %107 : vector<1x1x32xf32> to vector<1x32xf32>
    %cst_58 = arith.constant dense<0.000000e+00> : vector<8xf32>
    %109 = vector.multi_reduction <add>, %104, %cst_58 [1] : vector<8x32xf32> to vector<8xf32>
    %110 = vector.shape_cast %109 : vector<8xf32> to vector<8x1xf32>
    %cst_59 = arith.constant 3.200000e+01 : f32
    %111 = vector.broadcast %cst_59 : f32 to vector<8x1xf32>
    %112 = arith.divf %110, %111 : vector<8x1xf32>
    %113 = vector.broadcast %112 : vector<8x1xf32> to vector<8x32xf32>
    %114 = arith.subf %104, %113 : vector<8x32xf32>
    %115 = arith.mulf %114, %114 : vector<8x32xf32>
    %cst_60 = arith.constant dense<0.000000e+00> : vector<8xf32>
    %116 = vector.multi_reduction <add>, %115, %cst_60 [1] : vector<8x32xf32> to vector<8xf32>
    %117 = vector.shape_cast %116 : vector<8xf32> to vector<8x1xf32>
    %cst_61 = arith.constant 3.200000e+01 : f32
    %118 = vector.broadcast %cst_61 : f32 to vector<8x1xf32>
    %119 = arith.divf %117, %118 : vector<8x1xf32>
    %120 = vector.broadcast %112 : vector<8x1xf32> to vector<8x32xf32>
    %121 = arith.subf %104, %120 : vector<8x32xf32>
    %cst_62 = arith.constant 9.99999974E-6 : f32
    %122 = vector.broadcast %cst_62 : f32 to vector<8x1xf32>
    %123 = arith.addf %119, %122 : vector<8x1xf32>
    %124 = math.rsqrt %123 : vector<8x1xf32>
    %125 = vector.broadcast %124 : vector<8x1xf32> to vector<8x32xf32>
    %126 = arith.mulf %121, %125 : vector<8x32xf32>
    %127 = vector.broadcast %106 : vector<1x32xf32> to vector<8x32xf32>
    %128 = arith.mulf %126, %127 : vector<8x32xf32>
    %129 = vector.broadcast %108 : vector<1x32xf32> to vector<8x32xf32>
    %130 = arith.addf %128, %129 : vector<8x32xf32>
    %c1 = arith.constant 1 : index
    %c0_63 = arith.constant 0 : index
    %c0_64 = arith.constant 0 : index
    %131 = vector.load %arg5[%c1, %c0_63, %c0_64] : memref<3x32x96xf32, #tpu.memory_space<vmem>>, vector<1x32x96xf32>
    %132 = vector.shape_cast %131 : vector<1x32x96xf32> to vector<32x96xf32>
    %cst_65 = arith.constant dense<0.000000e+00> : vector<8x96xf32>
    %133 = tpu.matmul %130, %132, %cst_65 {dimension_numbers = #tpu.dot_dimension_numbers<[1], [0], [0], [1], [0, 0, 1, 1], [], []>} : vector<8x32xf32>, vector<32x96xf32>, vector<8x96xf32> -> vector<8x96xf32>
    %c1_66 = arith.constant 1 : index
    %c0_67 = arith.constant 0 : index
    %c0_68 = arith.constant 0 : index
    %134 = vector.load %arg6[%c1_66, %c0_67, %c0_68] : memref<3x1x96xf32, #tpu.memory_space<vmem>>, vector<1x1x96xf32>
    %135 = vector.shape_cast %134 : vector<1x1x96xf32> to vector<1x96xf32>
    %136 = vector.broadcast %135 : vector<1x96xf32> to vector<8x96xf32>
    %137 = arith.addf %133, %136 : vector<8x96xf32>
    %138 = vector.extract_strided_slice %137 {offsets = [0, 0], sizes = [8, 32], strides = [1, 1]} : vector<8x96xf32> to vector<8x32xf32>
    %139 = vector.shape_cast %138 : vector<8x32xf32> to vector<1x8x32xf32>
    %140 = vector.extract_strided_slice %137 {offsets = [0, 32], sizes = [8, 32], strides = [1, 1]} : vector<8x96xf32> to vector<8x32xf32>
    %141 = vector.shape_cast %140 : vector<8x32xf32> to vector<1x8x32xf32>
    %142 = vector.extract_strided_slice %137 {offsets = [0, 64], sizes = [8, 32], strides = [1, 1]} : vector<8x96xf32> to vector<8x32xf32>
    %143 = vector.shape_cast %142 : vector<8x32xf32> to vector<1x8x32xf32>
    %144 = vector.extract_strided_slice %139 {offsets = [0, 0, 0], sizes = [1, 8, 16], strides = [1, 1, 1]} : vector<1x8x32xf32> to vector<1x8x16xf32>
    %145 = vector.extract_strided_slice %139 {offsets = [0, 0, 16], sizes = [1, 8, 16], strides = [1, 1, 1]} : vector<1x8x32xf32> to vector<1x8x16xf32>
    %146 = tpu.concatenate %144, %145 in 0 : vector<1x8x16xf32>, vector<1x8x16xf32> -> vector<2x8x16xf32>
    %147 = vector.extract_strided_slice %141 {offsets = [0, 0, 0], sizes = [1, 8, 16], strides = [1, 1, 1]} : vector<1x8x32xf32> to vector<1x8x16xf32>
    %148 = vector.extract_strided_slice %141 {offsets = [0, 0, 16], sizes = [1, 8, 16], strides = [1, 1, 1]} : vector<1x8x32xf32> to vector<1x8x16xf32>
    %149 = tpu.concatenate %147, %148 in 0 : vector<1x8x16xf32>, vector<1x8x16xf32> -> vector<2x8x16xf32>
    %150 = vector.extract_strided_slice %143 {offsets = [0, 0, 0], sizes = [1, 8, 16], strides = [1, 1, 1]} : vector<1x8x32xf32> to vector<1x8x16xf32>
    %151 = vector.extract_strided_slice %143 {offsets = [0, 0, 16], sizes = [1, 8, 16], strides = [1, 1, 1]} : vector<1x8x32xf32> to vector<1x8x16xf32>
    %152 = tpu.concatenate %150, %151 in 0 : vector<1x8x16xf32>, vector<1x8x16xf32> -> vector<2x8x16xf32>
    "tpu.trace_start"() <{level = 10 : i32, message = "bqd,bkd->bqk"}> : () -> ()
    %cst_69 = arith.constant dense<0.000000e+00> : vector<2x8x8xf32>
    %153 = tpu.matmul %146, %149, %cst_69 {dimension_numbers = #tpu.dot_dimension_numbers<[2], [2], [1], [1], [0, 0, 0, 1, 1, 1], [0], [0]>} : vector<2x8x16xf32>, vector<2x8x16xf32>, vector<2x8x8xf32> -> vector<2x8x8xf32>
    "tpu.trace_stop"() : () -> ()
    %cst_70 = arith.constant 2.500000e-01 : f32
    %154 = vector.broadcast %cst_70 : f32 to vector<2x8x8xf32>
    %155 = arith.mulf %153, %154 : vector<2x8x8xf32>
    %cst_71 = arith.constant dense<0xFF800000> : vector<2x8xf32>
    %156 = vector.multi_reduction <maximumf>, %155, %cst_71 [2] : vector<2x8x8xf32> to vector<2x8xf32>
    %157 = vector.shape_cast %156 : vector<2x8xf32> to vector<2x8x1xf32>
    %158 = vector.broadcast %157 : vector<2x8x1xf32> to vector<2x8x8xf32>
    %159 = arith.subf %155, %158 : vector<2x8x8xf32>
    %160 = math.exp %159 : vector<2x8x8xf32>
    %cst_72 = arith.constant dense<0.000000e+00> : vector<2x8xf32>
    %161 = vector.multi_reduction <add>, %160, %cst_72 [2] : vector<2x8x8xf32> to vector<2x8xf32>
    %162 = vector.shape_cast %161 : vector<2x8xf32> to vector<2x8x1xf32>
    %163 = tpu.reciprocal %162 {approx = true} : vector<2x8x1xf32> -> vector<2x8x1xf32>
    %164 = vector.broadcast %163 : vector<2x8x1xf32> to vector<2x8x8xf32>
    %165 = arith.mulf %160, %164 : vector<2x8x8xf32>
    "tpu.trace_start"() <{level = 10 : i32, message = "bqk,bkd->bqd"}> : () -> ()
    %cst_73 = arith.constant dense<0.000000e+00> : vector<2x8x16xf32>
    %166 = tpu.matmul %165, %152, %cst_73 {dimension_numbers = #tpu.dot_dimension_numbers<[2], [1], [1], [2], [0, 0, 0, 1, 1, 2], [0], [0]>} : vector<2x8x8xf32>, vector<2x8x16xf32>, vector<2x8x16xf32> -> vector<2x8x16xf32>
    "tpu.trace_stop"() : () -> ()
    %167 = vector.extract_strided_slice %166 {offsets = [0, 0, 0], sizes = [1, 8, 16], strides = [1, 1, 1]} : vector<2x8x16xf32> to vector<1x8x16xf32>
    %168 = vector.extract_strided_slice %166 {offsets = [1, 0, 0], sizes = [1, 8, 16], strides = [1, 1, 1]} : vector<2x8x16xf32> to vector<1x8x16xf32>
    %169 = tpu.concatenate %167, %168 in 2 : vector<1x8x16xf32>, vector<1x8x16xf32> -> vector<1x8x32xf32>
    %170 = vector.shape_cast %169 : vector<1x8x32xf32> to vector<8x32xf32>
    %c1_74 = arith.constant 1 : index
    %c0_75 = arith.constant 0 : index
    %c0_76 = arith.constant 0 : index
    %171 = vector.load %arg7[%c1_74, %c0_75, %c0_76] : memref<3x32x32xf32, #tpu.memory_space<vmem>>, vector<1x32x32xf32>
    %172 = vector.shape_cast %171 : vector<1x32x32xf32> to vector<32x32xf32>
    %cst_77 = arith.constant dense<0.000000e+00> : vector<8x32xf32>
    %173 = tpu.matmul %170, %172, %cst_77 {dimension_numbers = #tpu.dot_dimension_numbers<[1], [0], [0], [1], [0, 0, 1, 1], [], []>} : vector<8x32xf32>, vector<32x32xf32>, vector<8x32xf32> -> vector<8x32xf32>
    %c1_78 = arith.constant 1 : index
    %c0_79 = arith.constant 0 : index
    %c0_80 = arith.constant 0 : index
    %174 = vector.load %arg8[%c1_78, %c0_79, %c0_80] : memref<3x1x32xf32, #tpu.memory_space<vmem>>, vector<1x1x32xf32>
    %175 = vector.shape_cast %174 : vector<1x1x32xf32> to vector<1x32xf32>
    %176 = vector.broadcast %175 : vector<1x32xf32> to vector<8x32xf32>
    %177 = arith.addf %173, %176 : vector<8x32xf32>
    %178 = arith.addf %130, %177 : vector<8x32xf32>
    %c1_81 = arith.constant 1 : index
    %c0_82 = arith.constant 0 : index
    %c0_83 = arith.constant 0 : index
    %179 = vector.load %arg13[%c1_81, %c0_82, %c0_83] : memref<3x1x32xf32, #tpu.memory_space<vmem>>, vector<1x1x32xf32>
    %180 = vector.shape_cast %179 : vector<1x1x32xf32> to vector<1x32xf32>
    %c1_84 = arith.constant 1 : index
    %c0_85 = arith.constant 0 : index
    %c0_86 = arith.constant 0 : index
    %181 = vector.load %arg14[%c1_84, %c0_85, %c0_86] : memref<3x1x32xf32, #tpu.memory_space<vmem>>, vector<1x1x32xf32>
    %182 = vector.shape_cast %181 : vector<1x1x32xf32> to vector<1x32xf32>
    %cst_87 = arith.constant dense<0.000000e+00> : vector<8xf32>
    %183 = vector.multi_reduction <add>, %178, %cst_87 [1] : vector<8x32xf32> to vector<8xf32>
    %184 = vector.shape_cast %183 : vector<8xf32> to vector<8x1xf32>
    %cst_88 = arith.constant 3.200000e+01 : f32
    %185 = vector.broadcast %cst_88 : f32 to vector<8x1xf32>
    %186 = arith.divf %184, %185 : vector<8x1xf32>
    %187 = vector.broadcast %186 : vector<8x1xf32> to vector<8x32xf32>
    %188 = arith.subf %178, %187 : vector<8x32xf32>
    %189 = arith.mulf %188, %188 : vector<8x32xf32>
    %cst_89 = arith.constant dense<0.000000e+00> : vector<8xf32>
    %190 = vector.multi_reduction <add>, %189, %cst_89 [1] : vector<8x32xf32> to vector<8xf32>
    %191 = vector.shape_cast %190 : vector<8xf32> to vector<8x1xf32>
    %cst_90 = arith.constant 3.200000e+01 : f32
    %192 = vector.broadcast %cst_90 : f32 to vector<8x1xf32>
    %193 = arith.divf %191, %192 : vector<8x1xf32>
    %194 = vector.broadcast %186 : vector<8x1xf32> to vector<8x32xf32>
    %195 = arith.subf %178, %194 : vector<8x32xf32>
    %cst_91 = arith.constant 9.99999974E-6 : f32
    %196 = vector.broadcast %cst_91 : f32 to vector<8x1xf32>
    %197 = arith.addf %193, %196 : vector<8x1xf32>
    %198 = math.rsqrt %197 : vector<8x1xf32>
    %199 = vector.broadcast %198 : vector<8x1xf32> to vector<8x32xf32>
    %200 = arith.mulf %195, %199 : vector<8x32xf32>
    %201 = vector.broadcast %180 : vector<1x32xf32> to vector<8x32xf32>
    %202 = arith.mulf %200, %201 : vector<8x32xf32>
    %203 = vector.broadcast %182 : vector<1x32xf32> to vector<8x32xf32>
    %204 = arith.addf %202, %203 : vector<8x32xf32>
    %c1_92 = arith.constant 1 : index
    %c0_93 = arith.constant 0 : index
    %c0_94 = arith.constant 0 : index
    %205 = vector.load %arg9[%c1_92, %c0_93, %c0_94] : memref<3x32x64xf32, #tpu.memory_space<vmem>>, vector<1x32x64xf32>
    %206 = vector.shape_cast %205 : vector<1x32x64xf32> to vector<32x64xf32>
    %cst_95 = arith.constant dense<0.000000e+00> : vector<8x64xf32>
    %207 = tpu.matmul %204, %206, %cst_95 {dimension_numbers = #tpu.dot_dimension_numbers<[1], [0], [0], [1], [0, 0, 1, 1], [], []>} : vector<8x32xf32>, vector<32x64xf32>, vector<8x64xf32> -> vector<8x64xf32>
    %c1_96 = arith.constant 1 : index
    %c0_97 = arith.constant 0 : index
    %c0_98 = arith.constant 0 : index
    %208 = vector.load %arg10[%c1_96, %c0_97, %c0_98] : memref<3x1x64xf32, #tpu.memory_space<vmem>>, vector<1x1x64xf32>
    %209 = vector.shape_cast %208 : vector<1x1x64xf32> to vector<1x64xf32>
    %210 = vector.broadcast %209 : vector<1x64xf32> to vector<8x64xf32>
    %211 = arith.addf %207, %210 : vector<8x64xf32>
    %cst_99 = arith.constant 0.000000e+00 : f32
    %212 = vector.broadcast %cst_99 : f32 to vector<8x64xf32>
    %213 = arith.maximumf %211, %212 : vector<8x64xf32>
    %c1_100 = arith.constant 1 : index
    %c0_101 = arith.constant 0 : index
    %c0_102 = arith.constant 0 : index
    %214 = vector.load %arg11[%c1_100, %c0_101, %c0_102] : memref<3x64x32xf32, #tpu.memory_space<vmem>>, vector<1x64x32xf32>
    %215 = vector.shape_cast %214 : vector<1x64x32xf32> to vector<64x32xf32>
    %cst_103 = arith.constant dense<0.000000e+00> : vector<8x32xf32>
    %216 = tpu.matmul %213, %215, %cst_103 {dimension_numbers = #tpu.dot_dimension_numbers<[1], [0], [0], [1], [0, 0, 1, 1], [], []>} : vector<8x64xf32>, vector<64x32xf32>, vector<8x32xf32> -> vector<8x32xf32>
    %c1_104 = arith.constant 1 : index
    %c0_105 = arith.constant 0 : index
    %c0_106 = arith.constant 0 : index
    %217 = vector.load %arg12[%c1_104, %c0_105, %c0_106] : memref<3x1x32xf32, #tpu.memory_space<vmem>>, vector<1x1x32xf32>
    %218 = vector.shape_cast %217 : vector<1x1x32xf32> to vector<1x32xf32>
    %219 = vector.broadcast %218 : vector<1x32xf32> to vector<8x32xf32>
    %220 = arith.addf %216, %219 : vector<8x32xf32>
    %221 = arith.addf %204, %220 : vector<8x32xf32>
    %c1_107 = arith.constant 1 : index
    %c0_108 = arith.constant 0 : index
    %c0_109 = arith.constant 0 : index
    %222 = vector.load %arg15[%c1_107, %c0_108, %c0_109] : memref<3x1x32xf32, #tpu.memory_space<vmem>>, vector<1x1x32xf32>
    %223 = vector.shape_cast %222 : vector<1x1x32xf32> to vector<1x32xf32>
    %c1_110 = arith.constant 1 : index
    %c0_111 = arith.constant 0 : index
    %c0_112 = arith.constant 0 : index
    %224 = vector.load %arg16[%c1_110, %c0_111, %c0_112] : memref<3x1x32xf32, #tpu.memory_space<vmem>>, vector<1x1x32xf32>
    %225 = vector.shape_cast %224 : vector<1x1x32xf32> to vector<1x32xf32>
    %cst_113 = arith.constant dense<0.000000e+00> : vector<8xf32>
    %226 = vector.multi_reduction <add>, %221, %cst_113 [1] : vector<8x32xf32> to vector<8xf32>
    %227 = vector.shape_cast %226 : vector<8xf32> to vector<8x1xf32>
    %cst_114 = arith.constant 3.200000e+01 : f32
    %228 = vector.broadcast %cst_114 : f32 to vector<8x1xf32>
    %229 = arith.divf %227, %228 : vector<8x1xf32>
    %230 = vector.broadcast %229 : vector<8x1xf32> to vector<8x32xf32>
    %231 = arith.subf %221, %230 : vector<8x32xf32>
    %232 = arith.mulf %231, %231 : vector<8x32xf32>
    %cst_115 = arith.constant dense<0.000000e+00> : vector<8xf32>
    %233 = vector.multi_reduction <add>, %232, %cst_115 [1] : vector<8x32xf32> to vector<8xf32>
    %234 = vector.shape_cast %233 : vector<8xf32> to vector<8x1xf32>
    %cst_116 = arith.constant 3.200000e+01 : f32
    %235 = vector.broadcast %cst_116 : f32 to vector<8x1xf32>
    %236 = arith.divf %234, %235 : vector<8x1xf32>
    %237 = vector.broadcast %229 : vector<8x1xf32> to vector<8x32xf32>
    %238 = arith.subf %221, %237 : vector<8x32xf32>
    %cst_117 = arith.constant 9.99999974E-6 : f32
    %239 = vector.broadcast %cst_117 : f32 to vector<8x1xf32>
    %240 = arith.addf %236, %239 : vector<8x1xf32>
    %241 = math.rsqrt %240 : vector<8x1xf32>
    %242 = vector.broadcast %241 : vector<8x1xf32> to vector<8x32xf32>
    %243 = arith.mulf %238, %242 : vector<8x32xf32>
    %244 = vector.broadcast %223 : vector<1x32xf32> to vector<8x32xf32>
    %245 = arith.mulf %243, %244 : vector<8x32xf32>
    %246 = vector.broadcast %225 : vector<1x32xf32> to vector<8x32xf32>
    %247 = arith.addf %245, %246 : vector<8x32xf32>
    %c2 = arith.constant 2 : index
    %c0_118 = arith.constant 0 : index
    %c0_119 = arith.constant 0 : index
    %248 = vector.load %arg5[%c2, %c0_118, %c0_119] : memref<3x32x96xf32, #tpu.memory_space<vmem>>, vector<1x32x96xf32>
    %249 = vector.shape_cast %248 : vector<1x32x96xf32> to vector<32x96xf32>
    %cst_120 = arith.constant dense<0.000000e+00> : vector<8x96xf32>
    %250 = tpu.matmul %247, %249, %cst_120 {dimension_numbers = #tpu.dot_dimension_numbers<[1], [0], [0], [1], [0, 0, 1, 1], [], []>} : vector<8x32xf32>, vector<32x96xf32>, vector<8x96xf32> -> vector<8x96xf32>
    %c2_121 = arith.constant 2 : index
    %c0_122 = arith.constant 0 : index
    %c0_123 = arith.constant 0 : index
    %251 = vector.load %arg6[%c2_121, %c0_122, %c0_123] : memref<3x1x96xf32, #tpu.memory_space<vmem>>, vector<1x1x96xf32>
    %252 = vector.shape_cast %251 : vector<1x1x96xf32> to vector<1x96xf32>
    %253 = vector.broadcast %252 : vector<1x96xf32> to vector<8x96xf32>
    %254 = arith.addf %250, %253 : vector<8x96xf32>
    %255 = vector.extract_strided_slice %254 {offsets = [0, 0], sizes = [8, 32], strides = [1, 1]} : vector<8x96xf32> to vector<8x32xf32>
    %256 = vector.shape_cast %255 : vector<8x32xf32> to vector<1x8x32xf32>
    %257 = vector.extract_strided_slice %254 {offsets = [0, 32], sizes = [8, 32], strides = [1, 1]} : vector<8x96xf32> to vector<8x32xf32>
    %258 = vector.shape_cast %257 : vector<8x32xf32> to vector<1x8x32xf32>
    %259 = vector.extract_strided_slice %254 {offsets = [0, 64], sizes = [8, 32], strides = [1, 1]} : vector<8x96xf32> to vector<8x32xf32>
    %260 = vector.shape_cast %259 : vector<8x32xf32> to vector<1x8x32xf32>
    %261 = vector.extract_strided_slice %256 {offsets = [0, 0, 0], sizes = [1, 8, 16], strides = [1, 1, 1]} : vector<1x8x32xf32> to vector<1x8x16xf32>
    %262 = vector.extract_strided_slice %256 {offsets = [0, 0, 16], sizes = [1, 8, 16], strides = [1, 1, 1]} : vector<1x8x32xf32> to vector<1x8x16xf32>
    %263 = tpu.concatenate %261, %262 in 0 : vector<1x8x16xf32>, vector<1x8x16xf32> -> vector<2x8x16xf32>
    %264 = vector.extract_strided_slice %258 {offsets = [0, 0, 0], sizes = [1, 8, 16], strides = [1, 1, 1]} : vector<1x8x32xf32> to vector<1x8x16xf32>
    %265 = vector.extract_strided_slice %258 {offsets = [0, 0, 16], sizes = [1, 8, 16], strides = [1, 1, 1]} : vector<1x8x32xf32> to vector<1x8x16xf32>
    %266 = tpu.concatenate %264, %265 in 0 : vector<1x8x16xf32>, vector<1x8x16xf32> -> vector<2x8x16xf32>
    %267 = vector.extract_strided_slice %260 {offsets = [0, 0, 0], sizes = [1, 8, 16], strides = [1, 1, 1]} : vector<1x8x32xf32> to vector<1x8x16xf32>
    %268 = vector.extract_strided_slice %260 {offsets = [0, 0, 16], sizes = [1, 8, 16], strides = [1, 1, 1]} : vector<1x8x32xf32> to vector<1x8x16xf32>
    %269 = tpu.concatenate %267, %268 in 0 : vector<1x8x16xf32>, vector<1x8x16xf32> -> vector<2x8x16xf32>
    "tpu.trace_start"() <{level = 10 : i32, message = "bqd,bkd->bqk"}> : () -> ()
    %cst_124 = arith.constant dense<0.000000e+00> : vector<2x8x8xf32>
    %270 = tpu.matmul %263, %266, %cst_124 {dimension_numbers = #tpu.dot_dimension_numbers<[2], [2], [1], [1], [0, 0, 0, 1, 1, 1], [0], [0]>} : vector<2x8x16xf32>, vector<2x8x16xf32>, vector<2x8x8xf32> -> vector<2x8x8xf32>
    "tpu.trace_stop"() : () -> ()
    %cst_125 = arith.constant 2.500000e-01 : f32
    %271 = vector.broadcast %cst_125 : f32 to vector<2x8x8xf32>
    %272 = arith.mulf %270, %271 : vector<2x8x8xf32>
    %cst_126 = arith.constant dense<0xFF800000> : vector<2x8xf32>
    %273 = vector.multi_reduction <maximumf>, %272, %cst_126 [2] : vector<2x8x8xf32> to vector<2x8xf32>
    %274 = vector.shape_cast %273 : vector<2x8xf32> to vector<2x8x1xf32>
    %275 = vector.broadcast %274 : vector<2x8x1xf32> to vector<2x8x8xf32>
    %276 = arith.subf %272, %275 : vector<2x8x8xf32>
    %277 = math.exp %276 : vector<2x8x8xf32>
    %cst_127 = arith.constant dense<0.000000e+00> : vector<2x8xf32>
    %278 = vector.multi_reduction <add>, %277, %cst_127 [2] : vector<2x8x8xf32> to vector<2x8xf32>
    %279 = vector.shape_cast %278 : vector<2x8xf32> to vector<2x8x1xf32>
    %280 = tpu.reciprocal %279 {approx = true} : vector<2x8x1xf32> -> vector<2x8x1xf32>
    %281 = vector.broadcast %280 : vector<2x8x1xf32> to vector<2x8x8xf32>
    %282 = arith.mulf %277, %281 : vector<2x8x8xf32>
    "tpu.trace_start"() <{level = 10 : i32, message = "bqk,bkd->bqd"}> : () -> ()
    %cst_128 = arith.constant dense<0.000000e+00> : vector<2x8x16xf32>
    %283 = tpu.matmul %282, %269, %cst_128 {dimension_numbers = #tpu.dot_dimension_numbers<[2], [1], [1], [2], [0, 0, 0, 1, 1, 2], [0], [0]>} : vector<2x8x8xf32>, vector<2x8x16xf32>, vector<2x8x16xf32> -> vector<2x8x16xf32>
    "tpu.trace_stop"() : () -> ()
    %284 = vector.extract_strided_slice %283 {offsets = [0, 0, 0], sizes = [1, 8, 16], strides = [1, 1, 1]} : vector<2x8x16xf32> to vector<1x8x16xf32>
    %285 = vector.extract_strided_slice %283 {offsets = [1, 0, 0], sizes = [1, 8, 16], strides = [1, 1, 1]} : vector<2x8x16xf32> to vector<1x8x16xf32>
    %286 = tpu.concatenate %284, %285 in 2 : vector<1x8x16xf32>, vector<1x8x16xf32> -> vector<1x8x32xf32>
    %287 = vector.shape_cast %286 : vector<1x8x32xf32> to vector<8x32xf32>
    %c2_129 = arith.constant 2 : index
    %c0_130 = arith.constant 0 : index
    %c0_131 = arith.constant 0 : index
    %288 = vector.load %arg7[%c2_129, %c0_130, %c0_131] : memref<3x32x32xf32, #tpu.memory_space<vmem>>, vector<1x32x32xf32>
    %289 = vector.shape_cast %288 : vector<1x32x32xf32> to vector<32x32xf32>
    %cst_132 = arith.constant dense<0.000000e+00> : vector<8x32xf32>
    %290 = tpu.matmul %287, %289, %cst_132 {dimension_numbers = #tpu.dot_dimension_numbers<[1], [0], [0], [1], [0, 0, 1, 1], [], []>} : vector<8x32xf32>, vector<32x32xf32>, vector<8x32xf32> -> vector<8x32xf32>
    %c2_133 = arith.constant 2 : index
    %c0_134 = arith.constant 0 : index
    %c0_135 = arith.constant 0 : index
    %291 = vector.load %arg8[%c2_133, %c0_134, %c0_135] : memref<3x1x32xf32, #tpu.memory_space<vmem>>, vector<1x1x32xf32>
    %292 = vector.shape_cast %291 : vector<1x1x32xf32> to vector<1x32xf32>
    %293 = vector.broadcast %292 : vector<1x32xf32> to vector<8x32xf32>
    %294 = arith.addf %290, %293 : vector<8x32xf32>
    %295 = arith.addf %247, %294 : vector<8x32xf32>
    %c2_136 = arith.constant 2 : index
    %c0_137 = arith.constant 0 : index
    %c0_138 = arith.constant 0 : index
    %296 = vector.load %arg13[%c2_136, %c0_137, %c0_138] : memref<3x1x32xf32, #tpu.memory_space<vmem>>, vector<1x1x32xf32>
    %297 = vector.shape_cast %296 : vector<1x1x32xf32> to vector<1x32xf32>
    %c2_139 = arith.constant 2 : index
    %c0_140 = arith.constant 0 : index
    %c0_141 = arith.constant 0 : index
    %298 = vector.load %arg14[%c2_139, %c0_140, %c0_141] : memref<3x1x32xf32, #tpu.memory_space<vmem>>, vector<1x1x32xf32>
    %299 = vector.shape_cast %298 : vector<1x1x32xf32> to vector<1x32xf32>
    %cst_142 = arith.constant dense<0.000000e+00> : vector<8xf32>
    %300 = vector.multi_reduction <add>, %295, %cst_142 [1] : vector<8x32xf32> to vector<8xf32>
    %301 = vector.shape_cast %300 : vector<8xf32> to vector<8x1xf32>
    %cst_143 = arith.constant 3.200000e+01 : f32
    %302 = vector.broadcast %cst_143 : f32 to vector<8x1xf32>
    %303 = arith.divf %301, %302 : vector<8x1xf32>
    %304 = vector.broadcast %303 : vector<8x1xf32> to vector<8x32xf32>
    %305 = arith.subf %295, %304 : vector<8x32xf32>
    %306 = arith.mulf %305, %305 : vector<8x32xf32>
    %cst_144 = arith.constant dense<0.000000e+00> : vector<8xf32>
    %307 = vector.multi_reduction <add>, %306, %cst_144 [1] : vector<8x32xf32> to vector<8xf32>
    %308 = vector.shape_cast %307 : vector<8xf32> to vector<8x1xf32>
    %cst_145 = arith.constant 3.200000e+01 : f32
    %309 = vector.broadcast %cst_145 : f32 to vector<8x1xf32>
    %310 = arith.divf %308, %309 : vector<8x1xf32>
    %311 = vector.broadcast %303 : vector<8x1xf32> to vector<8x32xf32>
    %312 = arith.subf %295, %311 : vector<8x32xf32>
    %cst_146 = arith.constant 9.99999974E-6 : f32
    %313 = vector.broadcast %cst_146 : f32 to vector<8x1xf32>
    %314 = arith.addf %310, %313 : vector<8x1xf32>
    %315 = math.rsqrt %314 : vector<8x1xf32>
    %316 = vector.broadcast %315 : vector<8x1xf32> to vector<8x32xf32>
    %317 = arith.mulf %312, %316 : vector<8x32xf32>
    %318 = vector.broadcast %297 : vector<1x32xf32> to vector<8x32xf32>
    %319 = arith.mulf %317, %318 : vector<8x32xf32>
    %320 = vector.broadcast %299 : vector<1x32xf32> to vector<8x32xf32>
    %321 = arith.addf %319, %320 : vector<8x32xf32>
    %c2_147 = arith.constant 2 : index
    %c0_148 = arith.constant 0 : index
    %c0_149 = arith.constant 0 : index
    %322 = vector.load %arg9[%c2_147, %c0_148, %c0_149] : memref<3x32x64xf32, #tpu.memory_space<vmem>>, vector<1x32x64xf32>
    %323 = vector.shape_cast %322 : vector<1x32x64xf32> to vector<32x64xf32>
    %cst_150 = arith.constant dense<0.000000e+00> : vector<8x64xf32>
    %324 = tpu.matmul %321, %323, %cst_150 {dimension_numbers = #tpu.dot_dimension_numbers<[1], [0], [0], [1], [0, 0, 1, 1], [], []>} : vector<8x32xf32>, vector<32x64xf32>, vector<8x64xf32> -> vector<8x64xf32>
    %c2_151 = arith.constant 2 : index
    %c0_152 = arith.constant 0 : index
    %c0_153 = arith.constant 0 : index
    %325 = vector.load %arg10[%c2_151, %c0_152, %c0_153] : memref<3x1x64xf32, #tpu.memory_space<vmem>>, vector<1x1x64xf32>
    %326 = vector.shape_cast %325 : vector<1x1x64xf32> to vector<1x64xf32>
    %327 = vector.broadcast %326 : vector<1x64xf32> to vector<8x64xf32>
    %328 = arith.addf %324, %327 : vector<8x64xf32>
    %cst_154 = arith.constant 0.000000e+00 : f32
    %329 = vector.broadcast %cst_154 : f32 to vector<8x64xf32>
    %330 = arith.maximumf %328, %329 : vector<8x64xf32>
    %c2_155 = arith.constant 2 : index
    %c0_156 = arith.constant 0 : index
    %c0_157 = arith.constant 0 : index
    %331 = vector.load %arg11[%c2_155, %c0_156, %c0_157] : memref<3x64x32xf32, #tpu.memory_space<vmem>>, vector<1x64x32xf32>
    %332 = vector.shape_cast %331 : vector<1x64x32xf32> to vector<64x32xf32>
    %cst_158 = arith.constant dense<0.000000e+00> : vector<8x32xf32>
    %333 = tpu.matmul %330, %332, %cst_158 {dimension_numbers = #tpu.dot_dimension_numbers<[1], [0], [0], [1], [0, 0, 1, 1], [], []>} : vector<8x64xf32>, vector<64x32xf32>, vector<8x32xf32> -> vector<8x32xf32>
    %c2_159 = arith.constant 2 : index
    %c0_160 = arith.constant 0 : index
    %c0_161 = arith.constant 0 : index
    %334 = vector.load %arg12[%c2_159, %c0_160, %c0_161] : memref<3x1x32xf32, #tpu.memory_space<vmem>>, vector<1x1x32xf32>
    %335 = vector.shape_cast %334 : vector<1x1x32xf32> to vector<1x32xf32>
    %336 = vector.broadcast %335 : vector<1x32xf32> to vector<8x32xf32>
    %337 = arith.addf %333, %336 : vector<8x32xf32>
    %338 = arith.addf %321, %337 : vector<8x32xf32>
    %c2_162 = arith.constant 2 : index
    %c0_163 = arith.constant 0 : index
    %c0_164 = arith.constant 0 : index
    %339 = vector.load %arg15[%c2_162, %c0_163, %c0_164] : memref<3x1x32xf32, #tpu.memory_space<vmem>>, vector<1x1x32xf32>
    %340 = vector.shape_cast %339 : vector<1x1x32xf32> to vector<1x32xf32>
    %c2_165 = arith.constant 2 : index
    %c0_166 = arith.constant 0 : index
    %c0_167 = arith.constant 0 : index
    %341 = vector.load %arg16[%c2_165, %c0_166, %c0_167] : memref<3x1x32xf32, #tpu.memory_space<vmem>>, vector<1x1x32xf32>
    %342 = vector.shape_cast %341 : vector<1x1x32xf32> to vector<1x32xf32>
    %cst_168 = arith.constant dense<0.000000e+00> : vector<8xf32>
    %343 = vector.multi_reduction <add>, %338, %cst_168 [1] : vector<8x32xf32> to vector<8xf32>
    %344 = vector.shape_cast %343 : vector<8xf32> to vector<8x1xf32>
    %cst_169 = arith.constant 3.200000e+01 : f32
    %345 = vector.broadcast %cst_169 : f32 to vector<8x1xf32>
    %346 = arith.divf %344, %345 : vector<8x1xf32>
    %347 = vector.broadcast %346 : vector<8x1xf32> to vector<8x32xf32>
    %348 = arith.subf %338, %347 : vector<8x32xf32>
    %349 = arith.mulf %348, %348 : vector<8x32xf32>
    %cst_170 = arith.constant dense<0.000000e+00> : vector<8xf32>
    %350 = vector.multi_reduction <add>, %349, %cst_170 [1] : vector<8x32xf32> to vector<8xf32>
    %351 = vector.shape_cast %350 : vector<8xf32> to vector<8x1xf32>
    %cst_171 = arith.constant 3.200000e+01 : f32
    %352 = vector.broadcast %cst_171 : f32 to vector<8x1xf32>
    %353 = arith.divf %351, %352 : vector<8x1xf32>
    %354 = vector.broadcast %346 : vector<8x1xf32> to vector<8x32xf32>
    %355 = arith.subf %338, %354 : vector<8x32xf32>
    %cst_172 = arith.constant 9.99999974E-6 : f32
    %356 = vector.broadcast %cst_172 : f32 to vector<8x1xf32>
    %357 = arith.addf %353, %356 : vector<8x1xf32>
    %358 = math.rsqrt %357 : vector<8x1xf32>
    %359 = vector.broadcast %358 : vector<8x1xf32> to vector<8x32xf32>
    %360 = arith.mulf %355, %359 : vector<8x32xf32>
    %361 = vector.broadcast %340 : vector<1x32xf32> to vector<8x32xf32>
    %362 = arith.mulf %360, %361 : vector<8x32xf32>
    %363 = vector.broadcast %342 : vector<1x32xf32> to vector<8x32xf32>
    %364 = arith.addf %362, %363 : vector<8x32xf32>
    %c0_173 = arith.constant 0 : index
    %c0_174 = arith.constant 0 : index
    %365 = vector.load %arg17[%c0_173, %c0_174] : memref<32x32xf32, #tpu.memory_space<vmem>>, vector<32x32xf32>
    %cst_175 = arith.constant dense<0.000000e+00> : vector<8x32xf32>
    %366 = tpu.matmul %364, %365, %cst_175 {dimension_numbers = #tpu.dot_dimension_numbers<[1], [0], [0], [1], [0, 0, 1, 1], [], []>} : vector<8x32xf32>, vector<32x32xf32>, vector<8x32xf32> -> vector<8x32xf32>
    %c0_176 = arith.constant 0 : index
    %c0_177 = arith.constant 0 : index
    %367 = vector.load %arg18[%c0_176, %c0_177] : memref<1x32xf32, #tpu.memory_space<vmem>>, vector<1x32xf32>
    %368 = vector.broadcast %367 : vector<1x32xf32> to vector<8x32xf32>
    %369 = arith.addf %366, %368 : vector<8x32xf32>
    %370 = vector.shape_cast %369 : vector<8x32xf32> to vector<1x8x32xf32>
    %371 = vector.shape_cast %370 : vector<1x8x32xf32> to vector<8x1x32xf32>
    %c0_178 = arith.constant 0 : index
    %c0_179 = arith.constant 0 : index
    %c0_180 = arith.constant 0 : index
    %372 = vector.load %arg3[%c0_178, %c0_179, %c0_180] : memref<8x8x32xf32, #tpu.memory_space<vmem>>, vector<8x8x32xf32>
    %373 = vector.shape_cast %372 : vector<8x8x32xf32> to vector<64x32xf32>
    %c0_181 = arith.constant 0 : index
    %c0_182 = arith.constant 0 : index
    %374 = vector.load %arg19[%c0_181, %c0_182] : memref<32x64xf32, #tpu.memory_space<vmem>>, vector<32x64xf32>
    %cst_183 = arith.constant dense<0.000000e+00> : vector<64x64xf32>
    %375 = tpu.matmul %373, %374, %cst_183 {dimension_numbers = #tpu.dot_dimension_numbers<[1], [0], [0], [1], [0, 0, 1, 1], [], []>} : vector<64x32xf32>, vector<32x64xf32>, vector<64x64xf32> -> vector<64x64xf32>
    %c0_184 = arith.constant 0 : index
    %c0_185 = arith.constant 0 : index
    %376 = vector.load %arg20[%c0_184, %c0_185] : memref<1x64xf32, #tpu.memory_space<vmem>>, vector<1x64xf32>
    %377 = vector.broadcast %376 : vector<1x64xf32> to vector<64x64xf32>
    %378 = arith.addf %375, %377 : vector<64x64xf32>
    %379 = vector.extract_strided_slice %378 {offsets = [0, 0], sizes = [64, 32], strides = [1, 1]} : vector<64x64xf32> to vector<64x32xf32>
    %380 = vector.shape_cast %379 : vector<64x32xf32> to vector<8x8x32xf32>
    %381 = vector.extract_strided_slice %378 {offsets = [0, 32], sizes = [64, 32], strides = [1, 1]} : vector<64x64xf32> to vector<64x32xf32>
    %382 = vector.shape_cast %381 : vector<64x32xf32> to vector<8x8x32xf32>
    %383 = vector.extract_strided_slice %371 {offsets = [0, 0, 0], sizes = [8, 1, 16], strides = [1, 1, 1]} : vector<8x1x32xf32> to vector<8x1x16xf32>
    %384 = vector.extract_strided_slice %371 {offsets = [0, 0, 16], sizes = [8, 1, 16], strides = [1, 1, 1]} : vector<8x1x32xf32> to vector<8x1x16xf32>
    %385 = tpu.concatenate %383, %384 in 0 : vector<8x1x16xf32>, vector<8x1x16xf32> -> vector<16x1x16xf32>
    %386 = vector.extract_strided_slice %380 {offsets = [0, 0, 0], sizes = [8, 8, 16], strides = [1, 1, 1]} : vector<8x8x32xf32> to vector<8x8x16xf32>
    %387 = vector.extract_strided_slice %380 {offsets = [0, 0, 16], sizes = [8, 8, 16], strides = [1, 1, 1]} : vector<8x8x32xf32> to vector<8x8x16xf32>
    %388 = tpu.concatenate %386, %387 in 0 : vector<8x8x16xf32>, vector<8x8x16xf32> -> vector<16x8x16xf32>
    %389 = vector.extract_strided_slice %382 {offsets = [0, 0, 0], sizes = [8, 8, 16], strides = [1, 1, 1]} : vector<8x8x32xf32> to vector<8x8x16xf32>
    %390 = vector.extract_strided_slice %382 {offsets = [0, 0, 16], sizes = [8, 8, 16], strides = [1, 1, 1]} : vector<8x8x32xf32> to vector<8x8x16xf32>
    %391 = tpu.concatenate %389, %390 in 0 : vector<8x8x16xf32>, vector<8x8x16xf32> -> vector<16x8x16xf32>
    "tpu.trace_start"() <{level = 10 : i32, message = "bqd,bkd->bqk"}> : () -> ()
    %cst_186 = arith.constant dense<0.000000e+00> : vector<16x1x8xf32>
    %392 = tpu.matmul %385, %388, %cst_186 {dimension_numbers = #tpu.dot_dimension_numbers<[2], [2], [1], [1], [0, 0, 0, 1, 1, 1], [0], [0]>} : vector<16x1x16xf32>, vector<16x8x16xf32>, vector<16x1x8xf32> -> vector<16x1x8xf32>
    "tpu.trace_stop"() : () -> ()
    %cst_187 = arith.constant 2.500000e-01 : f32
    %393 = vector.broadcast %cst_187 : f32 to vector<16x1x8xf32>
    %394 = arith.mulf %392, %393 : vector<16x1x8xf32>
    %cst_188 = arith.constant dense<0xFF800000> : vector<16x1xf32>
    %395 = vector.multi_reduction <maximumf>, %394, %cst_188 [2] : vector<16x1x8xf32> to vector<16x1xf32>
    %396 = vector.shape_cast %395 : vector<16x1xf32> to vector<16x1x1xf32>
    %397 = vector.broadcast %396 : vector<16x1x1xf32> to vector<16x1x8xf32>
    %398 = arith.subf %394, %397 : vector<16x1x8xf32>
    %399 = math.exp %398 : vector<16x1x8xf32>
    %cst_189 = arith.constant dense<0.000000e+00> : vector<16x1xf32>
    %400 = vector.multi_reduction <add>, %399, %cst_189 [2] : vector<16x1x8xf32> to vector<16x1xf32>
    %401 = vector.shape_cast %400 : vector<16x1xf32> to vector<16x1x1xf32>
    %402 = tpu.reciprocal %401 {approx = true} : vector<16x1x1xf32> -> vector<16x1x1xf32>
    %403 = vector.broadcast %402 : vector<16x1x1xf32> to vector<16x1x8xf32>
    %404 = arith.mulf %399, %403 : vector<16x1x8xf32>
    "tpu.trace_start"() <{level = 10 : i32, message = "bqk,bkd->bqd"}> : () -> ()
    %cst_190 = arith.constant dense<0.000000e+00> : vector<16x1x16xf32>
    %405 = tpu.matmul %404, %391, %cst_190 {dimension_numbers = #tpu.dot_dimension_numbers<[2], [1], [1], [2], [0, 0, 0, 1, 1, 2], [0], [0]>} : vector<16x1x8xf32>, vector<16x8x16xf32>, vector<16x1x16xf32> -> vector<16x1x16xf32>
    "tpu.trace_stop"() : () -> ()
    %406 = vector.extract_strided_slice %405 {offsets = [0, 0, 0], sizes = [8, 1, 16], strides = [1, 1, 1]} : vector<16x1x16xf32> to vector<8x1x16xf32>
    %407 = vector.extract_strided_slice %405 {offsets = [8, 0, 0], sizes = [8, 1, 16], strides = [1, 1, 1]} : vector<16x1x16xf32> to vector<8x1x16xf32>
    %408 = tpu.concatenate %406, %407 in 2 : vector<8x1x16xf32>, vector<8x1x16xf32> -> vector<8x1x32xf32>
    %409 = vector.shape_cast %408 : vector<8x1x32xf32> to vector<1x8x32xf32>
    %410 = vector.shape_cast %409 : vector<1x8x32xf32> to vector<8x32xf32>
    %c0_191 = arith.constant 0 : index
    %c0_192 = arith.constant 0 : index
    %411 = vector.load %arg21[%c0_191, %c0_192] : memref<32x32xf32, #tpu.memory_space<vmem>>, vector<32x32xf32>
    %cst_193 = arith.constant dense<0.000000e+00> : vector<8x32xf32>
    %412 = tpu.matmul %410, %411, %cst_193 {dimension_numbers = #tpu.dot_dimension_numbers<[1], [0], [0], [1], [0, 0, 1, 1], [], []>} : vector<8x32xf32>, vector<32x32xf32>, vector<8x32xf32> -> vector<8x32xf32>
    %c0_194 = arith.constant 0 : index
    %c0_195 = arith.constant 0 : index
    %413 = vector.load %arg22[%c0_194, %c0_195] : memref<1x32xf32, #tpu.memory_space<vmem>>, vector<1x32xf32>
    %414 = vector.broadcast %413 : vector<1x32xf32> to vector<8x32xf32>
    %415 = arith.addf %412, %414 : vector<8x32xf32>
    %416 = vector.shape_cast %415 : vector<8x32xf32> to vector<1x8x32xf32>
    %c0_196 = arith.constant 0 : index
    %c0_197 = arith.constant 0 : index
    %c0_198 = arith.constant 0 : index
    %417 = vector.load %arg23[%c0_196, %c0_197, %c0_198] : memref<1x8x32xf32, #tpu.memory_space<vmem>>, vector<1x8x32xf32>
    tpu.vector_store %arg23[%c0_196, %c0_197, %c0_198], %416 {strides = array<i32>} : memref<1x8x32xf32, #tpu.memory_space<vmem>>, vector<1x8x32xf32>,
    return
  }
  func.func @transform_0(%arg0: i32) -> (i32, i32) {
    %c0_i32 = arith.constant 0 : i32
    %c0_i32_0 = arith.constant 0 : i32
    return %arg0, %c0_i32 : i32, i32
  }
  func.func @transform_1(%arg0: i32) -> (i32, i32) {
    %c0_i32 = arith.constant 0 : i32
    %c0_i32_0 = arith.constant 0 : i32
    %c0_i32_1 = arith.constant 0 : i32
    return %c0_i32, %c0_i32_0 : i32, i32
  }
  func.func @transform_2(%arg0: i32) -> (i32, i32, i32) {
    %c0_i32 = arith.constant 0 : i32
    %c0_i32_0 = arith.constant 0 : i32
    %c0_i32_1 = arith.constant 0 : i32
    %c0_i32_2 = arith.constant 0 : i32
    return %c0_i32, %c0_i32_0, %c0_i32_1 : i32, i32, i32
  }
  func.func @transform_3(%arg0: i32) -> (i32, i32) {
    %c0_i32 = arith.constant 0 : i32
    %c0_i32_0 = arith.constant 0 : i32
    %c0_i32_1 = arith.constant 0 : i32
    return %c0_i32, %c0_i32_0 : i32, i32
  }
  func.func @transform_4(%arg0: i32) -> (i32, i32, i32) {
    %c0_i32 = arith.constant 0 : i32
    %c0_i32_0 = arith.constant 0 : i32
    %c0_i32_1 = arith.constant 0 : i32
    %c0_i32_2 = arith.constant 0 : i32
    return %c0_i32, %c0_i32_0, %c0_i32_1 : i32, i32, i32
  }
  func.func @transform_5(%arg0: i32) -> (i32, i32, i32) {
    %c0_i32 = arith.constant 0 : i32
    %c0_i32_0 = arith.constant 0 : i32
    %c0_i32_1 = arith.constant 0 : i32
    %c0_i32_2 = arith.constant 0 : i32
    return %c0_i32, %c0_i32_0, %c0_i32_1 : i32, i32, i32
  }
  func.func @transform_6(%arg0: i32) -> (i32, i32, i32) {
    %c0_i32 = arith.constant 0 : i32
    %c0_i32_0 = arith.constant 0 : i32
    %c0_i32_1 = arith.constant 0 : i32
    %c0_i32_2 = arith.constant 0 : i32
    return %c0_i32, %c0_i32_0, %c0_i32_1 : i32, i32, i32
  }
  func.func @transform_7(%arg0: i32) -> (i32, i32, i32) {
    %c0_i32 = arith.constant 0 : i32
    %c0_i32_0 = arith.constant 0 : i32
    %c0_i32_1 = arith.constant 0 : i32
    %c0_i32_2 = arith.constant 0 : i32
    return %c0_i32, %c0_i32_0, %c0_i32_1 : i32, i32, i32
  }
  func.func @transform_8(%arg0: i32) -> (i32, i32, i32) {
    %c0_i32 = arith.constant 0 : i32
    %c0_i32_0 = arith.constant 0 : i32
    %c0_i32_1 = arith.constant 0 : i32
    %c0_i32_2 = arith.constant 0 : i32
    return %c0_i32, %c0_i32_0, %c0_i32_1 : i32, i32, i32
  }
  func.func @transform_9(%arg0: i32) -> (i32, i32, i32) {
    %c0_i32 = arith.constant 0 : i32
    %c0_i32_0 = arith.constant 0 : i32
    %c0_i32_1 = arith.constant 0 : i32
    %c0_i32_2 = arith.constant 0 : i32
    return %c0_i32, %c0_i32_0, %c0_i32_1 : i32, i32, i32
  }
  func.func @transform_10(%arg0: i32) -> (i32, i32, i32) {
    %c0_i32 = arith.constant 0 : i32
    %c0_i32_0 = arith.constant 0 : i32
    %c0_i32_1 = arith.constant 0 : i32
    %c0_i32_2 = arith.constant 0 : i32
    return %c0_i32, %c0_i32_0, %c0_i32_1 : i32, i32, i32
  }
  func.func @transform_11(%arg0: i32) -> (i32, i32, i32) {
    %c0_i32 = arith.constant 0 : i32
    %c0_i32_0 = arith.constant 0 : i32
    %c0_i32_1 = arith.constant 0 : i32
    %c0_i32_2 = arith.constant 0 : i32
    return %c0_i32, %c0_i32_0, %c0_i32_1 : i32, i32, i32
  }
  func.func @transform_12(%arg0: i32) -> (i32, i32, i32) {
    %c0_i32 = arith.constant 0 : i32
    %c0_i32_0 = arith.constant 0 : i32
    %c0_i32_1 = arith.constant 0 : i32
    %c0_i32_2 = arith.constant 0 : i32
    return %c0_i32, %c0_i32_0, %c0_i32_1 : i32, i32, i32
  }
  func.func @transform_13(%arg0: i32) -> (i32, i32, i32) {
    %c0_i32 = arith.constant 0 : i32
    %c0_i32_0 = arith.constant 0 : i32
    %c0_i32_1 = arith.constant 0 : i32
    %c0_i32_2 = arith.constant 0 : i32
    return %c0_i32, %c0_i32_0, %c0_i32_1 : i32, i32, i32
  }
  func.func @transform_14(%arg0: i32) -> (i32, i32, i32) {
    %c0_i32 = arith.constant 0 : i32
    %c0_i32_0 = arith.constant 0 : i32
    %c0_i32_1 = arith.constant 0 : i32
    %c0_i32_2 = arith.constant 0 : i32
    return %c0_i32, %c0_i32_0, %c0_i32_1 : i32, i32, i32
  }
  func.func @transform_15(%arg0: i32) -> (i32, i32, i32) {
    %c0_i32 = arith.constant 0 : i32
    %c0_i32_0 = arith.constant 0 : i32
    %c0_i32_1 = arith.constant 0 : i32
    %c0_i32_2 = arith.constant 0 : i32
    return %c0_i32, %c0_i32_0, %c0_i32_1 : i32, i32, i32
  }
  func.func @transform_16(%arg0: i32) -> (i32, i32) {
    %c0_i32 = arith.constant 0 : i32
    %c0_i32_0 = arith.constant 0 : i32
    %c0_i32_1 = arith.constant 0 : i32
    return %c0_i32, %c0_i32_0 : i32, i32
  }
  func.func @transform_17(%arg0: i32) -> (i32, i32) {
    %c0_i32 = arith.constant 0 : i32
    %c0_i32_0 = arith.constant 0 : i32
    %c0_i32_1 = arith.constant 0 : i32
    return %c0_i32, %c0_i32_0 : i32, i32
  }
  func.func @transform_18(%arg0: i32) -> (i32, i32) {
    %c0_i32 = arith.constant 0 : i32
    %c0_i32_0 = arith.constant 0 : i32
    %c0_i32_1 = arith.constant 0 : i32
    return %c0_i32, %c0_i32_0 : i32, i32
  }
  func.func @transform_19(%arg0: i32) -> (i32, i32) {
    %c0_i32 = arith.constant 0 : i32
    %c0_i32_0 = arith.constant 0 : i32
    %c0_i32_1 = arith.constant 0 : i32
    return %c0_i32, %c0_i32_0 : i32, i32
  }
  func.func @transform_20(%arg0: i32) -> (i32, i32) {
    %c0_i32 = arith.constant 0 : i32
    %c0_i32_0 = arith.constant 0 : i32
    %c0_i32_1 = arith.constant 0 : i32
    return %c0_i32, %c0_i32_0 : i32, i32
  }
  func.func @transform_21(%arg0: i32) -> (i32, i32) {
    %c0_i32 = arith.constant 0 : i32
    %c0_i32_0 = arith.constant 0 : i32
    %c0_i32_1 = arith.constant 0 : i32
    return %c0_i32, %c0_i32_0 : i32, i32
  }
  func.func @transform_22(%arg0: i32) -> (i32, i32, i32) {
    %c0_i32 = arith.constant 0 : i32
    %c0_i32_0 = arith.constant 0 : i32
    %c0_i32_1 = arith.constant 0 : i32
    return %arg0, %c0_i32, %c0_i32_0 : i32, i32, i32
  }
}

</mosaic_0001>

<bundles_post_ra>
// kernel: tpu_custom_call.1
= control target key start
LH: loop header
LB: loop body
LE: loop exit
PB: predicated region body
PF: predicated region fallthrough
CT: control target
= control target key end

     0   :  { %s5079_s0 = inlined_call_operand.vmem [shape: s32[16,1], index: 0, kind: input, shape index: {}]   ;;  %s5080_s1 = inlined_call_operand.vmem [shape: f32[8,32], index: 1, kind: input, shape index: {}]   ;;  %s5081_s2 = inlined_call_operand.hbm [shape: f32[8,8,32], index: 2, kind: input, shape index: {}]   ;;  %s5082_s3 = inlined_call_operand.vmem [shape: f32[50,32], index: 3, kind: input, shape index: {}]   ;;  %s5083_s4 = inlined_call_operand.vmem [shape: f32[3,32,96], index: 4, kind: input, shape index: {}]   ;;  %s5084_s5 = inlined_call_operand.vmem [shape: f32[3,1,96], index: 5, kind: input, shape index: {}]   ;;  %s5085_s6 = inlined_call_operand.vmem [shape: f32[3,32,32], index: 6, kind: input, shape index: {}]   ;;  %s5086_s7 = inlined_call_operand.vmem [shape: f32[3,1,32], index: 7, kind: input, shape index: {}]   ;;  %s5087_s8 = inlined_call_operand.vmem [shape: f32[3,32,64], index: 8, kind: input, shape index: {}]   ;;  %s5088_s9 = inlined_call_operand.vmem [shape: f32[3,1,64], index: 9, kind: input, shape index: {}]   ;;  %s5089_s10 = inlined_call_operand.vmem [shape: f32[3,64,32], index: 10, kind: input, shape index: {}]   ;;  %s5090_s11 = inlined_call_operand.hbm [shape: f32[3,1,32], index: 11, kind: input, shape index: {}]   ;;  %s5091_s12 = inlined_call_operand.hbm [shape: f32[3,1,32], index: 12, kind: input, shape index: {}]   ;;  %s5092_s13 = inlined_call_operand.hbm [shape: f32[3,1,32], index: 13, kind: input, shape index: {}]   ;;  %s5093_s14 = inlined_call_operand.hbm [shape: f32[3,1,32], index: 14, kind: input, shape index: {}]   ;;  %s5094_s15 = inlined_call_operand.vmem [shape: f32[3,1,32], index: 15, kind: input, shape index: {}]   ;;  %s5095_s16 = inlined_call_operand.hbm [shape: f32[32,32], index: 16, kind: input, shape index: {}]   ;;  %s5096_s17 = inlined_call_operand.vmem [shape: f32[1,32], index: 17, kind: input, shape index: {}]   ;;  %s5097_s18 = inlined_call_operand.hbm [shape: f32[32,64], index: 18, kind: input, shape index: {}]   ;;  %s5098_s19 = inlined_call_operand.vmem [shape: f32[1,64], index: 19, kind: input, shape index: {}]   ;;  %s5099_s20 = inlined_call_operand.hbm [shape: f32[32,32], index: 20, kind: input, shape index: {}]   ;;  %s5100_s21 = inlined_call_operand.vmem [shape: f32[1,32], index: 21, kind: input, shape index: {}]   ;;  %s5101_s22 = inlined_call_operand.hbm [shape: f32[2,8,32], index: 22, kind: output, shape index: {}]  }
   0x1   :  { %5117 = sst [smem:[#allocation30_spill]] %s5079_s0 }
   0x2   :  { %5118 = sst [smem:[#allocation31_spill]] %s5080_s1 }
   0x3   :  { %5119 = sst [smem:[#allocation32_spill]] %s5081_s2 }
   0x4   :  { %5120 = sst [smem:[#allocation33_spill]] %s5082_s3 }
   0x5   :  { %5121 = sst [smem:[#allocation34_spill]] %s5083_s4 }
   0x6   :  { %5122 = sst [smem:[#allocation35_spill]] %s5084_s5 }
   0x7   :  { %5123 = sst [smem:[#allocation36_spill]] %s5085_s6 }
   0x8   :  { %5124 = sst [smem:[#allocation37_spill]] %s5090_s11 }
   0x9   :  { %5125 = sst [smem:[#allocation38_spill]] %s5091_s12 }
   0xa   :  { %5126 = sst [smem:[#allocation39_spill]] %s5092_s13 }
   0xb   :  { %5127 = sst [smem:[#allocation40_spill]] %s5100_s21 }
   0xc   :  { %5128 = sst [smem:[#allocation41_spill]] %s5101_s22 }
   0xd   :  { %27 = vsyncpa [#allocation3], 0 }
   0xe   :  { %28 = vsyncpa [#allocation6], 0 }
   0xf   :  { %29 = vsyncpa [#allocation9], 0 }
  0x10   :  { %30 = vsyncpa [#allocation12], 0 }
  0x11   :  { %31 = vsyncpa [#allocation15], 0 }
  0x12   :  { %32 = vsyncpa [#allocation4], 0 }
  0x13   :  { %34 = vsyncpa [#allocation4 + $0x1], 0  ;;  %s4215_s3 = smov 0   ;;  %s4217_s28 = smov 0  }
  0x14   :  { %s4219_s29 = smov 0   ;;  %s4221_s30 = smov 0  }
  0x15 LB: > { %5129 = sst [smem:[#allocation23_spill]] %s4067_s3  ;;  %s4236_s4 = sadd.s32 4294967295, %s4079_s30   ;;  %s4079_s30 = sphi %s4221_s30, %s5158_s30   ;;  %s4075_s29 = sphi %s4219_s29, %s5160_s29   ;;  %s4071_s28 = sphi %s4217_s28, %s5162_s28   ;;  %s4067_s3 = sphi %s4215_s3, %s5161_s3  }
  0x16   : > { %5130 = sst [smem:[#allocation24_spill]] %s4075_s29  ;;  %s3292_s0 = sadd.s32 4294967294, %s4079_s30  }
  0x17   : > { %5131 = sst [smem:[#allocation25_spill]] %s4079_s30  ;;  %s4240_s23 = sadd.s32 1, %s4079_s30  }
  0x18   : > { %5132 = sst [smem:[#allocation26_spill]] %s4240_s23  ;;  %s514_s1 = sadd.s32 1, %s4075_s29 }
  0x19   : > { %s511_s5 = ssub.s32 %s4079_s30, %s4240_s23  ;;  %p524_p0 = scmp.ne.s32.totalorder %s4075_s29, %s4071_s28 }
  0x1a   : > { %p512_p1 = scmp.eq.s32.totalorder %s511_s5, 0  ;;  %p525_p2 = scmp.eq.s32.totalorder %s4236_s4, 1 }
  0x1b   : > { %p530_p3 = scmp.ne.s32.totalorder %s4071_s28, %s4067_s3  ;;  %p531_p4 = scmp.eq.s32.totalorder %s3292_s0, 1 }
  0x1c   : > { %s4251_s24 = scalar_select %p512_p1, %s4075_s29, %s514_s1  }
  0x1d   : > { %p4253_p5 = por %p525_p2, %p524_p0  ;;  %p4257_p6 = por %p531_p4, %p530_p3 }
  0x1e   : > { %5133 = sst [smem:[#allocation27_spill]] %s4251_s24  ;;  %p3293_p7 = scmp.ge.s32.totalorder %s4079_s30, 1 }
  0x1f   : > { %s5134_s6 = scalar_select %p4253_p5, 1, 0 }
  0x20   : > { %s5136_s25 = scalar_select %p4257_p6, 1, 0 }
  0x21   : > { %5135 = sst [smem:[#allocation28_spill]] %s5134_s6  ;;  %p538_p8 = scmp.lt.s32.totalorder %s4079_s30, 3 }
  0x22   : > { %5137 = sst [smem:[#allocation29_spill]] %s5136_s25  ;;  %p3519_p9 = scmp.eq.s32.totalorder %s4236_s4, 0 }
  0x23   : > { %p4264_p10 = pnand %p3293_p7, %p538_p8  ;;  %s5139_s11 = sld [smem:[#allocation37_spill]] }
  0x24   : > { %s4081_s1 = smov [#allocation5]   ;;  %s5141_s13 = sld [smem:[#allocation39_spill]] }
  0x25   : > { %p3490_p11 = pneg %p4264_p10  ;;  %s592_s5 = sshll.u32 %s4081_s1, 4  ;;  %s593_s5 = int_to_ptr.vmem [resolvable:$true] %s592_s5 }
  0x26   : > { %s4082_s2 = smov 16   ;;  %s4083_s27 = smov 1  }
  0x27   : > { %p4275_p12 = pnand %p3519_p9, %p3490_p11  ;;  %s4084_s1 = smov [#allocation8]  }
  0x28   : > { %s4085_s3 = smov [#allocation11]   ;;  %s4087_s22 = smov 8  }
  0x29   : > { %s590_s0 = sshll.u32 %s5139_s11, 4  ;;  %s620_s11 = sshll.u32 %s4084_s1, 4  ;;  %s591_s0 = int_to_ptr.hbm [resolvable:$true] %s590_s0  ;;  %s621_s11 = int_to_ptr.vmem [resolvable:$true] %s620_s11 }
  0x2a   : > { %s618_s25 = sshll.u32 %s5141_s13, 4  ;;  %s649_s13 = sshll.u32 %s5095_s16, 4  ;;  %s619_s25 = int_to_ptr.hbm [resolvable:$true] %s618_s25  ;;  %s650_s13 = int_to_ptr.hbm [resolvable:$true] %s649_s13 }
  0x2b   : > { %3496 = dma.hbm_to_vmem [thread:$0]  (!%p4275_p12), %s591_s0, 48, %s593_s5, [#allocation6], %s4082_s2, %s4082_s2, %s4083_s27  }
  0x2c   : > { %3502 = dma.hbm_to_vmem [thread:$0]  (!%p4275_p12), %s619_s25, 48, %s621_s11, [#allocation9], %s4082_s2, %s4082_s2, %s4083_s27  }
  0x2d   : > { %s651_s30 = sshll.u32 %s4085_s3, 4  ;;  %s5142_s0 = sld [smem:[#allocation32_spill]]  ;;  %s652_s30 = int_to_ptr.vmem [resolvable:$true] %s651_s30 }
  0x2e   : > { %s4086_s1 = smov 128   ;;  %s4088_s11 = smov [#allocation2]  }
  0x2f   : > { %3508 = dma.hbm_to_vmem [thread:$0]  (!%p4275_p12), %s650_s13, 512, %s652_s30, [#allocation12], %s4086_s1, %s4086_s1, %s4087_s22  }
  0x30   : > { %s554_s25 = sshll.u32 %s4088_s11, 4  ;;  %s5143_s12 = sld [smem:[#allocation38_spill]]  ;;  %s555_s25 = int_to_ptr.vmem [resolvable:$true] %s554_s25 }
  0x31   : > { %s4089_s13 = smov [#allocation7]   ;;  %s4090_s11 = smov [#allocation10]  }
  0x32   : > { %s606_s30 = sshll.u32 %s4089_s13, 4  ;;  %s634_s29 = sshll.u32 %s4090_s11, 4  ;;  %s607_s30 = int_to_ptr.vmem [resolvable:$true] %s606_s30  ;;  %s635_s29 = int_to_ptr.vmem [resolvable:$true] %s634_s29 }
  0x33   : > { %s552_s5 = sshll.u32 %s5142_s0, 4  ;;  %s632_s0 = sshll.u32 %s5093_s14, 4  ;;  %s553_s5 = int_to_ptr.hbm [resolvable:$true] %s552_s5  ;;  %s633_s0 = int_to_ptr.hbm [resolvable:$true] %s632_s0 }
  0x34   : > { %3493 = dma.hbm_to_vmem [thread:$0]  (!%p4275_p12), %s553_s5, 1024, %s555_s25, [#allocation3], %s4086_s1, %s4086_s1, %s4087_s22  }
  0x35   : > { %s666_s5 = sshll.u32 %s5097_s18, 4  ;;  %s683_s6 = sshll.u32 %s5099_s20, 4  ;;  %s667_s5 = int_to_ptr.hbm [resolvable:$true] %s666_s5  ;;  %s684_s6 = int_to_ptr.hbm [resolvable:$true] %s683_s6 }
  0x36   : > { %s604_s3 = sshll.u32 %s5143_s12, 4  ;;  %s4091_s13 = smov [#allocation13]   ;;  %s605_s3 = int_to_ptr.hbm [resolvable:$true] %s604_s3 }
  0x37   : > { %3499 = dma.hbm_to_vmem [thread:$0]  (!%p4275_p12), %s605_s3, 48, %s607_s30, [#allocation6], %s4082_s2, %s4082_s2, %s4083_s27  }
  0x38   : > { %3505 = dma.hbm_to_vmem [thread:$0]  (!%p4275_p12), %s633_s0, 48, %s635_s29, [#allocation9], %s4082_s2, %s4082_s2, %s4083_s27  }
  0x39   : > { %s668_s3 = sshll.u32 %s4091_s13, 4  ;;  %s4092_s12 = smov [#allocation14]   ;;  %s669_s3 = int_to_ptr.vmem [resolvable:$true] %s668_s3 }
  0x3a   : > { %3511 = dma.hbm_to_vmem [thread:$0]  (!%p4275_p12), %s667_s5, 512, %s669_s3, [#allocation12], %s4086_s1, %s4086_s1, %s4087_s22  }
  0x3b   : > { %s685_s30 = sshll.u32 %s4092_s12, 4  ;;  %711 = sbr.rel (%p4264_p10) target bundleno = 7127 (0x1bd7), region = 108  ;;  %s686_s30 = int_to_ptr.vmem [resolvable:$true] %s685_s30 }
  0x3c   : > { %3514 = dma.hbm_to_vmem [thread:$0]  (!%p4275_p12), %s684_s6, 512, %s686_s30, [#allocation15], %s4086_s1, %s4086_s1, %s4087_s22  }
  0x40   : > { %4042 = dma.done.wait (%p3519_p9), [#allocation3], 1024  }
  0x41   : > { %4044 = vsyncadd (%p3519_p9), [#allocation3], 4294966272 }
  0x42   : > { %4046 = dma.done.wait (%p3519_p9), [#allocation6], 96  }
  0x43   : > { %4048 = vsyncadd (%p3519_p9), [#allocation6], 4294967200 }
  0x44   : > { %4050 = dma.done.wait (%p3519_p9), [#allocation9], 96  }
  0x45   : > { %4052 = vsyncadd (%p3519_p9), [#allocation9], 4294967200 }
  0x46   : > { %4054 = dma.done.wait (%p3519_p9), [#allocation12], 1024  }
  0x47   : > { %4056 = vsyncadd (%p3519_p9), [#allocation12], 4294966272 }
  0x48   : > { %4058 = dma.done.wait (%p3519_p9), [#allocation15], 512  }
  0x49   : > { %4060 = vsyncadd (%p3519_p9), [#allocation15], 4294966784  ;;  %p808_p13 = scmp.lt.s32.totalorder %s4236_s4, 1  ;;  %v4093_v0 = vmov 0   ;;  %s5144_s27 = sld [smem:[#allocation30_spill]]  ;;  %vm831_vm0 = vcmask 1041408   ;;  %v813_v11 = vlaneseq }
  0x4a   : > { %3587 = vset.pattern.permute.xlu0 %v4093_v0  ;;  %s5145_s29 = sld [smem:[#allocation33_spill]]  ;;  %vm827_vm1 = vcmask 408576   ;;  %v4094_v14 = vmov 0.0   ;;  %vm865_vm3 = vcmask 261120   ;;  %s4095_s26 = smov 112   ;;  %vm894_vm4 = vcmask 130048  }
  0x4b   : > { %s809_s22 = scalar_select %p808_p13, %s4236_s4, 1  ;;  %v814_v12 = vand.u32 127, %v813_v11  ;;  %vm947_vm5 = vcmask 64512   ;;  %v3629_v59 = vld [vmem:[%s5086_s7] ss:$0 sm:$0xff]  ;;  %v4099_v0 = vmov 32.0  }
  0x4c   : > { %s5147_s0 = sld [smem:[#allocation34_spill]]  ;;  %s4096_s2 = smov 96   ;;  %vm1142_vm10 = vcmask 523264  }
  0x4d   : > { %s3313_s24 = sshll.u32 %s809_s22, 3  ;;  %s5148_s12 = sld [smem:[#allocation31_spill]] }
  0x4e   : > { %s4098_s3 = smov 16   ;;  %s5154_s11 = sld [smem:[#allocation40_spill]] }
  0x4f   : > { %s811_s1 = scalar_lea.vmem %s5144_s27, %s3313_s24  ;;  %s5149_s24 = sld [smem:[#allocation35_spill]] }
  0x50   : > { %v812_v1 = vld [vmem:[%s811_s1] sm:$0xff]  ;;  %s5146_s23 = smov %s5145_s29  ;;  %v826_v2 = vld [vmem:[%s5145_s29 + $0x30] sm:$0x3]  ;;  %s4097_s27 = smov 64  }
  0x51   : > { %v825_v3 = vld [vmem:[%s5146_s23 + $0x28] sm:$0xff]  ;;  %816 = vperm.xlu0 %3587, %v812_v1   ;;  %3314 = vmatpush.msk.msra.mxu0 %vm831_vm0, %v826_v2  ;;  %v824_v4 = vld [vmem:[%s5146_s23 + $0x20] sm:$0xff]  ;;  %v823_v5 = vld [vmem:[%s5146_s23 + $0x18] sm:$0xff]  ;;  %s5150_s29 = sld [smem:[#allocation36_spill]] }
  0x52   : > { %v822_v6 = vld [vmem:[%s5146_s23 + $0x10] sm:$0xff]  ;;  %v821_v7 = vld [vmem:[%s5146_s23 + $0x8] sm:$0xff]  ;;  %v820_v8 = vld [vmem:[%s5146_s23] sm:$0xff] }
  0x53   : > { %845 = vmatpush.msra.mxu0 %v825_v3  ;;  %v860_v9 = vld [vmem:[%s5147_s0 + $0x18] sm:$0xff]  ;;  %v859_v10 = vld [vmem:[%s5147_s0 + $0x10] sm:$0xff]  ;;  %v858_v16 = vld [vmem:[%s5147_s0 + $0x8] sm:$0xff] }
  0x54   : > { %881 = vmatpush.msra.mxu1 %v860_v9  ;;  %v857_v17 = vld [vmem:[%s5147_s0] sm:$0xff] }
  0x55   : > { %846 = vmatpush.msra.mxu0 %v824_v4  ;;  %v855_v18 = vld [vmem:[%s5148_s12] sm:$0xff]  ;;  %s5152_s12 = sld [smem:[#allocation41_spill]] }
  0x56   : > { %882 = vmatpush.msra.mxu1 %v859_v10  ;;  %v3628_v21 = vld [vmem:[%s5149_s24] ss:$0 sm:$0xff] }
  0x57   : > { %847 = vmatpush.msra.mxu0 %v823_v5  ;;  %s5151_s5 = smov %s5150_s29  ;;  %v1030_v51 = vld [vmem:[%s5150_s29 + $0x18] sm:$0xff] }
  0x58   : > { %883 = vmatpush.msra.mxu1 %v858_v16  ;;  %v1029_v52 = vld [vmem:[%s5151_s5 + $0x10] sm:$0xff]  ;;  %v1028_v53 = vld [vmem:[%s5151_s5 + $0x8] sm:$0xff]  ;;  %v1027_v55 = vld [vmem:[%s5151_s5] sm:$0xff] }
  0x59   : > { %848 = vmatpush.msra.mxu0 %v822_v6  ;;  %v1137_v16 = vld [vmem:[%s5089_s10 + $0x38] sm:$0xff] }
  0x5a   : > { %884 = vmatpush.msra.mxu1 %v857_v17  ;;  %v1136_v17 = vld [vmem:[%s5089_s10 + $0x30] sm:$0xff] }
  0x5b   : > { %849 = vmatpush.msra.mxu0 %v821_v7 }
  0x5c   : > { %1050 = vmatpush.msrb.mxu1 %v1030_v51 }
  0x5d   : > { %850 = vmatpush.msra.mxu0 %v820_v8 }
  0x5e   : > { %1051 = vmatpush.msrb.mxu1 %v1029_v52 }
  0x60   : > { %1052 = vmatpush.msrb.mxu1 %v1028_v53  ;;  %v3329_v53 = vld [vmem:[%s5147_s0 + $0x38] sm:$0xff] }
  0x61   : > { %1224 = vmatpush.msrb.mxu0 %v3329_v53 }
  0x62   : > { %1053 = vmatpush.msrb.mxu1 %v1027_v55  ;;  %v3327_v55 = vld [vmem:[%s5147_s0 + $0x28] sm:$0xff] }
  0xc3   : > { %v817_v13 = vpop.permute.xlu0 %816 }
  0xc4   : > { %vm818_vm2 = vcmp.eq.s32.totalorder %v817_v13, %v814_v12  ;;  %v1101_v12 = vld [vmem:[%s5087_s8 + $0x18] sm:$0xff]  ;;  %v1100_v13 = vld [vmem:[%s5087_s8 + $0x10] sm:$0xff] }
  0xc5   : > { %v819_v15 = vsel %vm818_vm2, 1.0, %v4094_v14  ;;  %v1099_v14 = vld [vmem:[%s5087_s8 + $0x8] sm:$0xff] }
  0xc6   : > { %3315 = vmatmul.msk.f32.vlgmr.msra.gmra.mxu0 %vm827_vm1, %v819_v15  ;;  %v1098_v15 = vld [vmem:[%s5087_s8] sm:$0xff] }
 0x143   : > { %v852_v19 = vpop.f32.mrf.mxu0 }
 0x144   : > { %v4403_v20 = vadd.f32 %v855_v18, %v852_v19  ;;  %v1135_v18 = vld [vmem:[%s5089_s10 + $0x28] sm:$0xff] }
 0x146   : > { %3316 = vmatmul.msk.f32.vlgmr.msra.gmra.mxu1 %vm865_vm3, %v4403_v20 }
 0x1c3   : > { %v886_v22 = vpop.f32.mrf.mxu1 }
 0x1c4   : > { %v887_v23 = vadd.f32 %v3628_v21, %v886_v22  ;;  %v1134_v21 = vld [vmem:[%s5089_s10 + $0x20] sm:$0xff] }
 0x1c6   : > { %890 = vrot.lane.b32.xlu0 %v887_v23, %s4095_s26 }
 0x238   : > { %v891_v24 = vpop.permute.xlu0 %890 }
 0x239   : > { %919 = vrot.lane.b32.xlu1 %v891_v24, %s4096_s2 }
 0x241   : > { %892 = vrot.lane.b32.xlu1 %v887_v23, %s4096_s2 }
 0x249   : > { %996 = vrot.lane.b32.xlu1 %v891_v24, %s4097_s27 }
 0x251   : > { %970 = vrot.lane.b32.xlu1 %v887_v23, %s4097_s27 }
 0x2ab   : > { %v920_v25 = vpop.permute.xlu1 %919 }
 0x2ac   : > { %3319 = vmatpush.xpose.msk.msra.mxu3 %vm894_vm4, %v920_v25 }
 0x2af   : > { %3320 = vmatmul.msk.f32.vlgmr.msra.gmra.mxu3 %vm894_vm4, %v891_v24 }
 0x2b3   : > { %v893_v26 = vpop.permute.xlu1 %892 }
 0x2b4   : > { %3317 = vmatpush.xpose.msk.msra.mxu2 %vm894_vm4, %v893_v26 }
 0x2b7   : > { %3318 = vmatmul.msk.f32.vlgmr.msra.gmra.mxu2 %vm894_vm4, %v887_v23  ;;  %v1133_v23 = vld [vmem:[%s5089_s10 + $0x18] sm:$0xff] }
 0x2bb   : > { %v997_v27 = vpop.permute.xlu1 %996 }
 0x2bc   : > { %1017 = vmatpush.msrb.mxu3 %v997_v27 }
 0x2be   : > { %1154 = vmatpush.msra.mxu3 %v1137_v16 }
 0x2c0   : > { %1155 = vmatpush.msra.mxu3 %v1136_v17 }
 0x2c2   : > { %1156 = vmatpush.msra.mxu3 %v1135_v18 }
 0x2c3   : > { %v971_v28 = vpop.permute.xlu1 %970 }
 0x2c4   : > { %991 = vmatpush.msrb.mxu2 %v971_v28  ;;  %1157 = vmatpush.msra.mxu3 %v1134_v21 }
 0x2c6   : > { %1121 = vmatpush.msra.mxu2 %v1101_v12  ;;  %1158 = vmatpush.msra.mxu3 %v1133_v23 }
 0x2c8   : > { %1122 = vmatpush.msra.mxu2 %v1100_v13 }
 0x2ca   : > { %1123 = vmatpush.msra.mxu2 %v1099_v14 }
 0x2cc   : > { %1124 = vmatpush.msra.mxu2 %v1098_v15 }
 0x332   : > { %v942_v29 = vpop.f32.mrf.mxu3 }
 0x333   : > { %v946_v30 = vmul.f32 0.25, %v942_v29 }
 0x335   : > { %v951_v31 = vsel %vm947_vm5, %v946_v30, -inf }
 0x336   : > { %952 = vmax.xlane.f32.xlu2 %v951_v31 }
 0x33a   : > { %v916_v32 = vpop.f32.mrf.mxu2 }
 0x33b   : > { %v945_v33 = vmul.f32 0.25, %v916_v32 }
 0x33d   : > { %v948_v34 = vsel %vm947_vm5, %v945_v33, -inf }
 0x33e   : > { %949 = vmax.xlane.f32.xlu2 %v948_v34 }
 0x3a9   : > { %v953_v35 = vpop.xlane.xlu2 %952 }
 0x3aa   : > { %v955_v36 = vsub.f32 %v946_v30, %v953_v35  ;;  %v3630_v30 = vld [vmem:[#allocation7] ss:$0 sm:$0xff] }
 0x3ac   : > { %v958_v37 = vmul.f32 1.442695, %v955_v36  ;;  %v1132_v36 = vld [vmem:[%s5089_s10 + $0x10] sm:$0xff] }
 0x3ad   : > { %1159 = vmatpush.msra.mxu3 %v1132_v36 }
 0x3ae   : > { %3655 = vpow2.f32 %v958_v37  ;;  %v1131_v37 = vld [vmem:[%s5089_s10 + $0x8] sm:$0xff] }
 0x3af   : > { %1160 = vmatpush.msra.mxu3 %v1131_v37 }
 0x3b1   : > { %v950_v38 = vpop.xlane.xlu2 %949 }
 0x3b2   : > { %v954_v39 = vsub.f32 %v945_v33, %v950_v38  ;;  %v3631_v33 = vld [vmem:[#allocation8] ss:$0 sm:$0xff]  ;;  %v1130_v38 = vld [vmem:[%s5089_s10] sm:$0xff] }
 0x3b3   : > { %1161 = vmatpush.msra.mxu3 %v1130_v38 }
 0x3b4   : > { %v3656_v40 = vpop.eup %3655  ;;  %v956_v41 = vmul.f32 1.442695, %v954_v39  ;;  %v3632_v39 = vld [vmem:[%s5088_s9] ss:$0 sm:$0xff] }
 0x3b5   : > { %v963_v42 = vsel %vm947_vm5, %v3656_v40, 0.0 }
 0x3b6   : > { %3657 = vpow2.f32 %v956_v41  ;;  %964 = vadd.xlane.f32.xlu0 %v963_v42 }
 0x3bc   : > { %v3658_v43 = vpop.eup %3657 }
 0x3bd   : > { %v960_v44 = vsel %vm947_vm5, %v3658_v43, 0.0 }
 0x3be   : > { %961 = vadd.xlane.f32.xlu2 %v960_v44 }
 0x429   : > { %v965_v45 = vpop.xlane.xlu0 %964 }
 0x42a   : > { %3659 = vrcp.f32 %v965_v45 }
 0x430   : > { %v3660_v46 = vpop.eup %3659 }
 0x431   : > { %v962_v47 = vpop.xlane.xlu2 %961  ;;  %v969_v48 = vmul.f32 %v3660_v46, %v3656_v40 }
 0x432   : > { %3661 = vrcp.f32 %v962_v47 }
 0x433   : > { %3322 = vmatmul.msk.f32.vlgmr.msrb.gmra.mxu3 %vm947_vm5, %v969_v48  ;;  %3663 = vrcp.f32 %v4099_v0 }
 0x438   : > { %v3662_v49 = vpop.eup %3661 }
 0x439   : > { %v968_v50 = vmul.f32 %v3662_v49, %v3658_v43  ;;  %v3664_v1 = vpop.eup %3663  ;;  %v3633_v43 = vld [vmem:[#allocation5] ss:$0 sm:$0xff] }
 0x43a   : > { %v1065_v2 = vmul.f32 32.0, %v3664_v1  ;;  %vm1069_vm6 = vweird.f32 %v3664_v1 }
 0x43b   : > { %3321 = vmatmul.msk.f32.vlgmr.msrb.gmra.mxu2 %vm947_vm5, %v968_v50 }
 0x43c   : > { %v1066_v3 = vsub.f32 1.0, %v1065_v2  ;;  %v3634_v2 = vld [vmem:[#allocation10] ss:$0 sm:$0xff] }
 0x43e   : > { %v1067_v4 = vmul.f32 %v3664_v1, %v1066_v3 }
 0x440   : > { %v1068_v5 = vadd.f32 %v3664_v1, %v1067_v4 }
 0x442   : > { %v4445_v6 = vsel %vm1069_vm6, %v3664_v1, %v1068_v5  ;;  %v3635_v5 = vld [vmem:[%s5094_s15] ss:$0 sm:$0xff] }
 0x4b6   : > { %v1019_v54 = vpop.f32.mrf.mxu3 }
 0x4b7   : > { %1023 = vrot.lane.b32.xlu2 %v1019_v54, %s4098_s3  ;;  %v3328_v54 = vld [vmem:[%s5147_s0 + $0x30] sm:$0xff] }
 0x4b8   : > { %1225 = vmatpush.msrb.mxu0 %v3328_v54 }
 0x4ba   : > { %1226 = vmatpush.msrb.mxu0 %v3327_v55 }
 0x4be   : > { %v993_v56 = vpop.f32.mrf.mxu2 }
 0x511   : > { %v1024_v57 = vpop.permute.xlu2 %1023 }
 0x512   : > { %v1026_v58 = vsel %vm894_vm4, %v993_v56, %v1024_v57  ;;  %v3326_v56 = vld [vmem:[%s5147_s0 + $0x20] sm:$0xff] }
 0x513   : > { %3323 = vmatmul.msk.f32.vlgmr.msrb.gmra.mxu1 %vm865_vm3, %v1026_v58  ;;  %1227 = vmatpush.msrb.mxu0 %v3326_v56 }
 0x590   : > { %v1055_v60 = vpop.f32.mrf.mxu1 }
 0x591   : > { %v1056_v61 = vadd.f32 %v3629_v59, %v1055_v60 }
 0x593   : > { %v1058_v62 = vadd.f32 %v1056_v61, %v4403_v20 }
 0x595   : > { %v1061_v63 = vsel %vm865_vm3, %v1058_v62, 0.0 }
 0x596   : > { %1062 = vadd.xlane.f32.xlu1 %v1061_v63 }
 0x609   : > { %v1063_v7 = vpop.xlane.xlu1 %1062 }
 0x60a   : > { %v1071_v8 = vmul.f32 %v4445_v6, %v1063_v7 }
 0x60c   : > { %v1072_v9 = vsub.f32 %v1058_v62, %v1071_v8 }
 0x60e   : > { %v1073_v10 = vmul.f32 %v1072_v9, %v1072_v9 }
 0x610   : > { %v1074_v11 = vsel %vm865_vm3, %v1073_v10, 0.0 }
 0x611   : > { %1075 = vadd.xlane.f32.xlu2 %v1074_v11 }
 0x684   : > { %v1076_v19 = vpop.xlane.xlu2 %1075 }
 0x685   : > { %v1077_v20 = vmul.f32 %v1076_v19, %v4445_v6 }
 0x687   : > { %v1078_v22 = vadd.f32 1e-05, %v1077_v20 }
 0x689   : > { %3665 = vrsqrt.f32 %v1078_v22  ;;  %vm1085_vm8 = vweird.f32 %v1078_v22 }
 0x68f   : > { %v3666_v24 = vpop.eup %3665 }
 0x690   : > { %v1080_v25 = vmul.f32 %v3666_v24, %v1078_v22  ;;  %vm1086_vm7 = vweird.f32 %v3666_v24 }
 0x691   : > { %vm1087_vm9 = vmor %vm1085_vm8, %vm1086_vm7 }
 0x692   : > { %v1081_v26 = vmul.f32 %v3666_v24, %v1080_v25 }
 0x694   : > { %v1082_v27 = vmul.f32 0.5, %v1081_v26 }
 0x696   : > { %v1083_v28 = vsub.f32 1.5, %v1082_v27 }
 0x698   : > { %v1084_v29 = vmul.f32 %v3666_v24, %v1083_v28 }
 0x69a   : > { %v1088_v31 = vsel %vm1087_vm9, %v3666_v24, %v1084_v29 }
 0x69b   : > { %v1089_v32 = vmul.f32 %v1088_v31, %v1072_v9  ;;  %v3636_v9 = vld [vmem:[%s5149_s24 + $0x1] ss:$0 sm:$0xff] }
 0x69d   : > { %v1093_v34 = vmul.f32 %v3630_v30, %v1089_v32 }
 0x69f   : > { %v1097_v35 = vadd.f32 %v3631_v33, %v1093_v34 }
 0x6a1   : > { %3324 = vmatmul.msk.f32.vlgmr.msra.gmra.mxu2 %vm865_vm3, %v1097_v35 }
 0x724   : > { %v1126_v40 = vpop.f32.mrf.mxu2 }
 0x725   : > { %v1127_v41 = vadd.f32 %v3632_v39, %v1126_v40  ;;  %v3341_v39 = vld [vmem:[%s5151_s5 + $0x38] sm:$0xff]  ;;  %v3340_v40 = vld [vmem:[%s5151_s5 + $0x30] sm:$0xff] }
 0x727   : > { %v1129_v42 = vmax.f32 %v1127_v41, 0.0  ;;  %v3339_v41 = vld [vmem:[%s5151_s5 + $0x28] sm:$0xff] }
 0x729   : > { %3325 = vmatmul.msk.f32.vlgmr.msra.gmra.mxu3 %vm1142_vm10, %v1129_v42 }
 0x7ac   : > { %v1163_v44 = vpop.f32.mrf.mxu3 }
 0x7ad   : > { %v1164_v45 = vadd.f32 %v3633_v43, %v1163_v44  ;;  %v3338_v43 = vld [vmem:[%s5151_s5 + $0x20] sm:$0xff] }
 0x7af   : > { %v1166_v46 = vadd.f32 %v1164_v45, %v1097_v35 }
 0x7b1   : > { %v1169_v47 = vsel %vm865_vm3, %v1166_v46, 0.0 }
 0x7b2   : > { %1170 = vadd.xlane.f32.xlu0 %v1169_v47  ;;  %v3637_v47 = vld [vmem:[%s5086_s7 + $0x1] ss:$0 sm:$0xff] }
 0x825   : > { %v1171_v48 = vpop.xlane.xlu0 %1170 }
 0x826   : > { %v1172_v49 = vmul.f32 %v1171_v48, %v4445_v6 }
 0x828   : > { %v1173_v50 = vsub.f32 %v1166_v46, %v1172_v49 }
 0x82a   : > { %v1174_v51 = vmul.f32 %v1173_v50, %v1173_v50 }
 0x82c   : > { %v1175_v52 = vsel %vm865_vm3, %v1174_v51, 0.0 }
 0x82d   : > { %1176 = vadd.xlane.f32.xlu0 %v1175_v52 }
 0x8a0   : > { %v1177_v57 = vpop.xlane.xlu0 %1176 }
 0x8a1   : > { %v1178_v58 = vmul.f32 %v1177_v57, %v4445_v6  ;;  %v3347_v57 = vld [vmem:[%s5087_s8 + $0x38] sm:$0xff] }
 0x8a2   : > { %1461 = vmatpush.msrb.mxu3 %v3347_v57 }
 0x8a3   : > { %v1179_v59 = vadd.f32 1e-05, %v1178_v58  ;;  %v3346_v58 = vld [vmem:[%s5087_s8 + $0x30] sm:$0xff] }
 0x8a4   : > { %1462 = vmatpush.msrb.mxu3 %v3346_v58 }
 0x8a5   : > { %3667 = vrsqrt.f32 %v1179_v59  ;;  %vm1186_vm12 = vweird.f32 %v1179_v59 }
 0x8ab   : > { %v3668_v60 = vpop.eup %3667 }
 0x8ac   : > { %v1181_v61 = vmul.f32 %v3668_v60, %v1179_v59  ;;  %vm1187_vm11 = vweird.f32 %v3668_v60  ;;  %v3345_v59 = vld [vmem:[%s5087_s8 + $0x28] sm:$0xff] }
 0x8ad   : > { %vm1188_vm13 = vmor %vm1186_vm12, %vm1187_vm11  ;;  %1463 = vmatpush.msrb.mxu3 %v3345_v59 }
 0x8ae   : > { %v1182_v62 = vmul.f32 %v3668_v60, %v1181_v61  ;;  %v3357_v61 = vld [vmem:[%s5089_s10 + $0x78] sm:$0xff] }
 0x8b0   : > { %v1183_v63 = vmul.f32 0.5, %v1182_v62  ;;  %v3356_v62 = vld [vmem:[%s5089_s10 + $0x70] sm:$0xff] }
 0x8b2   : > { %v1184_v0 = vsub.f32 1.5, %v1183_v63  ;;  %v3355_v63 = vld [vmem:[%s5089_s10 + $0x68] sm:$0xff] }
 0x8b4   : > { %v1185_v1 = vmul.f32 %v3668_v60, %v1184_v0 }
 0x8b6   : > { %v1189_v3 = vsel %vm1188_vm13, %v3668_v60, %v1185_v1  ;;  %v3344_v60 = vld [vmem:[%s5087_s8 + $0x20] sm:$0xff]  ;;  %vm2445_vm13 = vcmask 57344  }
 0x8b7   : > { %v1190_v4 = vmul.f32 %v1189_v3, %v1173_v50  ;;  %1464 = vmatpush.msrb.mxu3 %v3344_v60 }
 0x8b9   : > { %v1194_v7 = vmul.f32 %v3634_v2, %v1190_v4  ;;  %v3354_v2 = vld [vmem:[%s5089_s10 + $0x60] sm:$0xff]  ;;  %v3353_v4 = vld [vmem:[%s5089_s10 + $0x58] sm:$0xff] }
 0x8bb   : > { %v4510_v8 = vadd.f32 %v3635_v5, %v1194_v7 }
 0x8bd   : > { %3331 = vmatmul.msk.f32.vlgmr.msrb.gmra.mxu0 %vm865_vm3, %v4510_v8 }
 0x93a   : > { %v1229_v10 = vpop.f32.mrf.mxu0 }
 0x93b   : > { %v1230_v11 = vadd.f32 %v3636_v9, %v1229_v10 }
 0x93d   : > { %1235 = vrot.lane.b32.xlu2 %v1230_v11, %s4096_s2  ;;  %1233 = vrot.lane.b32.xlu0 %v1230_v11, %s4095_s26 }
 0x997   : > { %v1236_v12 = vpop.permute.xlu2 %1235 }
 0x998   : > { %3332 = vmatpush.xpose.msk.msra.mxu1 %vm894_vm4, %v1236_v12  ;;  %v3638_v12 = vld [vmem:[#allocation7 + $0x1] ss:$0 sm:$0xff] }
 0x99b   : > { %3333 = vmatmul.msk.f32.vlgmr.msra.gmra.mxu1 %vm894_vm4, %v1230_v11 }
 0x9af   : > { %v1234_v13 = vpop.permute.xlu0 %1233 }
 0x9b0   : > { %1261 = vrot.lane.b32.xlu1 %v1234_v13, %s4096_s2 }
 0xa18   : > { %v1258_v14 = vpop.f32.mrf.mxu1 }
 0xa19   : > { %v1287_v15 = vmul.f32 0.25, %v1258_v14 }
 0xa1b   : > { %v1289_v16 = vsel %vm947_vm5, %v1287_v15, -inf }
 0xa1c   : > { %1290 = vmax.xlane.f32.xlu1 %v1289_v16 }
 0xa22   : > { %v1262_v17 = vpop.permute.xlu1 %1261 }
 0xa23   : > { %3334 = vmatpush.xpose.msk.msrb.mxu2 %vm894_vm4, %v1262_v17 }
 0xa26   : > { %3335 = vmatmul.msk.f32.vlgmr.msrb.gmra.mxu2 %vm894_vm4, %v1234_v13 }
 0xa27   : > { %1393 = vmatpush.msra.mxu2 %v3341_v39 }
 0xa29   : > { %1394 = vmatpush.msra.mxu2 %v3340_v40 }
 0xa2b   : > { %1395 = vmatpush.msra.mxu2 %v3339_v41 }
 0xa2d   : > { %1396 = vmatpush.msra.mxu2 %v3338_v43 }
 0xa8f   : > { %v1291_v18 = vpop.xlane.xlu1 %1290 }
 0xa90   : > { %v1295_v19 = vsub.f32 %v1287_v15, %v1291_v18  ;;  %v3639_v15 = vld [vmem:[#allocation8 + $0x1] ss:$0 sm:$0xff]  ;;  %v3352_v18 = vld [vmem:[%s5089_s10 + $0x50] sm:$0xff] }
 0xa92   : > { %v1297_v20 = vmul.f32 1.442695, %v1295_v19  ;;  %v3351_v19 = vld [vmem:[%s5089_s10 + $0x48] sm:$0xff] }
 0xa94   : > { %3669 = vpow2.f32 %v1297_v20  ;;  %v3350_v20 = vld [vmem:[%s5089_s10 + $0x40] sm:$0xff] }
 0xa9a   : > { %v3670_v21 = vpop.eup %3669 }
 0xa9b   : > { %v1301_v22 = vsel %vm947_vm5, %v3670_v21, 0.0 }
 0xa9c   : > { %1302 = vadd.xlane.f32.xlu1 %v1301_v22 }
 0xaa9   : > { %v1284_v23 = vpop.f32.mrf.mxu2 }
 0xaaa   : > { %v1288_v24 = vmul.f32 0.25, %v1284_v23 }
 0xaac   : > { %v1292_v25 = vsel %vm947_vm5, %v1288_v24, -inf }
 0xaad   : > { %1293 = vmax.xlane.f32.xlu0 %v1292_v25  ;;  %v3641_v25 = vld [vmem:[#allocation5 + $0x1] ss:$0 sm:$0xff] }
 0xab5   : > { %1311 = vrot.lane.b32.xlu1 %v1230_v11, %s4097_s27 }
 0xac1   : > { %1337 = vrot.lane.b32.xlu0 %v1234_v13, %s4097_s27 }
 0xb0f   : > { %v1303_v26 = vpop.xlane.xlu1 %1302 }
 0xb10   : > { %3671 = vrcp.f32 %v1303_v26 }
 0xb16   : > { %v3672_v30 = vpop.eup %3671 }
 0xb17   : > { %v1309_v31 = vmul.f32 %v3672_v30, %v3670_v21  ;;  %v3640_v21 = vld [vmem:[%s5088_s9 + $0x1] ss:$0 sm:$0xff] }
 0xb20   : > { %v1294_v27 = vpop.xlane.xlu0 %1293 }
 0xb21   : > { %v1296_v28 = vsub.f32 %v1288_v24, %v1294_v27 }
 0xb23   : > { %v1299_v29 = vmul.f32 1.442695, %v1296_v28 }
 0xb25   : > { %3673 = vpow2.f32 %v1299_v29 }
 0xb27   : > { %v1312_v32 = vpop.permute.xlu1 %1311 }
 0xb28   : > { %1332 = vmatpush.msra.mxu0 %v1312_v32 }
 0xb29   : > { %3336 = vmatmul.msk.f32.vlgmr.msra.gmra.mxu0 %vm947_vm5, %v1309_v31 }
 0xb2a   : > { %1495 = vmatpush.msrb.mxu0 %v3357_v61 }
 0xb2b   : > { %v3674_v33 = vpop.eup %3673 }
 0xb2c   : > { %v1304_v34 = vsel %vm947_vm5, %v3674_v33, 0.0  ;;  %1496 = vmatpush.msrb.mxu0 %v3356_v62 }
 0xb2d   : > { %1305 = vadd.xlane.f32.xlu2 %v1304_v34 }
 0xb2e   : > { %1497 = vmatpush.msrb.mxu0 %v3355_v63 }
 0xb30   : > { %1498 = vmatpush.msrb.mxu0 %v3354_v2 }
 0xb32   : > { %1499 = vmatpush.msrb.mxu0 %v3353_v4 }
 0xb33   : > { %v1338_v35 = vpop.permute.xlu0 %1337 }
 0xb34   : > { %1358 = vmatpush.msrb.mxu1 %v1338_v35  ;;  %1500 = vmatpush.msrb.mxu0 %v3352_v18  ;;  %v3363_v35 = vld [vmem:[%s5147_s0 + $0x58] sm:$0xff] }
 0xb36   : > { %1501 = vmatpush.msrb.mxu0 %v3351_v19  ;;  %1567 = vmatpush.msra.mxu1 %v3363_v35 }
 0xb38   : > { %1502 = vmatpush.msrb.mxu0 %v3350_v20 }
 0xba0   : > { %v1306_v36 = vpop.xlane.xlu2 %1305 }
 0xba1   : > { %3675 = vrcp.f32 %v1306_v36  ;;  %v3362_v36 = vld [vmem:[%s5147_s0 + $0x50] sm:$0xff] }
 0xba2   : > { %1568 = vmatpush.msra.mxu1 %v3362_v36 }
 0xba6   : > { %v1334_v44 = vpop.f32.mrf.mxu0 }
 0xba7   : > { %v3676_v37 = vpop.eup %3675 }
 0xba8   : > { %v1310_v38 = vmul.f32 %v3676_v37, %v3674_v33  ;;  %v3361_v37 = vld [vmem:[%s5147_s0 + $0x48] sm:$0xff] }
 0xba9   : > { %1569 = vmatpush.msra.mxu1 %v3361_v37 }
 0xbaa   : > { %3337 = vmatmul.msk.f32.vlgmr.msrb.gmra.mxu1 %vm947_vm5, %v1310_v38  ;;  %v3360_v38 = vld [vmem:[%s5147_s0 + $0x40] sm:$0xff] }
 0xbab   : > { %1570 = vmatpush.msra.mxu1 %v3360_v38 }
 0xc27   : > { %v1360_v42 = vpop.f32.mrf.mxu1 }
 0xc28   : > { %1364 = vrot.lane.b32.xlu2 %v1360_v42, %s4098_s3 }
 0xc82   : > { %v1365_v45 = vpop.permute.xlu2 %1364 }
 0xc83   : > { %v1367_v46 = vsel %vm894_vm4, %v1334_v44, %v1365_v45 }
 0xc84   : > { %3343 = vmatmul.msk.f32.vlgmr.msra.gmra.mxu2 %vm865_vm3, %v1367_v46 }
 0xd07   : > { %v1398_v48 = vpop.f32.mrf.mxu2 }
 0xd08   : > { %v1399_v49 = vadd.f32 %v3637_v47, %v1398_v48  ;;  %v3642_v48 = vld [vmem:[#allocation10 + $0x1] ss:$0 sm:$0xff] }
 0xd0a   : > { %v1401_v50 = vadd.f32 %v1399_v49, %v4510_v8 }
 0xd0c   : > { %v1406_v51 = vsel %vm865_vm3, %v1401_v50, 0.0 }
 0xd0d   : > { %1407 = vadd.xlane.f32.xlu0 %v1406_v51  ;;  %v3643_v51 = vld [vmem:[%s5094_s15 + $0x1] ss:$0 sm:$0xff] }
 0xd80   : > { %v1408_v52 = vpop.xlane.xlu0 %1407 }
 0xd81   : > { %v1409_v53 = vmul.f32 %v1408_v52, %v4445_v6 }
 0xd83   : > { %v1410_v54 = vsub.f32 %v1401_v50, %v1409_v53 }
 0xd85   : > { %v1411_v55 = vmul.f32 %v1410_v54, %v1410_v54 }
 0xd87   : > { %v1412_v56 = vsel %vm865_vm3, %v1411_v55, 0.0 }
 0xd88   : > { %1413 = vadd.xlane.f32.xlu1 %v1412_v56 }
 0xdfb   : > { %v1414_v0 = vpop.xlane.xlu1 %1413 }
 0xdfc   : > { %v1415_v1 = vmul.f32 %v1414_v0, %v4445_v6 }
 0xdfe   : > { %v1416_v3 = vadd.f32 1e-05, %v1415_v1 }
 0xe00   : > { %3677 = vrsqrt.f32 %v1416_v3  ;;  %vm1423_vm15 = vweird.f32 %v1416_v3 }
 0xe06   : > { %v3678_v5 = vpop.eup %3677 }
 0xe07   : > { %v1418_v7 = vmul.f32 %v3678_v5, %v1416_v3  ;;  %vm1424_vm14 = vweird.f32 %v3678_v5 }
 0xe08   : > { %vm1425_vm0 = vmor %vm1423_vm15, %vm1424_vm14  ;;  %vm3098_vm14 = vcmask 1042434   ;;  %vm3101_vm15 = vcmask 1043459  }
 0xe09   : > { %v1419_v8 = vmul.f32 %v3678_v5, %v1418_v7 }
 0xe0b   : > { %v1420_v9 = vmul.f32 0.5, %v1419_v8 }
 0xe0d   : > { %v1421_v10 = vsub.f32 1.5, %v1420_v9 }
 0xe0f   : > { %v1422_v11 = vmul.f32 %v3678_v5, %v1421_v10 }
 0xe11   : > { %v1426_v13 = vsel %vm1425_vm0, %v3678_v5, %v1422_v11  ;;  %vm3104_vm0 = vcmask 1044484  }
 0xe12   : > { %v1427_v14 = vmul.f32 %v1426_v13, %v1410_v54  ;;  %v3644_v54 = vld [vmem:[%s5149_s24 + $0x2] ss:$0 sm:$0xff] }
 0xe14   : > { %v1431_v16 = vmul.f32 %v3638_v12, %v1427_v14 }
 0xe16   : > { %v1435_v17 = vadd.f32 %v3639_v15, %v1431_v16 }
 0xe18   : > { %3349 = vmatmul.msk.f32.vlgmr.msrb.gmra.mxu3 %vm865_vm3, %v1435_v17 }
 0xe9b   : > { %v1466_v22 = vpop.f32.mrf.mxu3 }
 0xe9c   : > { %v1467_v23 = vadd.f32 %v3640_v21, %v1466_v22  ;;  %v3375_v21 = vld [vmem:[%s5151_s5 + $0x58] sm:$0xff]  ;;  %v3374_v22 = vld [vmem:[%s5151_s5 + $0x50] sm:$0xff] }
 0xe9e   : > { %v1469_v24 = vmax.f32 %v1467_v23, 0.0  ;;  %v3373_v23 = vld [vmem:[%s5151_s5 + $0x48] sm:$0xff] }
 0xea0   : > { %3358 = vmatmul.msk.f32.vlgmr.msrb.gmra.mxu0 %vm1142_vm10, %v1469_v24 }
 0xf1d   : > { %v1504_v26 = vpop.f32.mrf.mxu0 }
 0xf1e   : > { %v1505_v27 = vadd.f32 %v3641_v25, %v1504_v26  ;;  %v3372_v25 = vld [vmem:[%s5151_s5 + $0x40] sm:$0xff] }
 0xf20   : > { %v1507_v28 = vadd.f32 %v1505_v27, %v1435_v17 }
 0xf22   : > { %v1512_v29 = vsel %vm865_vm3, %v1507_v28, 0.0 }
 0xf23   : > { %1513 = vadd.xlane.f32.xlu2 %v1512_v29  ;;  %v3645_v29 = vld [vmem:[%s5086_s7 + $0x2] ss:$0 sm:$0xff] }
 0xf96   : > { %v1514_v30 = vpop.xlane.xlu2 %1513 }
 0xf97   : > { %v1515_v31 = vmul.f32 %v1514_v30, %v4445_v6 }
 0xf99   : > { %v1516_v32 = vsub.f32 %v1507_v28, %v1515_v31 }
 0xf9b   : > { %v1517_v33 = vmul.f32 %v1516_v32, %v1516_v32 }
 0xf9d   : > { %v1518_v34 = vsel %vm865_vm3, %v1517_v33, 0.0 }
 0xf9e   : > { %1519 = vadd.xlane.f32.xlu0 %v1518_v34 }
0x1011   : > { %v1520_v39 = vpop.xlane.xlu0 %1519 }
0x1012   : > { %v1521_v40 = vmul.f32 %v1520_v39, %v4445_v6  ;;  %v3381_v39 = vld [vmem:[%s5087_s8 + $0x58] sm:$0xff] }
0x1013   : > { %1804 = vmatpush.msra.mxu0 %v3381_v39 }
0x1014   : > { %v1522_v41 = vadd.f32 1e-05, %v1521_v40  ;;  %v3380_v40 = vld [vmem:[%s5087_s8 + $0x50] sm:$0xff] }
0x1015   : > { %1805 = vmatpush.msra.mxu0 %v3380_v40 }
0x1016   : > { %3679 = vrsqrt.f32 %v1522_v41  ;;  %vm1529_vm2 = vweird.f32 %v1522_v41 }
0x101c   : > { %v3680_v42 = vpop.eup %3679 }
0x101d   : > { %v1524_v43 = vmul.f32 %v3680_v42, %v1522_v41  ;;  %vm1530_vm1 = vweird.f32 %v3680_v42  ;;  %v3379_v41 = vld [vmem:[%s5087_s8 + $0x48] sm:$0xff] }
0x101e   : > { %vm1531_vm6 = vmor %vm1529_vm2, %vm1530_vm1  ;;  %1806 = vmatpush.msra.mxu0 %v3379_v41  ;;  %vm3107_vm1 = vcmask 1045509   ;;  %vm3110_vm2 = vcmask 1046534  }
0x101f   : > { %v1525_v44 = vmul.f32 %v3680_v42, %v1524_v43  ;;  %v3391_v43 = vld [vmem:[%s5089_s10 + $0xb8] sm:$0xff] }
0x1021   : > { %v1526_v45 = vmul.f32 0.5, %v1525_v44  ;;  %v3390_v44 = vld [vmem:[%s5089_s10 + $0xb0] sm:$0xff] }
0x1023   : > { %v1527_v46 = vsub.f32 1.5, %v1526_v45  ;;  %v3389_v45 = vld [vmem:[%s5089_s10 + $0xa8] sm:$0xff] }
0x1025   : > { %v1528_v47 = vmul.f32 %v3680_v42, %v1527_v46 }
0x1027   : > { %v1532_v49 = vsel %vm1531_vm6, %v3680_v42, %v1528_v47  ;;  %v3378_v42 = vld [vmem:[%s5087_s8 + $0x40] sm:$0xff]  ;;  %vm3113_vm6 = vcmask 1047559  }
0x1028   : > { %v1533_v50 = vmul.f32 %v1532_v49, %v1516_v32  ;;  %1807 = vmatpush.msra.mxu0 %v3378_v42 }
0x102a   : > { %v1537_v52 = vmul.f32 %v3642_v48, %v1533_v50  ;;  %v3388_v48 = vld [vmem:[%s5089_s10 + $0xa0] sm:$0xff]  ;;  %v3387_v50 = vld [vmem:[%s5089_s10 + $0x98] sm:$0xff] }
0x102c   : > { %v4615_v53 = vadd.f32 %v3643_v51, %v1537_v52 }
0x102e   : > { %3365 = vmatmul.msk.f32.vlgmr.msra.gmra.mxu1 %vm865_vm3, %v4615_v53 }
0x10ab   : > { %v1572_v55 = vpop.f32.mrf.mxu1 }
0x10ac   : > { %v1573_v56 = vadd.f32 %v3644_v54, %v1572_v55 }
0x10ae   : > { %1578 = vrot.lane.b32.xlu2 %v1573_v56, %s4096_s2  ;;  %1576 = vrot.lane.b32.xlu0 %v1573_v56, %s4095_s26 }
0x1108   : > { %v1579_v57 = vpop.permute.xlu2 %1578 }
0x1109   : > { %3366 = vmatpush.xpose.msk.msrb.mxu2 %vm894_vm4, %v1579_v57  ;;  %v3646_v57 = vld [vmem:[#allocation7 + $0x2] ss:$0 sm:$0xff] }
0x110c   : > { %3367 = vmatmul.msk.f32.vlgmr.msrb.gmra.mxu2 %vm894_vm4, %v1573_v56 }
0x1120   : > { %v1577_v58 = vpop.permute.xlu0 %1576 }
0x1121   : > { %1604 = vrot.lane.b32.xlu1 %v1577_v58, %s4096_s2 }
0x118f   : > { %v1601_v59 = vpop.f32.mrf.mxu2 }
0x1190   : > { %v1630_v60 = vmul.f32 0.25, %v1601_v59 }
0x1192   : > { %v1632_v61 = vsel %vm947_vm5, %v1630_v60, -inf }
0x1193   : > { %1633 = vmax.xlane.f32.xlu1 %v1632_v61  ;;  %v1605_v62 = vpop.permute.xlu1 %1604 }
0x1194   : > { %3368 = vmatpush.xpose.msk.msra.mxu3 %vm894_vm4, %v1605_v62 }
0x1197   : > { %3369 = vmatmul.msk.f32.vlgmr.msra.gmra.mxu3 %vm894_vm4, %v1577_v58 }
0x1198   : > { %1736 = vmatpush.msrb.mxu3 %v3375_v21 }
0x119a   : > { %1737 = vmatpush.msrb.mxu3 %v3374_v22 }
0x119c   : > { %1738 = vmatpush.msrb.mxu3 %v3373_v23  ;;  %v1927_v23 = vld [vmem:[#allocation2 + $0x18] sm:$0xff] }
0x119e   : > { %1739 = vmatpush.msrb.mxu3 %v3372_v25  ;;  %v1928_v25 = vld [vmem:[#allocation2 + $0x20] sm:$0xff] }
0x1206   : > { %v1634_v63 = vpop.xlane.xlu1 %1633 }
0x1207   : > { %v1638_v0 = vsub.f32 %v1630_v60, %v1634_v63  ;;  %v3647_v60 = vld [vmem:[#allocation8 + $0x2] ss:$0 sm:$0xff]  ;;  %v3386_v63 = vld [vmem:[%s5089_s10 + $0x90] sm:$0xff] }
0x1209   : > { %v1640_v1 = vmul.f32 1.442695, %v1638_v0  ;;  %v3385_v0 = vld [vmem:[%s5089_s10 + $0x88] sm:$0xff] }
0x120b   : > { %3681 = vpow2.f32 %v1640_v1  ;;  %v3384_v1 = vld [vmem:[%s5089_s10 + $0x80] sm:$0xff] }
0x1211   : > { %v3682_v2 = vpop.eup %3681 }
0x1212   : > { %v1644_v3 = vsel %vm947_vm5, %v3682_v2, 0.0 }
0x1213   : > { %1645 = vadd.xlane.f32.xlu1 %v1644_v3 }
0x121a   : > { %v1627_v4 = vpop.f32.mrf.mxu3 }
0x121b   : > { %v1631_v5 = vmul.f32 0.25, %v1627_v4 }
0x121d   : > { %v1635_v7 = vsel %vm947_vm5, %v1631_v5, -inf }
0x121e   : > { %1636 = vmax.xlane.f32.xlu0 %v1635_v7  ;;  %v3649_v7 = vld [vmem:[#allocation5 + $0x2] ss:$0 sm:$0xff] }
0x1232   : > { %1680 = vrot.lane.b32.xlu0 %v1577_v58, %s4097_s27 }
0x1286   : > { %v1646_v14 = vpop.xlane.xlu1 %1645 }
0x1291   : > { %v1637_v8 = vpop.xlane.xlu0 %1636 }
0x1292   : > { %v1639_v9 = vsub.f32 %v1631_v5, %v1637_v8 }
0x1294   : > { %v1642_v10 = vmul.f32 1.442695, %v1639_v9 }
0x1296   : > { %3683 = vpow2.f32 %v1642_v10 }
0x1297   : > { %3685 = vrcp.f32 %v1646_v14  ;;  %v1933_v14 = vld [vmem:[#allocation13 + $0x8] sm:$0xff] }
0x129c   : > { %v3684_v11 = vpop.eup %3683 }
0x129d   : > { %v1647_v12 = vsel %vm947_vm5, %v3684_v11, 0.0  ;;  %v3686_v16 = vpop.eup %3685 }
0x129e   : > { %1648 = vadd.xlane.f32.xlu2 %v1647_v12  ;;  %v1652_v18 = vmul.f32 %v3686_v16, %v3682_v2  ;;  %v3648_v2 = vld [vmem:[%s5088_s9 + $0x2] ss:$0 sm:$0xff]  ;;  %v1935_v12 = vld [vmem:[#allocation13 + $0x18] sm:$0xff] }
0x129f   : > { %1976 = vmatpush.msra.mxu3 %v1935_v12  ;;  %v1924_v16 = vld [vmem:[#allocation2] sm:$0xff] }
0x12a4   : > { %v1681_v13 = vpop.permute.xlu0 %1680 }
0x12a5   : > { %1701 = vmatpush.msra.mxu2 %v1681_v13  ;;  %v1934_v13 = vld [vmem:[#allocation13 + $0x10] sm:$0xff] }
0x12a6   : > { %1977 = vmatpush.msra.mxu3 %v1934_v13 }
0x12a8   : > { %1978 = vmatpush.msra.mxu3 %v1933_v14 }
0x12b6   : > { %1654 = vrot.lane.b32.xlu2 %v1573_v56, %s4097_s27 }
0x1311   : > { %v1649_v15 = vpop.xlane.xlu2 %1648 }
0x1312   : > { %3687 = vrcp.f32 %v1649_v15  ;;  %v1932_v15 = vld [vmem:[#allocation13] sm:$0xff] }
0x1313   : > { %1979 = vmatpush.msra.mxu3 %v1932_v15 }
0x1318   : > { %v3688_v17 = vpop.eup %3687 }
0x1319   : > { %v1653_v19 = vmul.f32 %v3688_v17, %v3684_v11  ;;  %v1655_v20 = vpop.permute.xlu2 %1654  ;;  %v1925_v17 = vld [vmem:[#allocation2 + $0x8] sm:$0xff] }
0x131a   : > { %1675 = vmatpush.msrb.mxu1 %v1655_v20 }
0x131b   : > { %3370 = vmatmul.msk.f32.vlgmr.msrb.gmra.mxu1 %vm947_vm5, %v1652_v18  ;;  %3371 = vmatmul.msk.f32.vlgmr.msra.gmra.mxu2 %vm947_vm5, %v1653_v19  ;;  %v1926_v18 = vld [vmem:[#allocation2 + $0x10] sm:$0xff] }
0x131c   : > { %1838 = vmatpush.msra.mxu1 %v3391_v43 }
0x131e   : > { %1839 = vmatpush.msra.mxu1 %v3390_v44 }
0x1320   : > { %1840 = vmatpush.msra.mxu1 %v3389_v45 }
0x1322   : > { %1841 = vmatpush.msra.mxu1 %v3388_v48  ;;  %v3650_v48 = vld [vmem:[#allocation10 + $0x2] ss:$0 sm:$0xff] }
0x1324   : > { %1842 = vmatpush.msra.mxu1 %v3387_v50 }
0x1326   : > { %1843 = vmatpush.msra.mxu1 %v3386_v63 }
0x1328   : > { %1844 = vmatpush.msra.mxu1 %v3385_v0 }
0x132a   : > { %1845 = vmatpush.msra.mxu1 %v3384_v1 }
0x1398   : > { %v1677_v26 = vpop.f32.mrf.mxu1 }
0x139e   : > { %v1703_v24 = vpop.f32.mrf.mxu2 }
0x139f   : > { %1707 = vrot.lane.b32.xlu0 %v1703_v24, %s4098_s3 }
0x1411   : > { %v1708_v27 = vpop.permute.xlu0 %1707 }
0x1412   : > { %v1710_v28 = vsel %vm894_vm4, %v1677_v26, %v1708_v27  ;;  %v1929_v26 = vld [vmem:[#allocation2 + $0x28] sm:$0xff]  ;;  %v1930_v27 = vld [vmem:[#allocation2 + $0x30] sm:$0xff] }
0x1413   : > { %3377 = vmatmul.msk.f32.vlgmr.msrb.gmra.mxu3 %vm865_vm3, %v1710_v28  ;;  %v1888_v28 = vld [vmem:[#allocation11 + $0x18] sm:$0xff] }
0x1414   : > { %1908 = vmatpush.msrb.mxu2 %v1888_v28 }
0x141b   : > { %3395 = vmatmul.msk.f32.vlgmr.msra.gmra.mxu3 %vm865_vm3, %v1924_v16 }
0x1423   : > { %3396 = vmatmul.msk.f32.gmra.mxu3 %vm865_vm3, %v1925_v17 }
0x142b   : > { %3397 = vmatmul.msk.f32.gmra.mxu3 %vm865_vm3, %v1926_v18 }
0x1433   : > { %3398 = vmatmul.msk.f32.gmra.mxu3 %vm865_vm3, %v1927_v23 }
0x143b   : > { %3399 = vmatmul.msk.f32.gmra.mxu3 %vm865_vm3, %v1928_v25 }
0x1443   : > { %3400 = vmatmul.msk.f32.gmra.mxu3 %vm865_vm3, %v1929_v26 }
0x144b   : > { %3401 = vmatmul.msk.f32.gmra.mxu3 %vm865_vm3, %v1930_v27 }
0x1496   : > { %v1741_v30 = vpop.f32.mrf.mxu3 }
0x1497   : > { %v1742_v31 = vadd.f32 %v3645_v29, %v1741_v30  ;;  %v1887_v29 = vld [vmem:[#allocation11 + $0x10] sm:$0xff]  ;;  %v1886_v30 = vld [vmem:[#allocation11 + $0x8] sm:$0xff] }
0x1498   : > { %1909 = vmatpush.msrb.mxu2 %v1887_v29 }
0x1499   : > { %v1744_v32 = vadd.f32 %v1742_v31, %v4615_v53  ;;  %v1885_v31 = vld [vmem:[#allocation11] sm:$0xff] }
0x149a   : > { %1910 = vmatpush.msrb.mxu2 %v1886_v30 }
0x149b   : > { %v1749_v33 = vsel %vm865_vm3, %v1744_v32, 0.0 }
0x149c   : > { %1750 = vadd.xlane.f32.xlu1 %v1749_v33  ;;  %1911 = vmatpush.msrb.mxu2 %v1885_v31  ;;  %v3652_v33 = vld [vmem:[%s5098_s19] ss:$0 sm:$0xff] }
0x150f   : > { %v1751_v34 = vpop.xlane.xlu1 %1750 }
0x1510   : > { %v1752_v35 = vmul.f32 %v1751_v34, %v4445_v6  ;;  %v1981_v34 = vpop.f32.mrf.mxu3 }
0x1512   : > { %v1753_v36 = vsub.f32 %v1744_v32, %v1752_v35  ;;  %v1931_v32 = vld [vmem:[#allocation2 + $0x38] sm:$0xff]  ;;  %v4715_v35 = vadd.f32 %v3652_v33, %v1981_v34 }
0x1513   : > { %3402 = vmatmul.msk.f32.gmra.mxu3 %vm865_vm3, %v1931_v32 }
0x1514   : > { %v1754_v37 = vmul.f32 %v1753_v36, %v1753_v36  ;;  %2029 = vrot.lane.b32.xlu2 %v4715_v35, %s4095_s26  ;;  %3403 = vmatpush.xpose.msk.msrb.mxu0 %vm894_vm4, %v4715_v35 }
0x1516   : > { %v1755_v38 = vsel %vm865_vm3, %v1754_v37, 0.0 }
0x1517   : > { %1756 = vadd.xlane.f32.xlu0 %v1755_v38 }
0x1518   : > { %v1984_v39 = vpop.f32.mrf.mxu3 }
0x1519   : > { %v4722_v40 = vadd.f32 %v3652_v33, %v1984_v39 }
0x151b   : > { %3405 = vmatpush.xpose.msk.msra.mxu2 %vm894_vm4, %v4722_v40 }
0x158a   : > { %v1757_v46 = vpop.xlane.xlu0 %1756 }
0x158b   : > { %v1758_v47 = vmul.f32 %v1757_v46, %v4445_v6 }
0x158d   : > { %v1759_v49 = vadd.f32 1e-05, %v1758_v47 }
0x158f   : > { %3689 = vrsqrt.f32 %v1759_v49  ;;  %vm1766_vm8 = vweird.f32 %v1759_v49 }
0x1595   : > { %v3690_v51 = vpop.eup %3689 }
0x1596   : > { %v1761_v52 = vmul.f32 %v3690_v51, %v1759_v49  ;;  %vm1767_vm7 = vweird.f32 %v3690_v51 }
0x1597   : > { %vm1768_vm9 = vmor %vm1766_vm8, %vm1767_vm7 }
0x1598   : > { %v1762_v53 = vmul.f32 %v3690_v51, %v1761_v52 }
0x159a   : > { %v1763_v54 = vmul.f32 0.5, %v1762_v53  ;;  %v3651_v53 = vld [vmem:[%s5094_s15 + $0x2] ss:$0 sm:$0xff] }
0x159c   : > { %v1764_v55 = vsub.f32 1.5, %v1763_v54 }
0x159e   : > { %v1765_v56 = vmul.f32 %v3690_v51, %v1764_v55 }
0x15a0   : > { %v1769_v58 = vsel %vm1768_vm9, %v3690_v51, %v1765_v56 }
0x15a1   : > { %v1770_v59 = vmul.f32 %v1769_v58, %v1753_v36 }
0x15a3   : > { %v1774_v61 = vmul.f32 %v3646_v57, %v1770_v59 }
0x15a5   : > { %v1778_v62 = vadd.f32 %v3647_v60, %v1774_v61 }
0x15a7   : > { %3383 = vmatmul.msk.f32.vlgmr.msra.gmra.mxu0 %vm865_vm3, %v1778_v62 }
0x1624   : > { %v1809_v3 = vpop.f32.mrf.mxu0 }
0x1625   : > { %v1810_v4 = vadd.f32 %v3648_v2, %v1809_v3 }
0x1627   : > { %v1812_v5 = vmax.f32 %v1810_v4, 0.0 }
0x1629   : > { %3392 = vmatmul.msk.f32.vlgmr.msra.gmra.mxu1 %vm1142_vm10, %v1812_v5 }
0x16a6   : > { %v1847_v8 = vpop.f32.mrf.mxu1 }
0x16a7   : > { %v1848_v9 = vadd.f32 %v3649_v7, %v1847_v8 }
0x16a9   : > { %v1850_v10 = vadd.f32 %v1848_v9, %v1778_v62  ;;  %v3653_v62 = vld [vmem:[%s5096_s17] ss:$0 sm:$0xff]  ;;  %v4770_v9 = vpop.permute.xlu2 %2029 }
0x16ab   : > { %v1855_v11 = vsel %vm865_vm3, %v1850_v10, 0.0 }
0x16ac   : > { %1856 = vadd.xlane.f32.xlu1 %v1855_v11 }
0x171f   : > { %v1857_v19 = vpop.xlane.xlu1 %1856 }
0x1720   : > { %v1858_v20 = vmul.f32 %v1857_v19, %v4445_v6 }
0x1722   : > { %v1859_v21 = vsub.f32 %v1850_v10, %v1858_v20 }
0x1724   : > { %v1860_v22 = vmul.f32 %v1859_v21, %v1859_v21 }
0x1726   : > { %v1861_v24 = vsel %vm865_vm3, %v1860_v22, 0.0 }
0x1727   : > { %1862 = vadd.xlane.f32.xlu1 %v1861_v24 }
0x1740   : > { %2031 = vrot.lane.b32.xlu1 %v4722_v40, %s4095_s26 }
0x179a   : > { %v1863_v36 = vpop.xlane.xlu1 %1862 }
0x179b   : > { %v1864_v37 = vmul.f32 %v1863_v36, %v4445_v6  ;;  %v1987_v6 = vpop.f32.mrf.mxu3 }
0x179c   : > { %v4728_v44 = vadd.f32 %v3652_v33, %v1987_v6 }
0x179d   : > { %v1865_v38 = vadd.f32 1e-05, %v1864_v37 }
0x179e   : > { %2033 = vrot.lane.b32.xlu2 %v4728_v44, %s4095_s26  ;;  %3407 = vmatpush.xpose.msk.msra.mxu0 %vm894_vm4, %v4728_v44  ;;  %v3593_v20 = vpack.i.bf16 %v4728_v44, %v4722_v40 }
0x179f   : > { %3691 = vrsqrt.f32 %v1865_v38  ;;  %vm1872_vm11 = vweird.f32 %v1865_v38 }
0x17a3   : > { %v1990_v49 = vpop.f32.mrf.mxu3 }
0x17a4   : > { %v4734_v51 = vadd.f32 %v3652_v33, %v1990_v49 }
0x17a5   : > { %v3692_v41 = vpop.eup %3691 }
0x17a6   : > { %v1867_v42 = vmul.f32 %v3692_v41, %v1865_v38  ;;  %vm1873_vm10 = vweird.f32 %v3692_v41  ;;  %2035 = vrot.lane.b32.xlu1 %v4734_v51, %s4095_s26  ;;  %3409 = vmatpush.xpose.msk.msrb.mxu1 %vm894_vm4, %v4734_v51  ;;  %v3588_v19 = vpack.i.bf16 %v4734_v51, %v4715_v35 }
0x17a7   : > { %vm1874_vm12 = vmor %vm1872_vm11, %vm1873_vm10 }
0x17a8   : > { %v1868_v43 = vmul.f32 %v3692_v41, %v1867_v42 }
0x17aa   : > { %v1869_v45 = vmul.f32 0.5, %v1868_v43 }
0x17ab   : > { %v1993_v56 = vpop.f32.mrf.mxu3 }
0x17ac   : > { %v1870_v46 = vsub.f32 1.5, %v1869_v45  ;;  %v4744_v57 = vadd.f32 %v3652_v33, %v1993_v56 }
0x17ae   : > { %v1871_v47 = vmul.f32 %v3692_v41, %v1870_v46  ;;  %2037 = vrot.lane.b32.xlu2 %v4744_v57, %s4095_s26 }
0x17b0   : > { %v1875_v50 = vsel %vm1874_vm12, %v3692_v41, %v1871_v47 }
0x17b1   : > { %v1876_v52 = vmul.f32 %v1875_v50, %v1859_v21 }
0x17b2   : > { %v4772_v10 = vpop.permute.xlu1 %2031 }
0x17b3   : > { %v1880_v54 = vmul.f32 %v3650_v48, %v1876_v52  ;;  %v1996_v58 = vpop.f32.mrf.mxu3  ;;  %v3613_v12 = vpack.i.bf16 %v4772_v10, %v4770_v9 }
0x17b4   : > { %v4750_v59 = vadd.f32 %v3652_v33, %v1996_v58 }
0x17b5   : > { %v1884_v55 = vadd.f32 %v3651_v53, %v1880_v54 }
0x17b6   : > { %2039 = vrot.lane.b32.xlu1 %v4750_v59, %s4095_s26 }
0x17b7   : > { %3394 = vmatmul.msk.f32.vlgmr.msrb.gmra.mxu2 %vm865_vm3, %v1884_v55 }
0x17b8   : > { %3411 = vmatpush.xpose.msk.msrb.mxu2 %vm894_vm4, %v4744_v57 }
0x17bb   : > { %v1999_v60 = vpop.f32.mrf.mxu3 }
0x17bc   : > { %v2000_v61 = vadd.f32 %v3652_v33, %v1999_v60 }
0x17be   : > { %2041 = vrot.lane.b32.xlu2 %v2000_v61, %s4095_s26  ;;  %3415 = vmatpush.xpose.msk.msra.mxu1 %vm894_vm4, %v2000_v61 }
0x17c3   : > { %v2002_v1 = vpop.f32.mrf.mxu3 }
0x17c4   : > { %v2003_v5 = vadd.f32 %v3652_v33, %v2002_v1 }
0x17c6   : > { %v3598_v21 = vpack.i.bf16 %v2003_v5, %v2000_v61 }
0x17f8   : > { %v4786_v13 = vpop.permute.xlu2 %2033 }
0x1808   : > { %v4799_v17 = vpop.permute.xlu2 %2037 }
0x1818   : > { %v4788_v14 = vpop.permute.xlu1 %2035  ;;  %v4814_v22 = vpop.permute.xlu2 %2041 }
0x1819   : > { %v3608_v16 = vpack.i.bf16 %v4788_v14, %v4786_v13 }
0x1828   : > { %v4801_v18 = vpop.permute.xlu1 %2039 }
0x183a   : > { %v1913_v63 = vpop.f32.mrf.mxu2 }
0x183b   : > { %v1914_v0 = vadd.f32 %v3653_v62, %v1913_v63 }
0x183d   : > { %2005 = vrot.lane.b32.xlu2 %v1914_v0, %s4095_s26  ;;  %3404 = vmatmul.msk.f32.vlgmr.msrb.gmra.mxu0 %vm894_vm4, %v1914_v0  ;;  %v1919_v2 = vrot.slane %v1914_v0, 3  ;;  %v1918_v3 = vrot.slane %v1914_v0, 2  ;;  %v1917_v4 = vrot.slane %v1914_v0, 1  ;;  %v1921_v7 = vrot.slane %v1914_v0, 5 }
0x183e   : > { %3413 = vmatpush.xpose.msk.msrb.mxu0 %vm894_vm4, %v4750_v59  ;;  %v1922_v8 = vrot.slane %v1914_v0, 6  ;;  %v1920_v11 = vrot.slane %v1914_v0, 4  ;;  %v1923_v15 = vrot.slane %v1914_v0, 7 }
0x183f   : > { %2011 = vrot.lane.b32.xlu1 %v1919_v2, %s4095_s26  ;;  %3410 = vmatmul.msk.f32.vlgmr.msrb.gmra.mxu1 %vm894_vm4, %v1919_v2 }
0x1840   : > { %2009 = vrot.lane.b32.xlu0 %v1918_v3, %s4095_s26  ;;  %3406 = vmatmul.msk.f32.vlgmr.msra.gmra.mxu2 %vm894_vm4, %v1917_v4 }
0x1841   : > { %3417 = vmatpush.xpose.msk.msra.mxu2 %vm894_vm4, %v2003_v5  ;;  %3421 = vmatpush.xpose.msk.msrb.mxu1 %vm894_vm4, %v4772_v10 }
0x1845   : > { %3408 = vmatmul.msk.f32.vlgmr.msra.gmra.mxu0 %vm894_vm4, %v1918_v3  ;;  %2007 = vrot.lane.b32.xlu2 %v1917_v4, %s4095_s26 }
0x1846   : > { %3419 = vmatpush.xpose.msk.msra.mxu0 %vm894_vm4, %v4770_v9 }
0x1847   : > { %2015 = vrot.lane.b32.xlu1 %v1921_v7, %s4095_s26  ;;  %3416 = vmatmul.msk.f32.vlgmr.msra.gmra.mxu1 %vm894_vm4, %v1922_v8 }
0x1848   : > { %2043 = vrot.lane.b32.xlu0 %v2003_v5, %s4095_s26  ;;  %3412 = vmatmul.msk.f32.vlgmr.msrb.gmra.mxu2 %vm894_vm4, %v1920_v11 }
0x1849   : > { %3423 = vmatpush.xpose.msk.msrb.mxu2 %vm894_vm4, %v4786_v13  ;;  %3427 = vmatpush.xpose.msk.msra.mxu1 %vm894_vm4, %v4799_v17 }
0x184d   : > { %3414 = vmatmul.msk.f32.vlgmr.msrb.gmra.mxu0 %vm894_vm4, %v1921_v7  ;;  %2013 = vrot.lane.b32.xlu2 %v1920_v11, %s4095_s26 }
0x184e   : > { %3425 = vmatpush.xpose.msk.msrb.mxu0 %vm894_vm4, %v4788_v14 }
0x1850   : > { %2019 = vrot.lane.b32.xlu0 %v1923_v15, %s4095_s26  ;;  %3418 = vmatmul.msk.f32.vlgmr.msra.gmra.mxu2 %vm894_vm4, %v1923_v15 }
0x1851   : > { %3429 = vmatpush.xpose.msk.msra.mxu2 %vm894_vm4, %v4801_v18 }
0x1855   : > { %2017 = vrot.lane.b32.xlu2 %v1922_v8, %s4095_s26  ;;  %s805_s26 = sand.u32 1, %s4071_s28  }
0x1856   : > { %s3139_s0 = scalar_lea.sflag [#allocation4], %s805_s26 }
0x185d   : > { %3589 = vrot.lane.b32.xlu2 %v3588_v19, %s4096_s2 }
0x1865   : > { %3594 = vrot.lane.b32.xlu2 %v3593_v20, %s4096_s2 }
0x186d   : > { %3599 = vrot.lane.b32.xlu2 %v3598_v21, %s4096_s2 }
0x1897   : > { %v2006_v23 = vpop.permute.xlu2 %2005 }
0x1898   : > { %3420 = vmatmul.msk.f32.vlgmr.msra.gmra.mxu0 %vm894_vm4, %v2006_v23 }
0x1899   : > { %3431 = vmatpush.xpose.msk.msra.mxu0 %vm894_vm4, %v4814_v22 }
0x189f   : > { %v2008_v24 = vpop.permute.xlu2 %2007 }
0x18a0   : > { %3422 = vmatmul.msk.f32.vlgmr.msrb.gmra.mxu1 %vm894_vm4, %v2008_v24 }
0x18a7   : > { %v2014_v25 = vpop.permute.xlu2 %2013 }
0x18a8   : > { %3428 = vmatmul.msk.f32.vlgmr.msra.gmra.mxu1 %vm894_vm4, %v2014_v25 }
0x18af   : > { %v2018_v26 = vpop.permute.xlu2 %2017 }
0x18b1   : > { %v2012_v27 = vpop.permute.xlu1 %2011 }
0x18b2   : > { %v2010_v28 = vpop.permute.xlu0 %2009  ;;  %3426 = vmatmul.msk.f32.vlgmr.msrb.gmra.mxu0 %vm894_vm4, %v2012_v27 }
0x18b3   : > { %3424 = vmatmul.msk.f32.vlgmr.msrb.gmra.mxu2 %vm894_vm4, %v2010_v28 }
0x18b7   : > { %v3590_v29 = vpop.permute.xlu2 %3589 }
0x18b8   : > { %v3592_v30 = vunpack.i.h.bf16 %v3590_v29  ;;  %v3591_v31 = vunpack.i.l.bf16 %v3590_v29 }
0x18b9   : > { %v2016_v32 = vpop.permute.xlu1 %2015 }
0x18ba   : > { %v4823_v33 = vpop.permute.xlu0 %2043  ;;  %v2066_v34 = vpop.f32.mrf.mxu0  ;;  %3432 = vmatmul.msk.f32.vlgmr.msra.gmra.mxu0 %vm894_vm4, %v2018_v26  ;;  %2643 = vmatpush.msrb.mxu2 %v3591_v31 }
0x18bb   : > { %v3618_v35 = vpack.i.bf16 %v4823_v33, %v4814_v22  ;;  %v2429_v36 = vmul.f32 0.25, %v2066_v34  ;;  %3430 = vmatmul.msk.f32.vlgmr.msra.gmra.mxu2 %vm894_vm4, %v2016_v32  ;;  %3433 = vmatpush.xpose.msk.msrb.mxu1 %vm894_vm4, %v4823_v33 }
0x18bc   : > { %2721 = vmatpush.msra.mxu2 %v3592_v30  ;;  %v2138_v37 = vpop.f32.mrf.mxu1 }
0x18bd   : > { %v4831_v38 = vmul.f32 0.25, %v2138_v37  ;;  %v2446_v39 = vsel %vm2445_vm13, %v2429_v36, -inf }
0x18be   : > { %2447 = vmax.xlane.f32.xlu1 %v2446_v39 }
0x18bf   : > { %v3595_v40 = vpop.permute.xlu2 %3594  ;;  %v2455_v41 = vsel %vm2445_vm13, %v4831_v38, -inf }
0x18c0   : > { %v3597_v42 = vunpack.i.h.bf16 %v3595_v40  ;;  %v3596_v6 = vunpack.i.l.bf16 %v3595_v40  ;;  %2456 = vmax.xlane.f32.xlu2 %v2455_v41 }
0x18c2   : > { %v2020_v43 = vpop.permute.xlu0 %2019  ;;  %v2114_v44 = vpop.f32.mrf.mxu0  ;;  %2669 = vmatpush.msrb.mxu0 %v3596_v6  ;;  %2695 = vmatpush.msra.mxu1 %v3597_v42 }
0x18c3   : > { %v2090_v45 = vpop.f32.mrf.mxu2  ;;  %v4836_v46 = vmul.f32 0.25, %v2114_v44  ;;  %3434 = vmatmul.msk.f32.vlgmr.msrb.gmra.mxu1 %vm894_vm4, %v2020_v43 }
0x18c4   : > { %v4839_v47 = vmul.f32 0.25, %v2090_v45  ;;  %v2210_v48 = vpop.f32.mrf.mxu1 }
0x18c5   : > { %v4841_v49 = vmul.f32 0.25, %v2210_v48  ;;  %v2452_v53 = vsel %vm2445_vm13, %v4836_v46, -inf }
0x18c6   : > { %v2449_v50 = vsel %vm2445_vm13, %v4839_v47, -inf }
0x18c7   : > { %2450 = vmax.xlane.f32.xlu0 %v2449_v50  ;;  %v4845_v51 = vpop.permute.xlu2 %3599  ;;  %v2464_v52 = vsel %vm2445_vm13, %v4841_v49, -inf }
0x18c8   : > { %v3602_v54 = vunpack.i.h.bf16 %v4845_v51  ;;  %2465 = vmax.xlane.f32.xlu1 %v2464_v52  ;;  %2453 = vmax.xlane.f32.xlu2 %v2452_v53 }
0x18ca   : > { %v2186_v55 = vpop.f32.mrf.mxu0  ;;  %2825 = vmatpush.msrb.mxu3 %v3602_v54 }
0x18cb   : > { %v2162_v56 = vpop.f32.mrf.mxu2  ;;  %v4852_v58 = vmul.f32 0.25, %v2186_v55 }
0x18cc   : > { %v4854_v60 = vmul.f32 0.25, %v2162_v56 }
0x18cd   : > { %v2461_v61 = vsel %vm2445_vm13, %v4852_v58, -inf }
0x18ce   : > { %v2458_v62 = vsel %vm2445_vm13, %v4854_v60, -inf }
0x18d0   : > { %2462 = vmax.xlane.f32.xlu1 %v2461_v61  ;;  %2459 = vmax.xlane.f32.xlu2 %v2458_v62 }
0x18d3   : > { %v2234_v63 = vpop.f32.mrf.mxu2 }
0x18d4   : > { %v4860_v0 = vmul.f32 0.25, %v2234_v63 }
0x18d6   : > { %v2467_v1 = vsel %vm2445_vm13, %v4860_v0, -inf }
0x18d7   : > { %2468 = vmax.xlane.f32.xlu0 %v2467_v1 }
0x1915   : > { %v2258_v2 = vpop.f32.mrf.mxu0 }
0x1916   : > { %v4864_v3 = vmul.f32 0.25, %v2258_v2 }
0x1918   : > { %v2470_v4 = vsel %vm2445_vm13, %v4864_v3, -inf }
0x1919   : > { %2471 = vmax.xlane.f32.xlu1 %v2470_v4 }
0x191d   : > { %v2282_v5 = vpop.f32.mrf.mxu1 }
0x191e   : > { %v4868_v7 = vmul.f32 0.25, %v2282_v5 }
0x1920   : > { %v2473_v8 = vsel %vm2445_vm13, %v4868_v7, -inf }
0x1921   : > { %2474 = vmax.xlane.f32.xlu0 %v2473_v8 }
0x1925   : > { %v2354_v28 = vpop.f32.mrf.mxu1 }
0x1926   : > { %v4888_v41 = vmul.f32 0.25, %v2354_v28 }
0x192f   : > { %v2330_v11 = vpop.f32.mrf.mxu0 }
0x1930   : > { %v4872_v15 = vmul.f32 0.25, %v2330_v11 }
0x1931   : > { %v2448_v19 = vpop.xlane.xlu1 %2447 }
0x1932   : > { %v2494_v20 = vsub.f32 %v2429_v36, %v2448_v19  ;;  %v2479_v21 = vsel %vm2445_vm13, %v4872_v15, -inf }
0x1933   : > { %v2457_v23 = vpop.xlane.xlu2 %2456  ;;  %2480 = vmax.xlane.f32.xlu2 %v2479_v21 }
0x1934   : > { %v2510_v24 = vmul.f32 1.442695, %v2494_v20  ;;  %v2497_v29 = vsub.f32 %v4831_v38, %v2457_v23 }
0x1936   : > { %3693 = vpow2.f32 %v2510_v24  ;;  %v2306_v25 = vpop.f32.mrf.mxu2  ;;  %v2516_v39 = vmul.f32 1.442695, %v2497_v29 }
0x1937   : > { %v4876_v26 = vmul.f32 0.25, %v2306_v25  ;;  %v2402_v27 = vpop.f32.mrf.mxu0 }
0x1938   : > { %v4879_v30 = vmul.f32 0.25, %v2402_v27  ;;  %3695 = vpow2.f32 %v2516_v39 }
0x1939   : > { %v2476_v31 = vsel %vm2445_vm13, %v4876_v26, -inf }
0x193a   : > { %v2451_v32 = vpop.xlane.xlu0 %2450  ;;  %2477 = vmax.xlane.f32.xlu0 %v2476_v31  ;;  %v2488_v34 = vsel %vm2445_vm13, %v4879_v30, -inf }
0x193b   : > { %2489 = vmax.xlane.f32.xlu2 %v2488_v34  ;;  %v2466_v36 = vpop.xlane.xlu1 %2465  ;;  %v2495_v40 = vsub.f32 %v4839_v47, %v2451_v32  ;;  %v2454_v38 = vpop.xlane.xlu2 %2453  ;;  %v2482_v47 = vsel %vm2445_vm13, %v4888_v41, -inf }
0x193c   : > { %v4885_v37 = vpop.eup %3693  ;;  %v2496_v45 = vsub.f32 %v4836_v46, %v2454_v38  ;;  %v2500_v54 = vsub.f32 %v4841_v49, %v2466_v36 }
0x193d   : > { %v2542_v42 = vsel %vm2445_vm13, %v4885_v37, 0.0  ;;  %v2512_v44 = vmul.f32 1.442695, %v2495_v40 }
0x193e   : > { %v2378_v6 = vpop.f32.mrf.mxu2  ;;  %2543 = vadd.xlane.f32.xlu1 %v2542_v42  ;;  %v2514_v53 = vmul.f32 1.442695, %v2496_v45  ;;  %v4904_v46 = vpop.eup %3695  ;;  %v2522_v61 = vmul.f32 1.442695, %v2500_v54 }
0x193f   : > { %v4892_v43 = vmul.f32 0.25, %v2378_v6  ;;  %3697 = vpow2.f32 %v2512_v44  ;;  %v2551_v1 = vsel %vm2445_vm13, %v4904_v46, 0.0 }
0x1940   : > { %v2426_v48 = vpop.f32.mrf.mxu1  ;;  %3699 = vpow2.f32 %v2514_v53 }
0x1941   : > { %v4895_v50 = vmul.f32 0.25, %v2426_v48  ;;  %v2485_v52 = vsel %vm2445_vm13, %v4892_v43, -inf  ;;  %3701 = vpow2.f32 %v2522_v61 }
0x1942   : > { %2483 = vmax.xlane.f32.xlu0 %v2482_v47 }
0x1943   : > { %2486 = vmax.xlane.f32.xlu2 %v2485_v52  ;;  %v2463_v55 = vpop.xlane.xlu1 %2462  ;;  %v2491_v56 = vsel %vm2445_vm13, %v4895_v50, -inf  ;;  %v2460_v63 = vpop.xlane.xlu2 %2459 }
0x1944   : > { %v2499_v62 = vsub.f32 %v4852_v58, %v2463_v55  ;;  %v2498_v49 = vsub.f32 %v4854_v60, %v2460_v63 }
0x1945   : > { %v4909_v2 = vpop.eup %3697 }
0x1946   : > { %2492 = vmax.xlane.f32.xlu1 %v2491_v56  ;;  %v2520_v4 = vmul.f32 1.442695, %v2499_v62  ;;  %v2545_v8 = vsel %vm2445_vm13, %v4909_v2, 0.0  ;;  %v4914_v11 = vpop.eup %3699  ;;  %v2518_v19 = vmul.f32 1.442695, %v2498_v49 }
0x1947   : > { %v2548_v20 = vsel %vm2445_vm13, %v4914_v11, 0.0  ;;  %v4919_v21 = vpop.eup %3701 }
0x1948   : > { %3703 = vpow2.f32 %v2520_v4  ;;  %v2560_v23 = vsel %vm2445_vm13, %v4919_v21, 0.0 }
0x1949   : > { %3705 = vpow2.f32 %v2518_v19 }
0x194a   : > { %2552 = vadd.xlane.f32.xlu0 %v2551_v1  ;;  %v2469_v5 = vpop.xlane.xlu0 %2468 }
0x194b   : > { %v2501_v58 = vsub.f32 %v4860_v0, %v2469_v5  ;;  %v3603_v0 = vpack.i.bf16 %v4750_v59, %v4744_v57 }
0x194d   : > { %v2524_v60 = vmul.f32 1.442695, %v2501_v58 }
0x194e   : > { %2546 = vadd.xlane.f32.xlu1 %v2545_v8  ;;  %v4923_v24 = vpop.eup %3703 }
0x194f   : > { %3707 = vpow2.f32 %v2524_v60  ;;  %v2557_v25 = vsel %vm2445_vm13, %v4923_v24, 0.0  ;;  %v4929_v27 = vpop.eup %3705 }
0x1950   : > { %v2554_v28 = vsel %vm2445_vm13, %v4929_v27, 0.0 }
0x1952   : > { %2549 = vadd.xlane.f32.xlu0 %v2548_v20 }
0x1955   : > { %v4934_v29 = vpop.eup %3707 }
0x1956   : > { %2561 = vadd.xlane.f32.xlu1 %v2560_v23  ;;  %v2563_v31 = vsel %vm2445_vm13, %v4934_v29, 0.0 }
0x195a   : > { %2558 = vadd.xlane.f32.xlu0 %v2557_v25 }
0x195b   : > { %3604 = vrot.lane.b32.xlu2 %v3603_v0, %s4096_s2 }
0x195e   : > { %2555 = vadd.xlane.f32.xlu1 %v2554_v28 }
0x1962   : > { %2564 = vadd.xlane.f32.xlu0 %v2563_v31 }
0x1963   : > { %3609 = vrot.lane.b32.xlu2 %v3608_v16, %s4096_s2 }
0x196b   : > { %3614 = vrot.lane.b32.xlu2 %v3613_v12, %s4096_s2 }
0x198c   : > { %v2472_v57 = vpop.xlane.xlu1 %2471 }
0x198d   : > { %v2502_v59 = vsub.f32 %v4864_v3, %v2472_v57 }
0x198f   : > { %v2526_v32 = vmul.f32 1.442695, %v2502_v59 }
0x1991   : > { %3709 = vpow2.f32 %v2526_v32 }
0x1994   : > { %v2475_v34 = vpop.xlane.xlu0 %2474 }
0x1995   : > { %v2503_v36 = vsub.f32 %v4868_v7, %v2475_v34 }
0x1997   : > { %v4948_v39 = vpop.eup %3709  ;;  %v2528_v40 = vmul.f32 1.442695, %v2503_v36 }
0x1998   : > { %v2566_v13 = vsel %vm2445_vm13, %v4948_v39, 0.0 }
0x1999   : > { %3711 = vpow2.f32 %v2528_v40  ;;  %2567 = vadd.xlane.f32.xlu1 %v2566_v13 }
0x199f   : > { %v4952_v14 = vpop.eup %3711 }
0x19a0   : > { %v2569_v9 = vsel %vm2445_vm13, %v4952_v14, 0.0 }
0x19a1   : > { %2570 = vadd.xlane.f32.xlu0 %v2569_v9 }
0x19a6   : > { %v2481_v10 = vpop.xlane.xlu2 %2480 }
0x19a7   : > { %v2505_v12 = vsub.f32 %v4872_v15, %v2481_v10 }
0x19a9   : > { %v2532_v16 = vmul.f32 1.442695, %v2505_v12 }
0x19ab   : > { %3713 = vpow2.f32 %v2532_v16 }
0x19ad   : > { %v2478_v3 = vpop.xlane.xlu0 %2477 }
0x19ae   : > { %v2504_v7 = vsub.f32 %v4876_v26, %v2478_v3  ;;  %v2490_v38 = vpop.xlane.xlu2 %2489 }
0x19af   : > { %v2508_v26 = vsub.f32 %v4879_v30, %v2490_v38 }
0x19b0   : > { %v2530_v42 = vmul.f32 1.442695, %v2504_v7 }
0x19b1   : > { %v4958_v6 = vpop.eup %3713  ;;  %v2544_v44 = vpop.xlane.xlu1 %2543  ;;  %v2538_v1 = vmul.f32 1.442695, %v2508_v26 }
0x19b2   : > { %3715 = vpow2.f32 %v2530_v42  ;;  %v2575_v45 = vsel %vm2445_vm13, %v4958_v6, 0.0 }
0x19b3   : > { %2576 = vadd.xlane.f32.xlu0 %v2575_v45  ;;  %3717 = vrcp.f32 %v2544_v44 }
0x19b5   : > { %v2484_v48 = vpop.xlane.xlu0 %2483 }
0x19b6   : > { %v2506_v47 = vsub.f32 %v4888_v41, %v2484_v48  ;;  %v2487_v15 = vpop.xlane.xlu2 %2486 }
0x19b7   : > { %v2507_v52 = vsub.f32 %v4892_v43, %v2487_v15  ;;  %v3601_v43 = vunpack.i.l.bf16 %v4845_v51 }
0x19b8   : > { %v4964_v53 = vpop.eup %3715  ;;  %v2534_v54 = vmul.f32 1.442695, %v2506_v47 }
0x19b9   : > { %v2536_v55 = vmul.f32 1.442695, %v2507_v52  ;;  %v2572_v56 = vsel %vm2445_vm13, %v4964_v53, 0.0  ;;  %v2493_v61 = vpop.xlane.xlu1 %2492  ;;  %v3718_v62 = vpop.eup %3717 }
0x19ba   : > { %3719 = vpow2.f32 %v2534_v54  ;;  %2573 = vadd.xlane.f32.xlu1 %v2572_v56  ;;  %v2509_v63 = vsub.f32 %v4895_v50, %v2493_v61  ;;  %v2606_v41 = vmul.f32 %v3718_v62, %v4885_v37 }
0x19bb   : > { %3721 = vpow2.f32 %v2536_v55 }
0x19bc   : > { %v2540_v49 = vmul.f32 1.442695, %v2509_v63  ;;  %3435 = vmatmul.msk.f32.vlgmr.msrb.gmra.mxu2 %vm947_vm5, %v2606_v41 }
0x19bd   : > { %v2553_v30 = vpop.xlane.xlu0 %2552  ;;  %2799 = vmatpush.msrb.mxu2 %v3601_v43 }
0x19be   : > { %v3605_v4 = vpop.permute.xlu2 %3604  ;;  %3723 = vrcp.f32 %v2553_v30 }
0x19bf   : > { %v3607_v5 = vunpack.i.h.bf16 %v3605_v4  ;;  %v3606_v8 = vunpack.i.l.bf16 %v3605_v4  ;;  %3725 = vpow2.f32 %v2538_v1 }
0x19c0   : > { %v4973_v19 = vpop.eup %3719  ;;  %3727 = vpow2.f32 %v2540_v49 }
0x19c1   : > { %v4975_v58 = vpop.eup %3721  ;;  %2747 = vmatpush.msra.mxu0 %v3606_v8  ;;  %2773 = vmatpush.msrb.mxu1 %v3607_v5  ;;  %v2578_v51 = vsel %vm2445_vm13, %v4973_v19, 0.0  ;;  %v2547_v37 = vpop.xlane.xlu1 %2546 }
0x19c2   : > { %2579 = vadd.xlane.f32.xlu1 %v2578_v51  ;;  %3729 = vrcp.f32 %v2547_v37  ;;  %v2581_v50 = vsel %vm2445_vm13, %v4975_v58, 0.0 }
0x19c3   : > { %2582 = vadd.xlane.f32.xlu0 %v2581_v50 }
0x19c4   : > { %v3724_v20 = vpop.eup %3723 }
0x19c5   : > { %v2550_v60 = vpop.xlane.xlu0 %2549  ;;  %v4981_v23 = vpop.eup %3725  ;;  %v2609_v25 = vmul.f32 %v3724_v20, %v4904_v46 }
0x19c6   : > { %3731 = vrcp.f32 %v2550_v60  ;;  %v3610_v0 = vpop.permute.xlu2 %3609  ;;  %v4984_v28 = vpop.eup %3727  ;;  %v2584_v34 = vsel %vm2445_vm13, %v4981_v23, 0.0 }
0x19c7   : > { %v3612_v31 = vunpack.i.h.bf16 %v3610_v0  ;;  %v3611_v57 = vunpack.i.l.bf16 %v3610_v0  ;;  %3438 = vmatmul.msk.f32.vlgmr.msra.gmra.mxu2 %vm947_vm5, %v2609_v25  ;;  %v2587_v46 = vsel %vm2445_vm13, %v4984_v28, 0.0 }
0x19c8   : > { %v3730_v59 = vpop.eup %3729 }
0x19c9   : > { %v2607_v32 = vmul.f32 %v3730_v59, %v4909_v2  ;;  %2929 = vmatpush.msra.mxu3 %v3612_v31  ;;  %2903 = vmatpush.msra.mxu2 %v3611_v57  ;;  %v2562_v36 = vpop.xlane.xlu1 %2561 }
0x19ca   : > { %2585 = vadd.xlane.f32.xlu1 %v2584_v34  ;;  %3733 = vrcp.f32 %v2562_v36 }
0x19cb   : > { %2588 = vadd.xlane.f32.xlu0 %v2587_v46  ;;  %3436 = vmatmul.msk.f32.vlgmr.msrb.gmra.mxu0 %vm947_vm5, %v2607_v32  ;;  %v3081_v46 = vld [vmem:[#allocation14 + $0x18] sm:$0xff] }
0x19cc   : > { %v3732_v40 = vpop.eup %3731 }
0x19cd   : > { %v2608_v13 = vmul.f32 %v3732_v40, %v4914_v11  ;;  %v2559_v9 = vpop.xlane.xlu0 %2558  ;;  %v3080_v40 = vld [vmem:[#allocation14 + $0x10] sm:$0xff] }
0x19ce   : > { %3735 = vrcp.f32 %v2559_v9  ;;  %v3615_v2 = vpop.permute.xlu2 %3614  ;;  %v3079_v9 = vld [vmem:[#allocation14 + $0x8] sm:$0xff] }
0x19cf   : > { %3437 = vmatmul.msk.f32.vlgmr.msra.gmra.mxu1 %vm947_vm5, %v2608_v13  ;;  %v3617_v10 = vunpack.i.h.bf16 %v3615_v2  ;;  %v3616_v12 = vunpack.i.l.bf16 %v3615_v2  ;;  %v3078_v2 = vld [vmem:[#allocation14] sm:$0xff] }
0x19d0   : > { %v3734_v16 = vpop.eup %3733 }
0x19d1   : > { %v2612_v3 = vmul.f32 %v3734_v16, %v4919_v21  ;;  %2851 = vmatpush.msrb.mxu0 %v3616_v12  ;;  %2877 = vmatpush.msra.mxu1 %v3617_v10  ;;  %v2556_v7 = vpop.xlane.xlu1 %2555  ;;  %v3623_v21 = vpack.i.bf16 %v4801_v18, %v4799_v17 }
0x19d2   : > { %3737 = vrcp.f32 %v2556_v7 }
0x19d3   : > { %3441 = vmatmul.msk.f32.vlgmr.msrb.gmra.mxu2 %vm947_vm5, %v2612_v3 }
0x19d4   : > { %v3736_v38 = vpop.eup %3735 }
0x19d5   : > { %v2611_v42 = vmul.f32 %v3736_v38, %v4923_v24  ;;  %v2565_v11 = vpop.xlane.xlu0 %2564 }
0x19d6   : > { %3739 = vrcp.f32 %v2565_v11 }
0x19d7   : > { %3440 = vmatmul.msk.f32.vlgmr.msrb.gmra.mxu1 %vm947_vm5, %v2611_v42 }
0x19d8   : > { %v3738_v44 = vpop.eup %3737 }
0x19d9   : > { %v2610_v45 = vmul.f32 %v3738_v44, %v4929_v27 }
0x19db   : > { %3439 = vmatmul.msk.f32.vlgmr.msra.gmra.mxu0 %vm947_vm5, %v2610_v45 }
0x19dc   : > { %v3740_v48 = vpop.eup %3739 }
0x19dd   : > { %v2613_v47 = vmul.f32 %v3740_v48, %v4934_v29 }
0x19df   : > { %3442 = vmatmul.msk.f32.vlgmr.msrb.gmra.mxu3 %vm947_vm5, %v2613_v47  ;;  %3624 = vrot.lane.b32.xlu0 %v3623_v21, %s4096_s2 }
0x19e3   : > { %3619 = vrot.lane.b32.xlu1 %v3618_v35, %s4096_s2  ;;  %s3312_s2 = sshll.u32 %s805_s26, 3 }
0x19e4   : > { %s807_s29 = scalar_lea.vmem [#allocation16], %s3312_s2  ;;  %s4017_s2 = scalar_lea.hbm %s5152_s12, 16 }
0x19e5   : > { %s3151_s25 = sshll.u32 %s807_s29, 4  ;;  %s3152_s25 = int_to_ptr.vmem [resolvable:$true] %s3151_s25 }
0x1a0c   : > { %v2568_v24 = vpop.xlane.xlu1 %2567 }
0x1a0d   : > { %3741 = vrcp.f32 %v2568_v24 }
0x1a13   : > { %v3742_v27 = vpop.eup %3741 }
0x1a14   : > { %v2614_v15 = vmul.f32 %v3742_v27, %v4948_v39  ;;  %v2571_v52 = vpop.xlane.xlu0 %2570 }
0x1a15   : > { %3743 = vrcp.f32 %v2571_v52 }
0x1a16   : > { %3443 = vmatmul.msk.f32.vlgmr.msrb.gmra.mxu0 %vm947_vm5, %v2614_v15 }
0x1a1b   : > { %v3744_v17 = vpop.eup %3743 }
0x1a1c   : > { %v2615_v18 = vmul.f32 %v3744_v17, %v4952_v14 }
0x1a1e   : > { %3444 = vmatmul.msk.f32.vlgmr.msra.gmra.mxu1 %vm947_vm5, %v2615_v18 }
0x1a26   : > { %v2577_v29 = vpop.xlane.xlu0 %2576 }
0x1a27   : > { %3745 = vrcp.f32 %v2577_v29 }
0x1a2d   : > { %v3746_v26 = vpop.eup %3745  ;;  %v2574_v54 = vpop.xlane.xlu1 %2573 }
0x1a2e   : > { %v2617_v22 = vmul.f32 %v3746_v26, %v4958_v6  ;;  %3747 = vrcp.f32 %v2574_v54 }
0x1a30   : > { %3446 = vmatmul.msk.f32.vlgmr.msra.gmra.mxu3 %vm947_vm5, %v2617_v22 }
0x1a34   : > { %v3748_v33 = vpop.eup %3747 }
0x1a35   : > { %v2616_v35 = vmul.f32 %v3748_v33, %v4964_v53  ;;  %v2580_v55 = vpop.xlane.xlu1 %2579 }
0x1a36   : > { %v2583_v39 = vpop.xlane.xlu0 %2582  ;;  %3749 = vrcp.f32 %v2580_v55 }
0x1a37   : > { %3445 = vmatmul.msk.f32.vlgmr.msra.gmra.mxu2 %vm947_vm5, %v2616_v35  ;;  %3751 = vrcp.f32 %v2583_v39 }
0x1a3c   : > { %v3750_v61 = vpop.eup %3749 }
0x1a3d   : > { %v2586_v56 = vpop.xlane.xlu1 %2585  ;;  %v3752_v62 = vpop.eup %3751  ;;  %v2618_v1 = vmul.f32 %v3750_v61, %v4973_v19  ;;  %v3654_v61 = vld [vmem:[%s5154_s11] ss:$0 sm:$0xff] }
0x1a3e   : > { %v2589_v14 = vpop.xlane.xlu0 %2588  ;;  %3753 = vrcp.f32 %v2586_v56  ;;  %v2619_v53 = vmul.f32 %v3752_v62, %v4975_v58 }
0x1a3f   : > { %3755 = vrcp.f32 %v2589_v14  ;;  %v2645_v25 = vpop.f32.mrf.mxu2 }
0x1a44   : > { %v3754_v43 = vpop.eup %3753 }
0x1a45   : > { %v3756_v49 = vpop.eup %3755  ;;  %v2620_v8 = vmul.f32 %v3754_v43, %v4981_v23 }
0x1a46   : > { %v2621_v51 = vmul.f32 %v3756_v49, %v4984_v28 }
0x1a48   : > { %v2671_v19 = vpop.f32.mrf.mxu0 }
0x1a4a   : > { %v2723_v23 = vpop.f32.mrf.mxu2 }
0x1a4c   : > { %v2697_v58 = vpop.f32.mrf.mxu1 }
0x1a51   : > { %v3625_v63 = vpop.permute.xlu0 %3624 }
0x1a52   : > { %v3627_v6 = vunpack.i.h.bf16 %v3625_v63  ;;  %v3626_v41 = vunpack.i.l.bf16 %v3625_v63 }
0x1a54   : > { %2955 = vmatpush.msra.mxu0 %v3626_v41  ;;  %2981 = vmatpush.msrb.mxu1 %v3627_v6  ;;  %v2775_v50 = vpop.f32.mrf.mxu1 }
0x1a55   : > { %v3620_v30 = vpop.permute.xlu1 %3619  ;;  %3447 = vmatmul.msk.f32.vlgmr.msra.gmra.mxu0 %vm947_vm5, %v2618_v1  ;;  %3448 = vmatmul.msk.f32.vlgmr.msrb.gmra.mxu1 %vm947_vm5, %v2619_v53 }
0x1a56   : > { %v3622_v4 = vunpack.i.h.bf16 %v3620_v30  ;;  %v3621_v5 = vunpack.i.l.bf16 %v3620_v30  ;;  %v2801_v0 = vpop.f32.mrf.mxu2  ;;  %3129 = vmatpush.msrb.mxu0 %v3081_v46 }
0x1a58   : > { %3007 = vmatpush.msrb.mxu2 %v3621_v5  ;;  %3033 = vmatpush.msrb.mxu3 %v3622_v4  ;;  %v2749_v37 = vpop.f32.mrf.mxu0 }
0x1a59   : > { %3449 = vmatmul.msk.f32.vlgmr.msrb.gmra.mxu2 %vm947_vm5, %v2620_v8  ;;  %3450 = vmatmul.msk.f32.vlgmr.msrb.gmra.mxu3 %vm947_vm5, %v2621_v51  ;;  %vm3095_vm5 = vcmask 1041409  }
0x1a5a   : > { %3130 = vmatpush.msrb.mxu0 %v3080_v40 }
0x1a5c   : > { %3131 = vmatpush.msrb.mxu0 %v3079_v9 }
0x1a5e   : > { %3132 = vmatpush.msrb.mxu0 %v3078_v2 }
0x1a62   : > { %v2827_v28 = vpop.f32.mrf.mxu3 }
0x1a93   : > { %v2853_v20 = vpop.f32.mrf.mxu0 }
0x1a94   : > { %3046 = vrot.lane.b32.xlu0 %v2853_v20, %s4098_s3 }
0x1a9b   : > { %v2879_v60 = vpop.f32.mrf.mxu1 }
0x1a9c   : > { %3048 = vrot.lane.b32.xlu2 %v2879_v60, %s4098_s3 }
0x1ab3   : > { %v2931_v57 = vpop.f32.mrf.mxu3 }
0x1aba   : > { %v2905_v31 = vpop.f32.mrf.mxu2 }
0x1abb   : > { %3050 = vrot.lane.b32.xlu2 %v2905_v31, %s4098_s3 }
0x1ac3   : > { %3052 = vrot.lane.b32.xlu2 %v2931_v57, %s4098_s3 }
0x1ad2   : > { %v2957_v59 = vpop.f32.mrf.mxu0  ;;  %v2983_v32 = vpop.f32.mrf.mxu1 }
0x1ad3   : > { %3056 = vrot.lane.b32.xlu0 %v2983_v32, %s4098_s3  ;;  %3054 = vrot.lane.b32.xlu1 %v2957_v59, %s4098_s3 }
0x1adc   : > { %v3009_v34 = vpop.f32.mrf.mxu2  ;;  %v3035_v36 = vpop.f32.mrf.mxu3 }
0x1add   : > { %3060 = vrot.lane.b32.xlu1 %v3035_v36, %s4098_s3  ;;  %3058 = vrot.lane.b32.xlu2 %v3009_v34, %s4098_s3  ;;  %s3453_s3 = sshll.u32 %s4236_s4, 3 }
0x1ade   : > { %s3149_s22 = scalar_lea.hbm %s5152_s12, %s3453_s3 }
0x1adf   : > { %s3153_s21 = sshll.u32 %s3149_s22, 4  ;;  %s3154_s21 = int_to_ptr.hbm [resolvable:$true] %s3153_s21 }
0x1ae0   : > { %s4011_s4 = sshra.s32 %s3154_s21, 4  ;;  %s4012_s4 = int_to_ptr.hbm [resolvable:$true] %s4011_s4 }
0x1ae1   : > { %s4013_s5 = scalar_lea.hbm %s4012_s4, 8  ;;  %p4018_p3 = scmp.lt.s32.totalorder %s4012_s4, %s5152_s12 }
0x1ae2   : > { %p4014_p0 = scmp.ne.s32.totalorder %s4012_s4, %s4013_s5  ;;  %p4019_p4 = scmp.lt.s32.totalorder %s4017_s2, %s4013_s5 }
0x1ae4   : > { %p4015_p1 = pnand %p4014_p0, %p4253_p5  ;;  %p4020_p7 = por %p4019_p4, %p4018_p3 }
0x1ae6   : > { %p4016_p2 = pneg %p4015_p1 }
0x1ae8   : > { %p4021_p8 = pnand %p4020_p7, %p4016_p2 }
0x1af6   : > { %v3049_v13 = vpop.permute.xlu2 %3048 }
0x1af7   : > { %v3071_v7 = vsel %vm894_vm4, %v2671_v19, %v3049_v13 }
0x1af8   : > { %v3094_v21 = vrot.slane %v3071_v7, 7 }
0x1b06   : > { %v3047_v12 = vpop.permute.xlu0 %3046 }
0x1b07   : > { %v3070_v44 = vsel %vm894_vm4, %v2645_v25, %v3047_v12 }
0x1b08   : > { %v3096_v15 = vsel %vm3095_vm5, %v3094_v21, %v3070_v44 }
0x1b15   : > { %v3051_v10 = vpop.permute.xlu2 %3050 }
0x1b16   : > { %v3072_v3 = vsel %vm894_vm4, %v2697_v58, %v3051_v10 }
0x1b17   : > { %v3097_v45 = vrot.slane %v3072_v3, 6 }
0x1b19   : > { %v3099_v52 = vsel %vm3098_vm14, %v3097_v45, %v3096_v15 }
0x1b1d   : > { %v3053_v16 = vpop.permute.xlu2 %3052 }
0x1b1e   : > { %v3073_v38 = vsel %vm894_vm4, %v2723_v23, %v3053_v16 }
0x1b1f   : > { %v3100_v47 = vrot.slane %v3073_v38, 5 }
0x1b21   : > { %v3102_v18 = vsel %vm3101_vm15, %v3100_v47, %v3099_v52 }
0x1b37   : > { %v3059_v17 = vpop.permute.xlu2 %3058 }
0x1b38   : > { %v3076_v54 = vsel %vm894_vm4, %v2801_v0, %v3059_v17 }
0x1b39   : > { %v3109_v35 = vrot.slane %v3076_v54, 2 }
0x1b45   : > { %v3057_v42 = vpop.permute.xlu0 %3056  ;;  %v3055_v11 = vpop.permute.xlu1 %3054 }
0x1b46   : > { %v3074_v48 = vsel %vm894_vm4, %v2749_v37, %v3055_v11  ;;  %v3075_v24 = vsel %vm894_vm4, %v2775_v50, %v3057_v42 }
0x1b47   : > { %v3103_v27 = vrot.slane %v3074_v48, 4  ;;  %v3106_v29 = vrot.slane %v3075_v24, 3 }
0x1b49   : > { %v3105_v26 = vsel %vm3104_vm0, %v3103_v27, %v3102_v18 }
0x1b4a   : > { %v3108_v22 = vsel %vm3107_vm1, %v3106_v29, %v3105_v26 }
0x1b4b   : > { %v3111_v14 = vsel %vm3110_vm2, %v3109_v35, %v3108_v22 }
0x1b4f   : > { %v3061_v33 = vpop.permute.xlu1 %3060 }
0x1b50   : > { %v3077_v39 = vsel %vm894_vm4, %v2827_v28, %v3061_v33 }
0x1b51   : > { %v3112_v55 = vrot.slane %v3077_v39, 1 }
0x1b53   : > { %v3114_v56 = vsel %vm3113_vm6, %v3112_v55, %v3111_v14 }
0x1b54   : > { %3451 = vmatmul.msk.f32.vlgmr.msrb.gmra.mxu0 %vm865_vm3, %v3114_v56 }
0x1bd1   : > { %v3134_v62 = vpop.f32.mrf.mxu0 }
0x1bd2   : > { %v3135_v63 = vadd.f32 %v3654_v61, %v3134_v62 }
0x1bd4   : > { %3137 = vst.msk [vmem:[%s807_s29] sm:$0xff] %vm865_vm3, %v3135_v63 }
0x1bd5   : > { %4024 = shalt.err (!%p4021_p8)
}
0x1bd6   : > { %3488 = dma.vmem_to_hbm [thread:$0]  (%p4253_p5), %s3152_s25, 128, %s3154_s21, %s3139_s0  }
0x1bd7 PF: > { %s5155_s26 = sld [smem:[#allocation25_spill]] }
0x1bd8   : > { %s5156_s27 = sld [smem:[#allocation23_spill]] }
0x1bdd   : > { %p3535_p9 = scmp.ge.s32.totalorder %s5155_s26, 2 }
0x1bde   : > { %s3165_s11 = sand.u32 1, %s5156_s27  }
0x1bdf   : > { %p3516_p10 = pnand %p3535_p9, %p4257_p6  ;;  %s3166_s29 = scalar_lea.sflag [#allocation4], %s3165_s11 }
0x1be1   : > { %p3517_p11 = pneg %p3516_p10 }
0x1be3   : > { %4062 = dma.done.wait (%p3517_p11), %s3166_s29, 128  }
0x1be4   : > { %4064 = vsyncadd (%p3517_p11), %s3166_s29, 4294967168  ;;  %s5158_s30 = sld [smem:[#allocation26_spill]]  ;;  %s5161_s3 = smov %s4071_s28 }
0x1be5   : > { %s5159_s5 = sld [smem:[#allocation24_spill]] }
0x1be6   : > { %s5160_s29 = sld [smem:[#allocation27_spill]] }
0x1bea   : > { %p37_p12 = scmp.ge.s32.totalorder %s5158_s30, 4  }
0x1beb   : > { %s5162_s28 = smov %s5159_s5 }
0x1bec   :  { %39 = sbr.rel (!%p37_p12) target bundleno = 21 (0x15), region = 200 }
0x1bf1   :  { %3172 = vsyncpa [#allocation3], 1 }
0x1bf2   :  { %3174 = vsyncpa [#allocation3 + $0x1], 1 }
0x1bf3   :  { %3175 = vsyncpa [#allocation6], 1 }
0x1bf4   :  { %3176 = vsyncpa [#allocation9], 1 }
0x1bf5   :  { %3177 = vsyncpa [#allocation12], 1 }
0x1bf6   :  { %3178 = vsyncpa [#allocation15], 1 }
0x1bf7   :  { %3179 = vsyncpa [#allocation4], 1 }
0x1bf8   :  { %3181 = vsyncpa [#allocation4 + $0x1], 1 }

</bundles_post_ra>
